<compile_context>
chip_gen: v6e
topology: v6e:2x2x1
jax: 0.10.0
libtpu: 0.0.40
codegen_flags: <defaults>
</compile_context>

<pallas_src>
import jax
import jax.numpy as jnp
import numpy as np
from jax.experimental import pallas as pl
from jax.experimental.pallas import tpu as pltpu

EPS = 1e-5
F32 = jnp.float32
BF16 = jnp.bfloat16


# ----------------------------- Pallas kernels -----------------------------

def _stn_conv_kernel(x_ref, w1, b1, w2, b2, w3, b3, out_ref):
    """One (batch, point-tile) grid step of the STN3d conv stack.

    x_ref: (TN, 3) points for one batch element / tile.
    out_ref: (1, 1024) running max, resident across the point-tile axis.
    """
    @pl.when(pl.program_id(1) == 0)
    def _init():
        out_ref[...] = jnp.full_like(out_ref, -jnp.inf)

    h = jnp.dot(x_ref[...], w1[...], preferred_element_type=F32) + b1[...]
    h = jnp.maximum(h, 0.0)                                              # (TN, 64)
    h = jnp.dot(h.astype(BF16), w2[...], preferred_element_type=F32) + b2[...]
    h = jnp.maximum(h, 0.0)                                              # (TN, 128)
    h = jnp.dot(h.astype(BF16), w3[...], preferred_element_type=F32) + b3[...]
    h = jnp.maximum(h, 0.0)                                              # (TN, 1024)
    # Per-tile max over the point (sublane) axis; cross-tile running max.
    out_ref[...] = jnp.maximum(out_ref[...], jnp.max(h, axis=0, keepdims=True))


def _feat_conv_kernel(x_ref, t_ref, w1, b1, w2, b2, w3, b3, out_ref):
    """One (batch, point-tile) grid step of the PointNetfeat conv stack.

    x_ref: (TN, 3); t_ref: (3, 3) input transform for this batch element.
    out_ref: (1, 1024) running max, resident across the point-tile axis.
    """
    @pl.when(pl.program_id(1) == 0)
    def _init():
        # bn3(conv3) has no ReLU -> values may be negative: init to -inf.
        out_ref[...] = jnp.full_like(out_ref, -jnp.inf)

    # Fold the 3x3 input transform into the first conv weight: (3,3) @ (3,64).
    tw1 = jnp.dot(t_ref[...], w1[...], preferred_element_type=F32)
    h = jnp.dot(x_ref[...], tw1, preferred_element_type=F32) + b1[...]
    h = jnp.maximum(h, 0.0)                                              # (TN, 64)
    h = jnp.dot(h.astype(BF16), w2[...], preferred_element_type=F32) + b2[...]
    h = jnp.maximum(h, 0.0)                                              # (TN, 128)
    h = jnp.dot(h.astype(BF16), w3[...], preferred_element_type=F32) + b3[...]  # no ReLU
    out_ref[...] = jnp.maximum(out_ref[...], jnp.max(h, axis=0, keepdims=True))


# ------------------------------ wrappers -----------------------------------

def _rep_spec(shape):
    nd = len(shape)
    return pl.BlockSpec(shape, lambda b, n, _nd=nd: (0,) * _nd)


_COMPILER_PARAMS = pltpu.CompilerParams(
    dimension_semantics=("parallel", "arbitrary"),  # batch across cores, points sequential
    vmem_limit_bytes=32 * 1024 * 1024,
)


def _choose_tile_n(N):
    for tn in (512, 256, 128):
        if N > tn and N % tn == 0:
            return tn
    # Small N, or N not a multiple of 128: single full-N tile.
    # TODO(synk): large N that is not a multiple of 128 would need a masked tail tile.
    return N


def stn_conv_pallas(x_bnc, params, tn):
    B, N, _ = x_bnc.shape
    w1, b1, w2, b2, w3, b3 = params
    w2 = w2.astype(BF16)
    w3 = w3.astype(BF16)
    in_specs = [pl.BlockSpec((None, tn, 3), lambda b, n: (b, n, 0))]
    in_specs += [_rep_spec(p.shape) for p in (w1, b1, w2, b2, w3, b3)]
    out = pl.pallas_call(
        _stn_conv_kernel,
        out_shape=jax.ShapeDtypeStruct((B, 1, 1024), F32),
        grid=(B, N // tn),
        in_specs=in_specs,
        out_specs=pl.BlockSpec((None, 1, 1024), lambda b, n: (b, 0, 0)),
        compiler_params=_COMPILER_PARAMS,
    )(x_bnc, w1, b1, w2, b2, w3, b3)
    return out[:, 0, :]  # (B, 1024)


def feat_conv_pallas(x_bnc, trans, params, tn):
    B, N, _ = x_bnc.shape
    w1, b1, w2, b2, w3, b3 = params
    w2 = w2.astype(BF16)
    w3 = w3.astype(BF16)
    in_specs = [pl.BlockSpec((None, tn, 3), lambda b, n: (b, n, 0)),
                pl.BlockSpec((None, 3, 3), lambda b, n: (b, 0, 0))]
    in_specs += [_rep_spec(p.shape) for p in (w1, b1, w2, b2, w3, b3)]
    out = pl.pallas_call(
        _feat_conv_kernel,
        out_shape=jax.ShapeDtypeStruct((B, 1, 1024), F32),
        grid=(B, N // tn),
        in_specs=in_specs,
        out_specs=pl.BlockSpec((None, 1, 1024), lambda b, n: (b, 0, 0)),
        compiler_params=_COMPILER_PARAMS,
    )(x_bnc, trans, w1, b1, w2, b2, w3, b3)
    return out[:, 0, :]  # (B, 1024)


def _stn_fc_head(g, fc_params):
    # Batched over B rows in plain XLA (M=1 matmuls are a poor fit for Pallas grid steps).
    fw1, fb1, fw2, fb2, fw3, fb3 = fc_params
    f = jnp.maximum(g @ fw1 + fb1, 0.0)
    f = jnp.maximum(f @ fw2 + fb2, 0.0)
    return f @ fw3 + fb3


def pointnetfeat_forward(x, stn_conv_p, stn_fc_p, feat_p):
    """x: (B, 3, N) float32, same axis convention as the PyTorch Conv1d input."""
    B, _, N = x.shape
    tn = _choose_tile_n(N)
    assert N % tn == 0
    xT = jnp.transpose(x, (0, 2, 1))                       # (B, N, 3), transposed once
    g = stn_conv_pallas(xT, stn_conv_p, tn)                # (B, 1024) pooled STN feature
    f = _stn_fc_head(g, stn_fc_p)                          # (B, 9)
    trans = (f + jnp.eye(3, dtype=F32).reshape(1, 9)).reshape(B, 3, 3)
    gfeat = feat_conv_pallas(xT, trans, feat_p, tn)        # (B, 1024)
    return gfeat, trans, None                              # feature_transform=False -> trans_feat None


# ------------------------ deterministic parameter init ----------------------

def _conv_bn_folded(key, cin, cout):
    kw, kb, kg, kbt, km, kv = jax.random.split(key, 6)
    w = 0.1 * jax.random.normal(kw, (cin, cout), F32)
    b = 0.1 * jax.random.normal(kb, (cout,), F32)
    gamma = jax.random.uniform(kg, (cout,), F32, 0.5, 1.5)
    beta = 0.1 * jax.random.normal(kbt, (cout,), F32)
    mean = 0.1 * jax.random.normal(km, (cout,), F32)
    var = jax.random.uniform(kv, (cout,), F32, 0.5, 1.5)
    s = gamma / jnp.sqrt(var + EPS)
    return w * s[None, :], ((b - mean) * s + beta).reshape(1, cout)


def _linear(key, cin, cout):
    kw, kb = jax.random.split(key, 2)
    w = 0.1 * jax.random.normal(kw, (cin, cout), F32)
    b = 0.1 * jax.random.normal(kb, (cout,), F32)
    return w, b.reshape(1, cout)


def init_params(key):
    ks = jax.random.split(key, 9)
    # STN3d: conv(3->64->128->1024) + bn, fc(1024->512->256) + bn, fc(256->9)
    sw1, sb1 = _conv_bn_folded(ks[0], 3, 64)
    sw2, sb2 = _conv_bn_folded(ks[1], 64, 128)
    sw3, sb3 = _conv_bn_folded(ks[2], 128, 1024)
    fw1, fb1 = _conv_bn_folded(ks[3], 1024, 512)
    fw2, fb2 = _conv_bn_folded(ks[4], 512, 256)
    fw3, fb3 = _linear(ks[5], 256, 9)
    stn_conv_p = (sw1, sb1, sw2, sb2, sw3, sb3)
    stn_fc_p = (fw1, fb1, fw2, fb2, fw3, fb3)
    # PointNetfeat: conv(3->64->128->1024) + bn
    cw1, cb1 = _conv_bn_folded(ks[6], 3, 64)
    cw2, cb2 = _conv_bn_folded(ks[7], 64, 128)
    cw3, cb3 = _conv_bn_folded(ks[8], 128, 1024)
    feat_p = (cw1, cb1, cw2, cb2, cw3, cb3)
    return stn_conv_p, stn_fc_p, feat_p


# ------------------------------- reference ----------------------------------

def ref_forward(x, stn_conv_p, stn_fc_p, feat_p):
    B, _, N = x.shape
    xT = jnp.transpose(x, (0, 2, 1))
    w1, b1, w2, b2, w3, b3 = stn_conv_p
    h = jnp.maximum(xT @ w1 + b1, 0.0)
    h = jnp.maximum(h @ w2 + b2, 0.0)
    h = jnp.maximum(h @ w3 + b3, 0.0)
    g = jnp.max(h, axis=1)
    fw1, fb1, fw2, fb2, fw3, fb3 = stn_fc_p
    f = jnp.maximum(g @ fw1 + fb1, 0.0)
    f = jnp.maximum(f @ fw2 + fb2, 0.0)
    f = f @ fw3 + fb3
    trans = (f + jnp.eye(3, dtype=F32).reshape(1, 9)).reshape(B, 3, 3)
    cw1, cb1, cw2, cb2, cw3, cb3 = feat_p
    y = jnp.einsum("bnc,bcd->bnd", xT, trans)
    h = jnp.maximum(y @ cw1 + cb1, 0.0)
    h = jnp.maximum(h @ cw2 + cb2, 0.0)
    h = h @ cw3 + cb3
    return jnp.max(h, axis=1), trans


# --------------------------------- main --------------------------------------

if __name__ == "__main__":
    key = jax.random.PRNGKey(0)
    kp, kx = jax.random.split(key)
    stn_conv_p, stn_fc_p, feat_p = init_params(kp)

    B, N = 2, 256   # (batch, n_pts); channels = 3 as in Conv1d(3, 64, 1). N=256 -> 2 point tiles.
    x = jax.random.normal(kx, (B, 3, N), F32)

    fwd = jax.jit(pointnetfeat_forward)
    gfeat, trans, trans_feat = fwd(x, stn_conv_p, stn_fc_p, feat_p)
    gfeat = jax.block_until_ready(gfeat)
    trans = jax.block_until_ready(trans)

    assert gfeat.shape == (B, 1024) and gfeat.dtype == F32
    assert trans.shape == (B, 3, 3) and trans.dtype == F32
    assert trans_feat is None

    ref_g, ref_t = ref_forward(x, stn_conv_p, stn_fc_p, feat_p)
    np.testing.assert_allclose(np.asarray(trans), np.asarray(ref_t), rtol=5e-2, atol=5e-2)
    np.testing.assert_allclose(np.asarray(gfeat), np.asarray(ref_g), rtol=5e-2, atol=5e-2)

    print("KERNEL_OK")
</pallas_src>

<mosaic_0001>
module attributes {stable_mosaic.version = 11 : i64} {
  func.func @_stn_conv_kernel(%arg0: i32, %arg1: i32, %arg2: memref<1x128x3xf32, #tpu.memory_space<vmem>>, %arg3: memref<3x64xf32, #tpu.memory_space<vmem>>, %arg4: memref<1x64xf32, #tpu.memory_space<vmem>>, %arg5: memref<64x128xbf16, #tpu.memory_space<vmem>>, %arg6: memref<1x128xf32, #tpu.memory_space<vmem>>, %arg7: memref<128x1024xbf16, #tpu.memory_space<vmem>>, %arg8: memref<1x1024xf32, #tpu.memory_space<vmem>>, %arg9: memref<1x1x1024xf32, #tpu.memory_space<vmem>>) attributes {dimension_semantics = [#tpu.dimension_semantics<parallel>, #tpu.dimension_semantics<arbitrary>], iteration_bounds = array<i64: 2, 2>, scalar_prefetch = 0 : i64, scratch_operands = 0 : i64, tpu.core_type = #tpu.core_type<tc>, window_params = [{transform_indices = @transform_0, window_bounds = array<i64: 1, 128, 3>}, {pipeline_mode = #tpu.pipeline_mode<synchronous>, transform_indices = @transform_1, window_bounds = array<i64: 3, 64>}, {pipeline_mode = #tpu.pipeline_mode<synchronous>, transform_indices = @transform_2, window_bounds = array<i64: 1, 64>}, {pipeline_mode = #tpu.pipeline_mode<synchronous>, transform_indices = @transform_3, window_bounds = array<i64: 64, 128>}, {pipeline_mode = #tpu.pipeline_mode<synchronous>, transform_indices = @transform_4, window_bounds = array<i64: 1, 128>}, {pipeline_mode = #tpu.pipeline_mode<synchronous>, transform_indices = @transform_5, window_bounds = array<i64: 128, 1024>}, {pipeline_mode = #tpu.pipeline_mode<synchronous>, transform_indices = @transform_6, window_bounds = array<i64: 1, 1024>}, {transform_indices = @transform_7, window_bounds = array<i64: 1, 1, 1024>}]} {
    %c0_i32 = arith.constant 0 : i32
    %0 = arith.cmpi eq, %arg1, %c0_i32 : i32
    %1 = arith.extui %0 : i1 to i32
    %c0_i32_0 = arith.constant 0 : i32
    %2 = arith.cmpi ne, %1, %c0_i32_0 : i32
    scf.if %2 {
      %cst_27 = arith.constant 0xFF800000 : f32
      %36 = vector.broadcast %cst_27 : f32 to vector<1x1024xf32>
      %c0_28 = arith.constant 0 : index
      %c0_29 = arith.constant 0 : index
      %c0_30 = arith.constant 0 : index
      %37 = vector.load %arg9[%c0_28, %c0_29, %c0_30] : memref<1x1x1024xf32, #tpu.memory_space<vmem>>, vector<1x1x1024xf32>
      %38 = vector.shape_cast %37 : vector<1x1x1024xf32> to vector<1x1024xf32>
      %39 = vector.shape_cast %36 : vector<1x1024xf32> to vector<1x1x1024xf32>
      tpu.vector_store %arg9[%c0_28, %c0_29, %c0_30], %39 {strides = array<i32>} : memref<1x1x1024xf32, #tpu.memory_space<vmem>>, vector<1x1x1024xf32>,
    } else {
    }
    %c0 = arith.constant 0 : index
    %c0_1 = arith.constant 0 : index
    %c0_2 = arith.constant 0 : index
    %3 = vector.load %arg2[%c0, %c0_1, %c0_2] : memref<1x128x3xf32, #tpu.memory_space<vmem>>, vector<1x128x3xf32>
    %4 = vector.shape_cast %3 : vector<1x128x3xf32> to vector<128x3xf32>
    %c0_3 = arith.constant 0 : index
    %c0_4 = arith.constant 0 : index
    %5 = vector.load %arg3[%c0_3, %c0_4] : memref<3x64xf32, #tpu.memory_space<vmem>>, vector<3x64xf32>
    %cst = arith.constant dense<0.000000e+00> : vector<128x64xf32>
    %6 = tpu.matmul %4, %5, %cst {dimension_numbers = #tpu.dot_dimension_numbers<[1], [0], [0], [1], [0, 0, 1, 1], [], []>} : vector<128x3xf32>, vector<3x64xf32>, vector<128x64xf32> -> vector<128x64xf32>
    %c0_5 = arith.constant 0 : index
    %c0_6 = arith.constant 0 : index
    %7 = vector.load %arg4[%c0_5, %c0_6] : memref<1x64xf32, #tpu.memory_space<vmem>>, vector<1x64xf32>
    %8 = vector.broadcast %7 : vector<1x64xf32> to vector<128x64xf32>
    %9 = arith.addf %6, %8 : vector<128x64xf32>
    %cst_7 = arith.constant 0.000000e+00 : f32
    %10 = vector.broadcast %cst_7 : f32 to vector<128x64xf32>
    %11 = arith.maximumf %9, %10 : vector<128x64xf32>
    %12 = arith.truncf %11 : vector<128x64xf32> to vector<128x64xbf16>
    %c0_8 = arith.constant 0 : index
    %c0_9 = arith.constant 0 : index
    %13 = vector.load %arg5[%c0_8, %c0_9] : memref<64x128xbf16, #tpu.memory_space<vmem>>, vector<64x128xbf16>
    %cst_10 = arith.constant dense<0.000000e+00> : vector<128x128xf32>
    %14 = tpu.matmul %12, %13, %cst_10 {dimension_numbers = #tpu.dot_dimension_numbers<[1], [0], [0], [1], [0, 0, 1, 1], [], []>} : vector<128x64xbf16>, vector<64x128xbf16>, vector<128x128xf32> -> vector<128x128xf32>
    %c0_11 = arith.constant 0 : index
    %c0_12 = arith.constant 0 : index
    %15 = vector.load %arg6[%c0_11, %c0_12] : memref<1x128xf32, #tpu.memory_space<vmem>>, vector<1x128xf32>
    %16 = vector.broadcast %15 : vector<1x128xf32> to vector<128x128xf32>
    %17 = arith.addf %14, %16 : vector<128x128xf32>
    %cst_13 = arith.constant 0.000000e+00 : f32
    %18 = vector.broadcast %cst_13 : f32 to vector<128x128xf32>
    %19 = arith.maximumf %17, %18 : vector<128x128xf32>
    %20 = arith.truncf %19 : vector<128x128xf32> to vector<128x128xbf16>
    %c0_14 = arith.constant 0 : index
    %c0_15 = arith.constant 0 : index
    %21 = vector.load %arg7[%c0_14, %c0_15] : memref<128x1024xbf16, #tpu.memory_space<vmem>>, vector<128x1024xbf16>
    %cst_16 = arith.constant dense<0.000000e+00> : vector<128x1024xf32>
    %22 = tpu.matmul %20, %21, %cst_16 {dimension_numbers = #tpu.dot_dimension_numbers<[1], [0], [0], [1], [0, 0, 1, 1], [], []>} : vector<128x128xbf16>, vector<128x1024xbf16>, vector<128x1024xf32> -> vector<128x1024xf32>
    %c0_17 = arith.constant 0 : index
    %c0_18 = arith.constant 0 : index
    %23 = vector.load %arg8[%c0_17, %c0_18] : memref<1x1024xf32, #tpu.memory_space<vmem>>, vector<1x1024xf32>
    %24 = vector.broadcast %23 : vector<1x1024xf32> to vector<128x1024xf32>
    %25 = arith.addf %22, %24 : vector<128x1024xf32>
    %cst_19 = arith.constant 0.000000e+00 : f32
    %26 = vector.broadcast %cst_19 : f32 to vector<128x1024xf32>
    %27 = arith.maximumf %25, %26 : vector<128x1024xf32>
    %c0_20 = arith.constant 0 : index
    %c0_21 = arith.constant 0 : index
    %c0_22 = arith.constant 0 : index
    %28 = vector.load %arg9[%c0_20, %c0_21, %c0_22] : memref<1x1x1024xf32, #tpu.memory_space<vmem>>, vector<1x1x1024xf32>
    %29 = vector.shape_cast %28 : vector<1x1x1024xf32> to vector<1x1024xf32>
    %cst_23 = arith.constant dense<0xFF800000> : vector<1024xf32>
    %30 = vector.multi_reduction <maximumf>, %27, %cst_23 [0] : vector<128x1024xf32> to vector<1024xf32>
    %31 = vector.shape_cast %30 : vector<1024xf32> to vector<1x1024xf32>
    %32 = arith.maximumf %29, %31 : vector<1x1024xf32>
    %c0_24 = arith.constant 0 : index
    %c0_25 = arith.constant 0 : index
    %c0_26 = arith.constant 0 : index
    %33 = vector.load %arg9[%c0_24, %c0_25, %c0_26] : memref<1x1x1024xf32, #tpu.memory_space<vmem>>, vector<1x1x1024xf32>
    %34 = vector.shape_cast %33 : vector<1x1x1024xf32> to vector<1x1024xf32>
    %35 = vector.shape_cast %32 : vector<1x1024xf32> to vector<1x1x1024xf32>
    tpu.vector_store %arg9[%c0_24, %c0_25, %c0_26], %35 {strides = array<i32>} : memref<1x1x1024xf32, #tpu.memory_space<vmem>>, vector<1x1x1024xf32>,
    return
  }
  func.func @transform_0(%arg0: i32, %arg1: i32) -> (i32, i32, i32) {
    %c0_i32 = arith.constant 0 : i32
    %c0_i32_0 = arith.constant 0 : i32
    return %arg0, %arg1, %c0_i32 : i32, i32, i32
  }
  func.func @transform_1(%arg0: i32, %arg1: i32) -> (i32, i32) {
    %c0_i32 = arith.constant 0 : i32
    %c0_i32_0 = arith.constant 0 : i32
    %c0_i32_1 = arith.constant 0 : i32
    return %c0_i32, %c0_i32_0 : i32, i32
  }
  func.func @transform_2(%arg0: i32, %arg1: i32) -> (i32, i32) {
    %c0_i32 = arith.constant 0 : i32
    %c0_i32_0 = arith.constant 0 : i32
    %c0_i32_1 = arith.constant 0 : i32
    return %c0_i32, %c0_i32_0 : i32, i32
  }
  func.func @transform_3(%arg0: i32, %arg1: i32) -> (i32, i32) {
    %c0_i32 = arith.constant 0 : i32
    %c0_i32_0 = arith.constant 0 : i32
    %c0_i32_1 = arith.constant 0 : i32
    return %c0_i32, %c0_i32_0 : i32, i32
  }
  func.func @transform_4(%arg0: i32, %arg1: i32) -> (i32, i32) {
    %c0_i32 = arith.constant 0 : i32
    %c0_i32_0 = arith.constant 0 : i32
    %c0_i32_1 = arith.constant 0 : i32
    return %c0_i32, %c0_i32_0 : i32, i32
  }
  func.func @transform_5(%arg0: i32, %arg1: i32) -> (i32, i32) {
    %c0_i32 = arith.constant 0 : i32
    %c0_i32_0 = arith.constant 0 : i32
    %c0_i32_1 = arith.constant 0 : i32
    return %c0_i32, %c0_i32_0 : i32, i32
  }
  func.func @transform_6(%arg0: i32, %arg1: i32) -> (i32, i32) {
    %c0_i32 = arith.constant 0 : i32
    %c0_i32_0 = arith.constant 0 : i32
    %c0_i32_1 = arith.constant 0 : i32
    return %c0_i32, %c0_i32_0 : i32, i32
  }
  func.func @transform_7(%arg0: i32, %arg1: i32) -> (i32, i32, i32) {
    %c0_i32 = arith.constant 0 : i32
    %c0_i32_0 = arith.constant 0 : i32
    %c0_i32_1 = arith.constant 0 : i32
    return %arg0, %c0_i32, %c0_i32_0 : i32, i32, i32
  }
}

module attributes {stable_mosaic.version = 11 : i64} {
  func.func @_feat_conv_kernel(%arg0: i32, %arg1: i32, %arg2: memref<1x128x3xf32, #tpu.memory_space<vmem>>, %arg3: memref<1x3x3xf32, #tpu.memory_space<vmem>>, %arg4: memref<3x64xf32, #tpu.memory_space<vmem>>, %arg5: memref<1x64xf32, #tpu.memory_space<vmem>>, %arg6: memref<64x128xbf16, #tpu.memory_space<vmem>>, %arg7: memref<1x128xf32, #tpu.memory_space<vmem>>, %arg8: memref<128x1024xbf16, #tpu.memory_space<vmem>>, %arg9: memref<1x1024xf32, #tpu.memory_space<vmem>>, %arg10: memref<1x1x1024xf32, #tpu.memory_space<vmem>>) attributes {dimension_semantics = [#tpu.dimension_semantics<parallel>, #tpu.dimension_semantics<arbitrary>], iteration_bounds = array<i64: 2, 2>, scalar_prefetch = 0 : i64, scratch_operands = 0 : i64, tpu.core_type = #tpu.core_type<tc>, window_params = [{transform_indices = @transform_0, window_bounds = array<i64: 1, 128, 3>}, {transform_indices = @transform_1, window_bounds = array<i64: 1, 3, 3>}, {pipeline_mode = #tpu.pipeline_mode<synchronous>, transform_indices = @transform_2, window_bounds = array<i64: 3, 64>}, {pipeline_mode = #tpu.pipeline_mode<synchronous>, transform_indices = @transform_3, window_bounds = array<i64: 1, 64>}, {pipeline_mode = #tpu.pipeline_mode<synchronous>, transform_indices = @transform_4, window_bounds = array<i64: 64, 128>}, {pipeline_mode = #tpu.pipeline_mode<synchronous>, transform_indices = @transform_5, window_bounds = array<i64: 1, 128>}, {pipeline_mode = #tpu.pipeline_mode<synchronous>, transform_indices = @transform_6, window_bounds = array<i64: 128, 1024>}, {pipeline_mode = #tpu.pipeline_mode<synchronous>, transform_indices = @transform_7, window_bounds = array<i64: 1, 1024>}, {transform_indices = @transform_8, window_bounds = array<i64: 1, 1, 1024>}]} {
    %c0_i32 = arith.constant 0 : i32
    %0 = arith.cmpi eq, %arg1, %c0_i32 : i32
    %1 = arith.extui %0 : i1 to i32
    %c0_i32_0 = arith.constant 0 : i32
    %2 = arith.cmpi ne, %1, %c0_i32_0 : i32
    scf.if %2 {
      %cst_30 = arith.constant 0xFF800000 : f32
      %37 = vector.broadcast %cst_30 : f32 to vector<1x1024xf32>
      %c0_31 = arith.constant 0 : index
      %c0_32 = arith.constant 0 : index
      %c0_33 = arith.constant 0 : index
      %38 = vector.load %arg10[%c0_31, %c0_32, %c0_33] : memref<1x1x1024xf32, #tpu.memory_space<vmem>>, vector<1x1x1024xf32>
      %39 = vector.shape_cast %38 : vector<1x1x1024xf32> to vector<1x1024xf32>
      %40 = vector.shape_cast %37 : vector<1x1024xf32> to vector<1x1x1024xf32>
      tpu.vector_store %arg10[%c0_31, %c0_32, %c0_33], %40 {strides = array<i32>} : memref<1x1x1024xf32, #tpu.memory_space<vmem>>, vector<1x1x1024xf32>,
    } else {
    }
    %c0 = arith.constant 0 : index
    %c0_1 = arith.constant 0 : index
    %c0_2 = arith.constant 0 : index
    %3 = vector.load %arg3[%c0, %c0_1, %c0_2] : memref<1x3x3xf32, #tpu.memory_space<vmem>>, vector<1x3x3xf32>
    %4 = vector.shape_cast %3 : vector<1x3x3xf32> to vector<3x3xf32>
    %c0_3 = arith.constant 0 : index
    %c0_4 = arith.constant 0 : index
    %5 = vector.load %arg4[%c0_3, %c0_4] : memref<3x64xf32, #tpu.memory_space<vmem>>, vector<3x64xf32>
    %cst = arith.constant dense<0.000000e+00> : vector<3x64xf32>
    %6 = tpu.matmul %4, %5, %cst {dimension_numbers = #tpu.dot_dimension_numbers<[1], [0], [0], [1], [0, 0, 1, 1], [], []>} : vector<3x3xf32>, vector<3x64xf32>, vector<3x64xf32> -> vector<3x64xf32>
    %c0_5 = arith.constant 0 : index
    %c0_6 = arith.constant 0 : index
    %c0_7 = arith.constant 0 : index
    %7 = vector.load %arg2[%c0_5, %c0_6, %c0_7] : memref<1x128x3xf32, #tpu.memory_space<vmem>>, vector<1x128x3xf32>
    %8 = vector.shape_cast %7 : vector<1x128x3xf32> to vector<128x3xf32>
    %cst_8 = arith.constant dense<0.000000e+00> : vector<128x64xf32>
    %9 = tpu.matmul %8, %6, %cst_8 {dimension_numbers = #tpu.dot_dimension_numbers<[1], [0], [0], [1], [0, 0, 1, 1], [], []>} : vector<128x3xf32>, vector<3x64xf32>, vector<128x64xf32> -> vector<128x64xf32>
    %c0_9 = arith.constant 0 : index
    %c0_10 = arith.constant 0 : index
    %10 = vector.load %arg5[%c0_9, %c0_10] : memref<1x64xf32, #tpu.memory_space<vmem>>, vector<1x64xf32>
    %11 = vector.broadcast %10 : vector<1x64xf32> to vector<128x64xf32>
    %12 = arith.addf %9, %11 : vector<128x64xf32>
    %cst_11 = arith.constant 0.000000e+00 : f32
    %13 = vector.broadcast %cst_11 : f32 to vector<128x64xf32>
    %14 = arith.maximumf %12, %13 : vector<128x64xf32>
    %15 = arith.truncf %14 : vector<128x64xf32> to vector<128x64xbf16>
    %c0_12 = arith.constant 0 : index
    %c0_13 = arith.constant 0 : index
    %16 = vector.load %arg6[%c0_12, %c0_13] : memref<64x128xbf16, #tpu.memory_space<vmem>>, vector<64x128xbf16>
    %cst_14 = arith.constant dense<0.000000e+00> : vector<128x128xf32>
    %17 = tpu.matmul %15, %16, %cst_14 {dimension_numbers = #tpu.dot_dimension_numbers<[1], [0], [0], [1], [0, 0, 1, 1], [], []>} : vector<128x64xbf16>, vector<64x128xbf16>, vector<128x128xf32> -> vector<128x128xf32>
    %c0_15 = arith.constant 0 : index
    %c0_16 = arith.constant 0 : index
    %18 = vector.load %arg7[%c0_15, %c0_16] : memref<1x128xf32, #tpu.memory_space<vmem>>, vector<1x128xf32>
    %19 = vector.broadcast %18 : vector<1x128xf32> to vector<128x128xf32>
    %20 = arith.addf %17, %19 : vector<128x128xf32>
    %cst_17 = arith.constant 0.000000e+00 : f32
    %21 = vector.broadcast %cst_17 : f32 to vector<128x128xf32>
    %22 = arith.maximumf %20, %21 : vector<128x128xf32>
    %23 = arith.truncf %22 : vector<128x128xf32> to vector<128x128xbf16>
    %c0_18 = arith.constant 0 : index
    %c0_19 = arith.constant 0 : index
    %24 = vector.load %arg8[%c0_18, %c0_19] : memref<128x1024xbf16, #tpu.memory_space<vmem>>, vector<128x1024xbf16>
    %cst_20 = arith.constant dense<0.000000e+00> : vector<128x1024xf32>
    %25 = tpu.matmul %23, %24, %cst_20 {dimension_numbers = #tpu.dot_dimension_numbers<[1], [0], [0], [1], [0, 0, 1, 1], [], []>} : vector<128x128xbf16>, vector<128x1024xbf16>, vector<128x1024xf32> -> vector<128x1024xf32>
    %c0_21 = arith.constant 0 : index
    %c0_22 = arith.constant 0 : index
    %26 = vector.load %arg9[%c0_21, %c0_22] : memref<1x1024xf32, #tpu.memory_space<vmem>>, vector<1x1024xf32>
    %27 = vector.broadcast %26 : vector<1x1024xf32> to vector<128x1024xf32>
    %28 = arith.addf %25, %27 : vector<128x1024xf32>
    %c0_23 = arith.constant 0 : index
    %c0_24 = arith.constant 0 : index
    %c0_25 = arith.constant 0 : index
    %29 = vector.load %arg10[%c0_23, %c0_24, %c0_25] : memref<1x1x1024xf32, #tpu.memory_space<vmem>>, vector<1x1x1024xf32>
    %30 = vector.shape_cast %29 : vector<1x1x1024xf32> to vector<1x1024xf32>
    %cst_26 = arith.constant dense<0xFF800000> : vector<1024xf32>
    %31 = vector.multi_reduction <maximumf>, %28, %cst_26 [0] : vector<128x1024xf32> to vector<1024xf32>
    %32 = vector.shape_cast %31 : vector<1024xf32> to vector<1x1024xf32>
    %33 = arith.maximumf %30, %32 : vector<1x1024xf32>
    %c0_27 = arith.constant 0 : index
    %c0_28 = arith.constant 0 : index
    %c0_29 = arith.constant 0 : index
    %34 = vector.load %arg10[%c0_27, %c0_28, %c0_29] : memref<1x1x1024xf32, #tpu.memory_space<vmem>>, vector<1x1x1024xf32>
    %35 = vector.shape_cast %34 : vector<1x1x1024xf32> to vector<1x1024xf32>
    %36 = vector.shape_cast %33 : vector<1x1024xf32> to vector<1x1x1024xf32>
    tpu.vector_store %arg10[%c0_27, %c0_28, %c0_29], %36 {strides = array<i32>} : memref<1x1x1024xf32, #tpu.memory_space<vmem>>, vector<1x1x1024xf32>,
    return
  }
  func.func @transform_0(%arg0: i32, %arg1: i32) -> (i32, i32, i32) {
    %c0_i32 = arith.constant 0 : i32
    %c0_i32_0 = arith.constant 0 : i32
    return %arg0, %arg1, %c0_i32 : i32, i32, i32
  }
  func.func @transform_1(%arg0: i32, %arg1: i32) -> (i32, i32, i32) {
    %c0_i32 = arith.constant 0 : i32
    %c0_i32_0 = arith.constant 0 : i32
    %c0_i32_1 = arith.constant 0 : i32
    return %arg0, %c0_i32, %c0_i32_0 : i32, i32, i32
  }
  func.func @transform_2(%arg0: i32, %arg1: i32) -> (i32, i32) {
    %c0_i32 = arith.constant 0 : i32
    %c0_i32_0 = arith.constant 0 : i32
    %c0_i32_1 = arith.constant 0 : i32
    return %c0_i32, %c0_i32_0 : i32, i32
  }
  func.func @transform_3(%arg0: i32, %arg1: i32) -> (i32, i32) {
    %c0_i32 = arith.constant 0 : i32
    %c0_i32_0 = arith.constant 0 : i32
    %c0_i32_1 = arith.constant 0 : i32
    return %c0_i32, %c0_i32_0 : i32, i32
  }
  func.func @transform_4(%arg0: i32, %arg1: i32) -> (i32, i32) {
    %c0_i32 = arith.constant 0 : i32
    %c0_i32_0 = arith.constant 0 : i32
    %c0_i32_1 = arith.constant 0 : i32
    return %c0_i32, %c0_i32_0 : i32, i32
  }
  func.func @transform_5(%arg0: i32, %arg1: i32) -> (i32, i32) {
    %c0_i32 = arith.constant 0 : i32
    %c0_i32_0 = arith.constant 0 : i32
    %c0_i32_1 = arith.constant 0 : i32
    return %c0_i32, %c0_i32_0 : i32, i32
  }
  func.func @transform_6(%arg0: i32, %arg1: i32) -> (i32, i32) {
    %c0_i32 = arith.constant 0 : i32
    %c0_i32_0 = arith.constant 0 : i32
    %c0_i32_1 = arith.constant 0 : i32
    return %c0_i32, %c0_i32_0 : i32, i32
  }
  func.func @transform_7(%arg0: i32, %arg1: i32) -> (i32, i32) {
    %c0_i32 = arith.constant 0 : i32
    %c0_i32_0 = arith.constant 0 : i32
    %c0_i32_1 = arith.constant 0 : i32
    return %c0_i32, %c0_i32_0 : i32, i32
  }
  func.func @transform_8(%arg0: i32, %arg1: i32) -> (i32, i32, i32) {
    %c0_i32 = arith.constant 0 : i32
    %c0_i32_0 = arith.constant 0 : i32
    %c0_i32_1 = arith.constant 0 : i32
    return %arg0, %c0_i32, %c0_i32_0 : i32, i32, i32
  }
}

</mosaic_0001>

<bundles_post_ra>
// kernel: pointnetfeat_forward.2
= control target key start
LH: loop header
LB: loop body
LE: loop exit
PB: predicated region body
PF: predicated region fallthrough
CT: control target
= control target key end

     0   :  { %12 = vsyncpa [#allocation3], 0  ;;  %s3307_s0 = inlined_call_operand.vmem [shape: f32[2,256,3], index: 0, kind: input, shape index: {}]   ;;  %s3308_s1 = inlined_call_operand.hbm [shape: f32[3,64], index: 1, kind: input, shape index: {}]   ;;  %s3309_s2 = inlined_call_operand.hbm [shape: f32[1,64], index: 2, kind: input, shape index: {}]   ;;  %s3310_s3 = inlined_call_operand.vmem [shape: bf16[64,128], index: 3, kind: input, shape index: {}]   ;;  %s3311_s4 = inlined_call_operand.hbm [shape: f32[1,128], index: 4, kind: input, shape index: {}]   ;;  %s3312_s5 = inlined_call_operand.vmem [shape: bf16[128,1024], index: 5, kind: input, shape index: {}]   ;;  %s3313_s6 = inlined_call_operand.hbm [shape: f32[1,1024], index: 6, kind: input, shape index: {}]   ;;  %s3314_s7 = inlined_call_operand.vmem [shape: f32[2,1,1024], index: 7, kind: output, shape index: {}]  }
   0x1   :  { %13 = vsyncpa [#allocation5], 0 }
   0x2   :  { %14 = vsyncpa [#allocation8], 0  ;;  %s2625_s24 = smov 0   ;;  %s2627_s25 = smov 0  }
   0x3   :  { %s2629_s26 = smov 0   ;;  %s2631_s27 = smov 0  }
   0x4   :  { %s2633_s28 = smov 0  }
   0x5 LB: > { %s2578_s29 = smov [#allocation4]   ;;  %s2140_s8 = sadd.s32 4294967295, %s2576_s28   ;;  %s2576_s28 = sphi %s2633_s28, %s20_s28   ;;  %s2572_s27 = sphi %s2631_s27, %s3325_s27   ;;  %s2568_s26 = sphi %s2629_s26, %s3324_s26   ;;  %s2564_s25 = sphi %s2627_s25, %s3323_s25   ;;  %s2560_s24 = sphi %s2625_s24, %s3322_s24  }
   0x6   : > { %s241_s30 = sshll.u32 %s2578_s29, 4  ;;  %p2142_p0 = scmp.ge.s32.totalorder %s2576_s28, 1  ;;  %s242_s30 = int_to_ptr.vmem [resolvable:$true] %s241_s30 }
   0x7   : > { %p217_p1 = scmp.lt.s32.totalorder %s2576_s28, 5  ;;  %p2653_p2 = scmp.eq.s32.totalorder %s2140_s8, 0 }
   0x8   : > { %s29_s12 = sadd.s32 1, %s2568_s26  ;;  %s2433_s14 = scalar_lea.vmem %s242_s30, 16 }
   0x9   : > { %s3317_s9 = scalar_select %p2653_p2, 1, 0 }
   0xa   : > { %p2657_p3 = pnand %p2142_p0, %p217_p1  ;;  %p2670_p6 = scmp.ge.s32.totalorder %s29_s12, 2 }
   0xb   : > { %p2434_p8 = scmp.ne.s32.totalorder %s242_s30, %s2433_s14  ;;  %s2440_s15 = scalar_lea.vmem %s242_s30, 32 }
   0xc   : > { %p2350_p4 = pneg %p2657_p3  ;;  %p2441_p11 = scmp.lt.s32.totalorder %s242_s30, %s242_s30 }
   0xd   : > { %p2442_p12 = scmp.lt.s32.totalorder %s2440_s15, %s2433_s14 }
   0xe   : > { %p2665_p5 = pnand %p2653_p2, %p2350_p4 }
   0xf   : > { %p2443_p13 = por %p2442_p12, %p2441_p11 }
  0x10   : > { %p2424_p7 = pneg %p2665_p5 }
  0x12   : > { %p2436_p9 = pnand %p2434_p8, %p2424_p7 }
  0x14   : > { %p2437_p10 = pneg %p2436_p9 }
  0x16   : > { %p2444_p0 = pnand %p2443_p13, %p2437_p10 }
  0x18   : > { %2447 = shalt.err (!%p2444_p0)
}
  0x19   : > { %2356 = dma.hbm_to_vmem [thread:$0]  (!%p2665_p5), %s3309_s2, 16, %s242_s30, [#allocation5]  }
  0x1a   : > { %s3327_s12 = smov (%p2670_p6, %s29_s12), 0  ;;  %s32_s18 = sadd.s32 1, %s2572_s27 }
  0x1b   : > { %s3329_s18 = smov (!%p2670_p6, %s32_s18), %s2572_s27  ;;  %s2579_s19 = smov [#allocation2]  }
  0x1c   : > { %s230_s20 = sshll.u32 %s2579_s19, 4  ;;  %p34_p1 = scmp.ge.s32.totalorder %s3329_s18, 2  ;;  %s231_s20 = int_to_ptr.vmem [resolvable:$true] %s230_s20 }
  0x1d   : > { %s2459_s21 = scalar_lea.vmem %s231_s20, 64  ;;  %p2467_p10 = scmp.lt.s32.totalorder %s231_s20, %s231_s20 }
  0x1e   : > { %p2460_p4 = scmp.ne.s32.totalorder %s231_s20, %s2459_s21  ;;  %p2468_p11 = scmp.lt.s32.totalorder %s2459_s21, %s2459_s21 }
  0x20   : > { %p2462_p8 = pnand %p2460_p4, %p2424_p7  ;;  %p2469_p12 = por %p2468_p11, %p2467_p10 }
  0x22   : > { %p2463_p9 = pneg %p2462_p8 }
  0x24   : > { %p2470_p13 = pnand %p2469_p12, %p2463_p9 }
  0x26   : > { %2473 = shalt.err (!%p2470_p13)
}
  0x27   : > { %2353 = dma.hbm_to_vmem [thread:$0]  (!%p2665_p5), %s3308_s1, 64, %s231_s20, [#allocation3]  }
  0x28   : > { %s3331_s18 = smov (%p34_p1, %s3329_s18), 0  ;;  %s2580_s29 = smov [#allocation6]  }
  0x29   : > { %s255_s30 = sshll.u32 %s2580_s29, 4  ;;  %s2581_s8 = smov [#allocation7]   ;;  %s256_s30 = int_to_ptr.vmem [resolvable:$true] %s255_s30 }
  0x2a   : > { %s269_s13 = sshll.u32 %s2581_s8, 4  ;;  %s2485_s14 = scalar_lea.vmem %s256_s30, 16  ;;  %s270_s13 = int_to_ptr.vmem [resolvable:$true] %s269_s13 }
  0x2b   : > { %p2486_p6 = scmp.ne.s32.totalorder %s256_s30, %s2485_s14  ;;  %s2492_s15 = scalar_lea.vmem %s256_s30, 32 }
  0x2c   : > { %p2493_p8 = scmp.lt.s32.totalorder %s256_s30, %s256_s30  ;;  %p2494_p9 = scmp.lt.s32.totalorder %s2492_s15, %s2485_s14 }
  0x2d   : > { %p2488_p0 = pnand %p2486_p6, %p2424_p7 }
  0x2e   : > { %p2495_p10 = por %p2494_p9, %p2493_p8 }
  0x2f   : > { %p2489_p4 = pneg %p2488_p0 }
  0x31   : > { %p2496_p11 = pnand %p2495_p10, %p2489_p4 }
  0x33   : > { %2499 = shalt.err (!%p2496_p11)
}
  0x34   : > { %2359 = dma.hbm_to_vmem [thread:$0]  (!%p2665_p5), %s3311_s4, 16, %s256_s30, [#allocation5]  }
  0x35   : > { %s2511_s19 = scalar_lea.vmem %s270_s13, 128  ;;  %p2519_p6 = scmp.lt.s32.totalorder %s270_s13, %s270_s13 }
  0x36   : > { %p2512_p1 = scmp.ne.s32.totalorder %s270_s13, %s2511_s19  ;;  %p2520_p0 = scmp.lt.s32.totalorder %s2511_s19, %s2511_s19 }
  0x38   : > { %p2514_p12 = pnand %p2512_p1, %p2424_p7  ;;  %p2521_p2 = por %p2520_p0, %p2519_p6 }
  0x3a   : > { %p2515_p13 = pneg %p2514_p12 }
  0x3c   : > { %p2522_p8 = pnand %p2521_p2, %p2515_p13 }
  0x3e   : > { %2525 = shalt.err (!%p2522_p8)
}
  0x3f   : > { %2362 = dma.hbm_to_vmem [thread:$0]  (!%p2665_p5), %s3313_s6, 128, %s270_s13, [#allocation8]  }
  0x40   : > { %295 = sbr.rel (%p2657_p3) target bundleno = 850 (0x352), region = 48  ;;  %p3321_p4 = scmp.ne.s32.totalorder (!%p2657_p3), %s3317_s9, 0 }
  0x45   : > { %2547 = dma.done.wait (%p3321_p4), [#allocation3], 64  }
  0x46   : > { %2549 = vsyncadd (%p3321_p4), [#allocation3], 4294967232 }
  0x47   : > { %2551 = dma.done.wait (%p3321_p4), [#allocation5], 32  }
  0x48   : > { %2553 = vsyncadd (%p3321_p4), [#allocation5], 4294967264 }
  0x49   : > { %2555 = dma.done.wait (%p3321_p4), [#allocation8], 128  }
  0x4a   : > { %2557 = vsyncadd (%p3321_p4), [#allocation8], 4294967168  ;;  %s2153_s10 = sshll.u32 %s2560_s24, 4  ;;  %p343_p2 = scmp.lt.s32.totalorder %s2564_s25, 1 }
  0x4b   : > { %p345_p3 = scmp.lt.s32.totalorder %s2153_s10, 31  ;;  %p2157_p5 = scmp.ne.s32.totalorder %s2560_s24, 0 }
  0x4c   : > { %s3333_s25 = smov (!%p343_p2, %s2564_s25), 1 }
  0x4d   : > { %s3335_s10 = smov (!%p345_p3, %s2153_s10), 31  ;;  %s2154_s11 = sshll.u32 %s3333_s25, 5 }
  0x4e   : > { %s2156_s22 = sshll.u32 %s3333_s25, 3  ;;  %s348_s23 = sadd.s32 %s2154_s11, %s3335_s10 }
  0x4f   : > { %s2738_s8 = scalar_lea.vmem %s3314_s7, %s2156_s22  ;;  %s2155_s13 = sshll.u32 %s348_s23, 3 }
  0x50   : > { %s2743_s15 = scalar_lea.vmem %s3307_s0, %s2155_s13  ;;  %360 = sbr.rel (%p2157_p5) target bundleno = 87 (0x57), region = 68 }
  0x55   : > { %v2582_v0 = vmov -inf  }
  0x56   : > { %361 = vst [vmem:[%s2738_s8] sm:$0xff] %v2582_v0 }
  0x57 PF: > { %v378_v1 = vld [vmem:[#allocation2] sm:$0x7]  ;;  %vm435_vm0 = vcmask 1042432   ;;  %vm386_vm1 = vcmask 23552   ;;  %v363_v3 = vld [vmem:[%s2743_s15 + $0x8] sm:$0xff]  ;;  %v364_v4 = vld [vmem:[%s2743_s15 + $0x10] sm:$0xff] }
  0x58   : > { %v362_v2 = vld [vmem:[%s2743_s15] sm:$0xff]  ;;  %2284 = vmatprep.subr.msk.mxu0 %vm435_vm0, %v378_v1  ;;  %v365_v5 = vld [vmem:[%s2743_s15 + $0x18] sm:$0xff]  ;;  %v367_v8 = vld [vmem:[%s2743_s15 + $0x28] sm:$0xff]  ;;  %vm647_vm2 = vcmask 523264  }
  0x59   : > { %2286 = vmatprep.mubr.msk.f32.mxu0 %vm386_vm1, %v362_v2  ;;  %2285 = vmatpush3.msk.msra.mxu0 %vm435_vm0, %v378_v1  ;;  %v366_v6 = vld [vmem:[%s2743_s15 + $0x20] sm:$0xff]  ;;  %v2418_v7 = vld [vmem:[%s3310_s3 + $0x18] sm:$0xff]   ;;  %v368_v9 = vld [vmem:[%s2743_s15 + $0x30] sm:$0xff] }
  0x5a   : > { %2287 = vmatmul.mubr.msk.f32.vlgmr.msra.gmra.mxu0 %vm386_vm1, %v363_v3  ;;  %2310 = vmatprep.subr.bf16.mxu1 %v2418_v7  ;;  %v369_v10 = vld [vmem:[%s2743_s15 + $0x38] sm:$0xff]  ;;  %v370_v11 = vld [vmem:[%s2743_s15 + $0x40] sm:$0xff]  ;;  %v371_v12 = vld [vmem:[%s2743_s15 + $0x48] sm:$0xff] }
  0x5b   : > { %2289 = vmatprep.mubr.msk.f32.mxu0 %vm386_vm1, %v364_v4  ;;  %2311 = vmatpush3.bf16.msra.mxu1 %v2418_v7  ;;  %v372_v13 = vld [vmem:[%s2743_s15 + $0x50] sm:$0xff]  ;;  %v373_v14 = vld [vmem:[%s2743_s15 + $0x58] sm:$0xff]  ;;  %v374_v15 = vld [vmem:[%s2743_s15 + $0x60] sm:$0xff] }
  0x5c   : > { %v375_v16 = vld [vmem:[%s2743_s15 + $0x68] sm:$0xff]  ;;  %v376_v17 = vld [vmem:[%s2743_s15 + $0x70] sm:$0xff]  ;;  %v377_v18 = vld [vmem:[%s2743_s15 + $0x78] sm:$0xff] }
  0x5d   : > { %v2419_v19 = vld [vmem:[%s3310_s3 + $0x10] sm:$0xff]   ;;  %v2420_v20 = vld [vmem:[%s3310_s3 + $0x8] sm:$0xff]   ;;  %v2421_v21 = vld [vmem:[%s3310_s3] sm:$0xff]  }
  0x5e   : > { %2290 = vmatmul.mubr.msk.f32.gmra.mxu0 %vm386_vm1, %v365_v5  ;;  %2312 = vmatprep.subr.bf16.mxu1 %v2419_v19  ;;  %v849_v22 = vld [vmem:[%s3312_s5 + $0x1c0] sm:$0xff]  ;;  %v2800_v24 = vld [vmem:[%s3312_s5 + $0x1c8] sm:$0xff] }
  0x5f   : > { %2292 = vmatprep.mubr.msk.f32.mxu0 %vm386_vm1, %v366_v6  ;;  %2313 = vmatpush3.bf16.msra.mxu1 %v2419_v19  ;;  %v853_v23 = vld [vmem:[%s3312_s5 + $0x1e0] sm:$0xff]  ;;  %v854_v27 = vld [vmem:[%s3312_s5 + $0x1e8] sm:$0xff] }
  0x60   : > { %2314 = vmatprep.subr.bf16.mxu1 %v2420_v20  ;;  %v2245_v25 = vcombine.low %v849_v22, %v853_v23  ;;  %v2246_v26 = vcombine.high %v849_v22, %v853_v23  ;;  %v841_v28 = vld [vmem:[%s3312_s5 + $0x180] sm:$0xff]  ;;  %v2247_v30 = vcombine.low %v2800_v24, %v854_v27  ;;  %v2248_v31 = vcombine.high %v2800_v24, %v854_v27  ;;  %v842_v59 = vld [vmem:[%s3312_s5 + $0x188] sm:$0xff] }
  0x61   : > { %v845_v29 = vld [vmem:[%s3312_s5 + $0x1a0] sm:$0xff]  ;;  %v846_v60 = vld [vmem:[%s3312_s5 + $0x1a8] sm:$0xff] }
  0x62   : > { %2293 = vmatmul.mubr.msk.f32.gmra.mxu0 %vm386_vm1, %v367_v8  ;;  %v2238_v32 = vcombine.high %v841_v28, %v845_v29  ;;  %v833_v33 = vld [vmem:[%s3312_s5 + $0x140] sm:$0xff]  ;;  %1219 = vmatprep.subr.bf16.mxu0 %v2246_v26  ;;  %v2237_v35 = vcombine.low %v841_v28, %v845_v29  ;;  %v2240_v4 = vcombine.high %v842_v59, %v846_v60  ;;  %v834_v6 = vld [vmem:[%s3312_s5 + $0x148] sm:$0xff] }
  0x63   : > { %2295 = vmatprep.mubr.msk.f32.mxu0 %vm386_vm1, %v368_v9  ;;  %2315 = vmatpush3.bf16.msra.mxu1 %v2420_v20  ;;  %v837_v34 = vld [vmem:[%s3312_s5 + $0x160] sm:$0xff]  ;;  %v838_v7 = vld [vmem:[%s3312_s5 + $0x168] sm:$0xff] }
  0x64   : > { %2316 = vmatprep.subr.bf16.mxu1 %v2421_v21  ;;  %1220 = vmatpush1.bf16.msra.mxu0 %v2245_v25  ;;  %v2230_v36 = vcombine.high %v833_v33, %v837_v34  ;;  %v825_v37 = vld [vmem:[%s3312_s5 + $0x100] sm:$0xff]  ;;  %v2229_v39 = vcombine.low %v833_v33, %v837_v34  ;;  %v2231_v22 = vcombine.low %v834_v6, %v838_v7  ;;  %v818_v28 = vld [vmem:[%s3312_s5 + $0xc8] sm:$0xff] }
  0x65   : > { %1221 = vmatprep.subr.bf16.mxu0 %v2238_v32  ;;  %v829_v38 = vld [vmem:[%s3312_s5 + $0x120] sm:$0xff]  ;;  %v822_v29 = vld [vmem:[%s3312_s5 + $0xe8] sm:$0xff] }
  0x66   : > { %2296 = vmatmul.mubr.msk.f32.gmra.mxu0 %vm386_vm1, %v369_v10  ;;  %v2222_v40 = vcombine.high %v825_v37, %v829_v38  ;;  %v817_v41 = vld [vmem:[%s3312_s5 + $0xc0] sm:$0xff]  ;;  %v2221_v43 = vcombine.low %v825_v37, %v829_v38  ;;  %v2216_v37 = vcombine.high %v818_v28, %v822_v29 }
  0x67   : > { %2298 = vmatprep.mubr.msk.f32.mxu0 %vm386_vm1, %v370_v11  ;;  %2317 = vmatpush3.bf16.msra.mxu1 %v2421_v21  ;;  %v821_v42 = vld [vmem:[%s3312_s5 + $0xe0] sm:$0xff]  ;;  %v2239_v11 = vcombine.low %v842_v59, %v846_v60 }
  0x68   : > { %1332 = vmatprep.subr.bf16.mxu1 %v2248_v31  ;;  %1222 = vmatpush1.bf16.msra.mxu0 %v2237_v35  ;;  %v2214_v44 = vcombine.high %v817_v41, %v821_v42  ;;  %v2213_v45 = vcombine.low %v817_v41, %v821_v42  ;;  %v2831_v46 = vld [vmem:[#allocation4] ss:$0 sm:$0xff]  ;;  %v2215_v42 = vcombine.low %v818_v28, %v822_v29 }
  0x69   : > { %1223 = vmatprep.subr.bf16.mxu0 %v2230_v36 }
  0x6a   : > { %2299 = vmatmul.mubr.msk.f32.gmra.mxu0 %vm386_vm1, %v371_v12 }
  0x6b   : > { %2301 = vmatprep.mubr.msk.f32.mxu0 %vm386_vm1, %v372_v13 }
  0x6c   : > { %1224 = vmatpush1.bf16.msra.mxu0 %v2229_v39 }
  0x6d   : > { %1225 = vmatprep.subr.bf16.mxu0 %v2222_v40 }
  0x6e   : > { %2302 = vmatmul.mubr.msk.f32.gmra.mxu0 %vm386_vm1, %v373_v14 }
  0x6f   : > { %2304 = vmatprep.mubr.msk.f32.mxu0 %vm386_vm1, %v374_v15  ;;  %v2232_v15 = vcombine.high %v834_v6, %v838_v7  ;;  %v793_v7 = vld [vmem:[%s3312_s5] sm:$0xff] }
  0x70   : > { %1226 = vmatpush1.bf16.msra.mxu0 %v2221_v43 }
  0x71   : > { %1227 = vmatprep.subr.bf16.mxu0 %v2214_v44 }
  0x72   : > { %2305 = vmatmul.mubr.msk.f32.gmra.mxu0 %vm386_vm1, %v375_v16 }
  0x73   : > { %2307 = vmatprep.mubr.msk.f32.mxu0 %vm386_vm1, %v376_v17  ;;  %v826_v17 = vld [vmem:[%s3312_s5 + $0x108] sm:$0xff] }
  0x74   : > { %1228 = vmatpush1.bf16.msra.mxu0 %v2213_v45 }
  0x76   : > { %2308 = vmatmul.mubr.msk.f32.gmra.mxu0 %vm386_vm1, %v377_v18  ;;  %v830_v18 = vld [vmem:[%s3312_s5 + $0x128] sm:$0xff] }
  0x77   : > { %v2224_v26 = vcombine.high %v826_v17, %v830_v18  ;;  %v2223_v33 = vcombine.low %v826_v17, %v830_v18  ;;  %v855_v17 = vld [vmem:[%s3312_s5 + $0x1f0] sm:$0xff]  ;;  %v852_v18 = vld [vmem:[%s3312_s5 + $0x1d8] sm:$0xff] }
 0x11a   : > { %v2288_v47 = vpop.f32.mrf.mxu0 }
 0x11b   : > { %v511_v48 = vadd.f32 %v2288_v47, %v2831_v46 }
 0x11c   : > { %v505_v49 = vpop.f32.mrf.mxu0 }
 0x11d   : > { %v506_v50 = vadd.f32 %v2831_v46, %v505_v49  ;;  %v585_v52 = vmax.f32 %v511_v48, 0.0 }
 0x11e   : > { %v2291_v51 = vpop.f32.mrf.mxu0 }
 0x11f   : > { %v584_v53 = vmax.f32 %v506_v50, 0.0  ;;  %v521_v54 = vadd.f32 %v2291_v51, %v2831_v46 }
 0x120   : > { %v515_v55 = vpop.f32.mrf.mxu0 }
 0x121   : > { %v516_v56 = vadd.f32 %v2831_v46, %v515_v55  ;;  %v600_v57 = vpack.c.bf16 %v585_v52, %v584_v53  ;;  %v587_v61 = vmax.f32 %v521_v54, 0.0 }
 0x122   : > { %v2294_v58 = vpop.f32.mrf.mxu0 }
 0x123   : > { %v586_v62 = vmax.f32 %v516_v56, 0.0  ;;  %v531_v63 = vadd.f32 %v2294_v58, %v2831_v46  ;;  %2318 = vmatprep.mubr.msk.bf16.mxu1 %vm647_vm2, %v600_v57  ;;  %v809_v56 = vld [vmem:[%s3312_s5 + $0x80] sm:$0xff]  ;;  %v810_v58 = vld [vmem:[%s3312_s5 + $0x88] sm:$0xff] }
 0x124   : > { %v525_v0 = vpop.f32.mrf.mxu0  ;;  %v813_v57 = vld [vmem:[%s3312_s5 + $0xa0] sm:$0xff] }
 0x125   : > { %v601_v1 = vpack.c.bf16 %v587_v61, %v586_v62  ;;  %v589_v2 = vmax.f32 %v531_v63, 0.0  ;;  %v526_v3 = vadd.f32 %v2831_v46, %v525_v0  ;;  %v2206_v59 = vcombine.high %v809_v56, %v813_v57  ;;  %v801_v63 = vld [vmem:[%s3312_s5 + $0x40] sm:$0xff] }
 0x126   : > { %v2297_v5 = vpop.f32.mrf.mxu0  ;;  %v2205_v60 = vcombine.low %v809_v56, %v813_v57  ;;  %v805_v0 = vld [vmem:[%s3312_s5 + $0x60] sm:$0xff]  ;;  %v827_v56 = vld [vmem:[%s3312_s5 + $0x110] sm:$0xff] }
 0x127   : > { %v588_v8 = vmax.f32 %v526_v3, 0.0  ;;  %v541_v9 = vadd.f32 %v2297_v5, %v2831_v46  ;;  %2319 = vmatmul.mubr.msk.bf16.vlgmr.msra.gmra.mxu1 %vm647_vm2, %v601_v1  ;;  %1229 = vmatprep.subr.bf16.mxu0 %v2206_v59  ;;  %v802_v1 = vld [vmem:[%s3312_s5 + $0x48] sm:$0xff]  ;;  %v828_v59 = vld [vmem:[%s3312_s5 + $0x118] sm:$0xff] }
 0x128   : > { %v535_v10 = vpop.f32.mrf.mxu0  ;;  %1333 = vmatpush1.bf16.msra.mxu1 %v2247_v30  ;;  %1230 = vmatpush1.bf16.msra.mxu0 %v2205_v60  ;;  %v806_v3 = vld [vmem:[%s3312_s5 + $0x68] sm:$0xff] }
 0x129   : > { %v602_v12 = vpack.c.bf16 %v589_v2, %v588_v8  ;;  %v591_v13 = vmax.f32 %v541_v9, 0.0  ;;  %v536_v14 = vadd.f32 %v2831_v46, %v535_v10  ;;  %1334 = vmatprep.subr.bf16.mxu1 %v2240_v4  ;;  %v2198_v2 = vcombine.high %v801_v63, %v805_v0  ;;  %v797_v8 = vld [vmem:[%s3312_s5 + $0x20] sm:$0xff]  ;;  %v794_v9 = vld [vmem:[%s3312_s5 + $0x8] sm:$0xff] }
 0x12a   : > { %v2300_v16 = vpop.f32.mrf.mxu0  ;;  %v2197_v4 = vcombine.low %v801_v63, %v805_v0  ;;  %v2199_v5 = vcombine.low %v802_v1, %v806_v3  ;;  %v2200_v6 = vcombine.high %v802_v1, %v806_v3  ;;  %v2190_v10 = vcombine.high %v793_v7, %v797_v8 }
 0x12b   : > { %v590_v19 = vmax.f32 %v536_v14, 0.0  ;;  %2322 = vmatprep.mubr.msk.bf16.mxu1 %vm647_vm2, %v602_v12  ;;  %v551_v20 = vadd.f32 %v2300_v16, %v2831_v46  ;;  %1231 = vmatprep.subr.bf16.mxu0 %v2198_v2  ;;  %v2189_v12 = vcombine.low %v793_v7, %v797_v8  ;;  %v851_v16 = vld [vmem:[%s3312_s5 + $0x1d0] sm:$0xff]  ;;  %v824_v7 = vld [vmem:[%s3312_s5 + $0xf8] sm:$0xff] }
 0x12c   : > { %v545_v21 = vpop.f32.mrf.mxu0  ;;  %1335 = vmatpush1.bf16.msra.mxu1 %v2239_v11  ;;  %1232 = vmatpush1.bf16.msra.mxu0 %v2197_v4  ;;  %v798_v11 = vld [vmem:[%s3312_s5 + $0x28] sm:$0xff]  ;;  %v819_v4 = vld [vmem:[%s3312_s5 + $0xd0] sm:$0xff] }
 0x12d   : > { %v603_v23 = vpack.c.bf16 %v591_v13, %v590_v19  ;;  %v593_v24 = vmax.f32 %v551_v20, 0.0  ;;  %v546_v25 = vadd.f32 %v2831_v46, %v545_v21  ;;  %1336 = vmatprep.subr.bf16.mxu1 %v2232_v15  ;;  %v2191_v13 = vcombine.low %v794_v9, %v798_v11  ;;  %1233 = vmatprep.subr.bf16.mxu0 %v2190_v10  ;;  %v856_v21 = vld [vmem:[%s3312_s5 + $0x1f8] sm:$0xff] }
 0x12e   : > { %v2303_v27 = vpop.f32.mrf.mxu0  ;;  %v2192_v14 = vcombine.high %v794_v9, %v798_v11  ;;  %v2583_v15 = vmov 0   ;;  %v2249_v19 = vcombine.low %v851_v16, %v855_v17  ;;  %v2250_v20 = vcombine.high %v851_v16, %v855_v17  ;;  %v811_v16 = vld [vmem:[%s3312_s5 + $0x90] sm:$0xff] }
 0x12f   : > { %2323 = vmatmul.mubr.msk.bf16.gmra.mxu1 %vm647_vm2, %v603_v23  ;;  %v592_v30 = vmax.f32 %v546_v25, 0.0  ;;  %v561_v31 = vadd.f32 %v2303_v27, %v2831_v46  ;;  %1251 = vmatprep.mubr.bf16.mxu0 %v2583_v15  ;;  %v2252_v23 = vcombine.high %v852_v18, %v856_v21  ;;  %v815_v17 = vld [vmem:[%s3312_s5 + $0xb0] sm:$0xff] }
 0x130   : > { %v555_v32 = vpop.f32.mrf.mxu0  ;;  %1337 = vmatpush1.bf16.msra.mxu1 %v2231_v22  ;;  %1234 = vmatpush1.bf16.msra.mxu0 %v2189_v12  ;;  %v2251_v22 = vcombine.low %v852_v18, %v856_v21  ;;  %v812_v18 = vld [vmem:[%s3312_s5 + $0x98] sm:$0xff] }
 0x131   : > { %v604_v34 = vpack.c.bf16 %v593_v24, %v592_v30  ;;  %v595_v35 = vmax.f32 %v561_v31, 0.0  ;;  %v556_v36 = vadd.f32 %v2831_v46, %v555_v32  ;;  %1338 = vmatprep.subr.bf16.mxu1 %v2224_v26  ;;  %1445 = vmatprep.subr.bf16.mxu0 %v2250_v20  ;;  %v2931_v26 = vld [vmem:[#allocation6] ss:$0 sm:$0xff]  ;;  %v843_v32 = vld [vmem:[%s3312_s5 + $0x190] sm:$0xff] }
 0x132   : > { %v2306_v38 = vpop.f32.mrf.mxu0 }
 0x133   : > { %v594_v39 = vmax.f32 %v556_v36, 0.0  ;;  %2326 = vmatprep.mubr.msk.bf16.mxu1 %vm647_vm2, %v604_v34  ;;  %v571_v40 = vadd.f32 %v2306_v38, %v2831_v46  ;;  %v844_v36 = vld [vmem:[%s3312_s5 + $0x198] sm:$0xff] }
 0x134   : > { %v565_v41 = vpop.f32.mrf.mxu0  ;;  %1339 = vmatpush1.bf16.msra.mxu1 %v2223_v33 }
 0x135   : > { %v605_v43 = vpack.c.bf16 %v595_v35, %v594_v39  ;;  %v597_v44 = vmax.f32 %v571_v40, 0.0  ;;  %v566_v45 = vadd.f32 %v2831_v46, %v565_v41  ;;  %1340 = vmatprep.subr.bf16.mxu1 %v2216_v37  ;;  %v847_v35 = vld [vmem:[%s3312_s5 + $0x1b0] sm:$0xff]  ;;  %v848_v37 = vld [vmem:[%s3312_s5 + $0x1b8] sm:$0xff] }
 0x136   : > { %v2309_v47 = vpop.f32.mrf.mxu0  ;;  %v835_v41 = vld [vmem:[%s3312_s5 + $0x150] sm:$0xff] }
 0x137   : > { %2327 = vmatmul.mubr.msk.bf16.gmra.mxu1 %vm647_vm2, %v605_v43  ;;  %v596_v48 = vmax.f32 %v566_v45, 0.0  ;;  %v581_v49 = vadd.f32 %v2309_v47, %v2831_v46  ;;  %v2242_v43 = vcombine.high %v843_v32, %v847_v35  ;;  %v839_v45 = vld [vmem:[%s3312_s5 + $0x170] sm:$0xff]  ;;  %v836_v47 = vld [vmem:[%s3312_s5 + $0x158] sm:$0xff] }
 0x138   : > { %v575_v50 = vpop.f32.mrf.mxu0  ;;  %1341 = vmatpush1.bf16.msra.mxu1 %v2215_v42  ;;  %v2233_v60 = vcombine.low %v835_v41, %v839_v45 }
 0x139   : > { %v606_v51 = vpack.c.bf16 %v597_v44, %v596_v48  ;;  %v599_v52 = vmax.f32 %v581_v49, 0.0  ;;  %v576_v53 = vadd.f32 %v2831_v46, %v575_v50  ;;  %v814_v46 = vld [vmem:[%s3312_s5 + $0xa8] sm:$0xff]  ;;  %v2244_v44 = vcombine.high %v844_v36, %v848_v37  ;;  %v840_v48 = vld [vmem:[%s3312_s5 + $0x178] sm:$0xff] }
 0x13a   : > { %v2207_v61 = vcombine.low %v810_v58, %v814_v46  ;;  %v2208_v62 = vcombine.high %v810_v58, %v814_v46  ;;  %v2241_v50 = vcombine.low %v843_v32, %v847_v35  ;;  %v831_v58 = vld [vmem:[%s3312_s5 + $0x130] sm:$0xff]  ;;  %v832_v46 = vld [vmem:[%s3312_s5 + $0x138] sm:$0xff]  ;;  %v2209_v35 = vcombine.low %v811_v16, %v815_v17 }
 0x13b   : > { %v598_v54 = vmax.f32 %v576_v53, 0.0  ;;  %2330 = vmatprep.mubr.msk.bf16.mxu1 %vm647_vm2, %v606_v51  ;;  %v2243_v51 = vcombine.low %v844_v36, %v848_v37  ;;  %v2234_v53 = vcombine.high %v835_v41, %v839_v45  ;;  %v2226_v2 = vcombine.high %v827_v56, %v831_v58  ;;  %v808_v32 = vld [vmem:[%s3312_s5 + $0x78] sm:$0xff]  ;;  %v795_v41 = vld [vmem:[%s3312_s5 + $0x10] sm:$0xff] }
 0x13c   : > { %1342 = vmatprep.subr.bf16.mxu1 %v2208_v62  ;;  %v2228_v3 = vcombine.high %v828_v59, %v832_v46  ;;  %v2225_v10 = vcombine.low %v827_v56, %v831_v58  ;;  %v2227_v11 = vcombine.low %v828_v59, %v832_v46 }
 0x13d   : > { %v607_v55 = vpack.c.bf16 %v599_v52, %v598_v54  ;;  %1343 = vmatpush1.bf16.msra.mxu1 %v2207_v61  ;;  %v2236_v54 = vcombine.high %v836_v47, %v840_v48  ;;  %v2235_v61 = vcombine.low %v836_v47, %v840_v48 }
 0x13e   : > { %1344 = vmatprep.subr.bf16.mxu1 %v2200_v6  ;;  %v820_v6 = vld [vmem:[%s3312_s5 + $0xd8] sm:$0xff] }
 0x13f   : > { %2331 = vmatmul.mubr.msk.bf16.gmra.mxu1 %vm647_vm2, %v607_v55  ;;  %v2219_v21 = vcombine.low %v820_v6, %v824_v7 }
 0x140   : > { %1364 = vmatprep.mubr.bf16.mxu1 %v2583_v15 }
 0x141   : > { %1345 = vmatpush1.bf16.msra.mxu1 %v2199_v5  ;;  %v823_v5 = vld [vmem:[%s3312_s5 + $0xf0] sm:$0xff] }
 0x142   : > { %1346 = vmatprep.subr.bf16.mxu1 %v2192_v14  ;;  %v2220_v14 = vcombine.high %v820_v6, %v824_v7  ;;  %v2217_v20 = vcombine.low %v819_v4, %v823_v5 }
 0x145   : > { %1347 = vmatpush1.bf16.msra.mxu1 %v2191_v13  ;;  %v2218_v13 = vcombine.high %v819_v4, %v823_v5 }
 0x146   : > { %1558 = vmatprep.subr.bf16.mxu1 %v2252_v23 }
 0x1e7   : > { %v2320_v24 = vpop.f32.mrf.mxu1 }
 0x1e8   : > { %v715_v49 = vadd.f32 %v2320_v24, %v2931_v26 }
 0x1e9   : > { %v706_v25 = vpop.f32.mrf.mxu1 }
 0x1ea   : > { %v707_v28 = vadd.f32 %v2931_v26, %v706_v25  ;;  %v771_v57 = vmax.f32 %v715_v49, 0.0 }
 0x1eb   : > { %v2321_v27 = vpop.f32.mrf.mxu1 }
 0x1ec   : > { %v769_v33 = vmax.f32 %v707_v28, 0.0  ;;  %v718_v39 = vadd.f32 %v2321_v27, %v2931_v26  ;;  %v2210_v27 = vcombine.high %v811_v16, %v815_v17 }
 0x1ed   : > { %v709_v29 = vpop.f32.mrf.mxu1 }
 0x1ee   : > { %v710_v30 = vadd.f32 %v2931_v26, %v709_v29  ;;  %v772_v52 = vmax.f32 %v718_v39, 0.0  ;;  %v803_v29 = vld [vmem:[%s3312_s5 + $0x50] sm:$0xff] }
 0x1ef   : > { %v2935_v31 = vpop.f32.mrf.mxu1 }
 0x1f0   : > { %v770_v34 = vmax.f32 %v710_v30, 0.0  ;;  %v2983_v62 = vpack.c.bf16 %v772_v52, %v771_v57  ;;  %v807_v30 = vld [vmem:[%s3312_s5 + $0x70] sm:$0xff] }
 0x1f1   : > { %v722_v38 = vpop.f32.mrf.mxu1  ;;  %v2201_v45 = vcombine.low %v803_v29, %v807_v30 }
 0x1f2   : > { %v2950_v40 = vpack.c.bf16 %v770_v34, %v769_v33  ;;  %v723_v63 = vadd.f32 %v2931_v26, %v722_v38  ;;  %v2202_v38 = vcombine.high %v803_v29, %v807_v30 }
 0x1f3   : > { %v2955_v42 = vpop.f32.mrf.mxu1 }
 0x1f4   : > { %1252 = vmatmul.mubr.bf16.vlgmr.msra.gmra.mxu0 %v2950_v40  ;;  %1365 = vmatmul.mubr.bf16.vlgmr.msra.gmra.mxu1 %v2950_v40  ;;  %v773_v8 = vmax.f32 %v723_v63, 0.0  ;;  %v734_v23 = vadd.f32 %v2955_v42, %v2931_v26  ;;  %v799_v42 = vld [vmem:[%s3312_s5 + $0x30] sm:$0xff] }
 0x1f5   : > { %1446 = vmatpush1.bf16.msra.mxu0 %v2249_v19  ;;  %1559 = vmatpush1.bf16.msra.mxu1 %v2251_v22  ;;  %v725_v55 = vpop.f32.mrf.mxu1  ;;  %v816_v19 = vld [vmem:[%s3312_s5 + $0xb8] sm:$0xff]  ;;  %v731_v22 = vadd.f32 %v2935_v31, %v2931_v26  ;;  %v2194_v52 = vcombine.high %v795_v41, %v799_v42  ;;  %v2193_v56 = vcombine.low %v795_v41, %v799_v42 }
 0x1f6   : > { %1261 = vmatprep.mubr.bf16.mxu0 %v2583_v15  ;;  %1374 = vmatprep.mubr.bf16.mxu1 %v2583_v15  ;;  %v726_v0 = vadd.f32 %v2931_v26, %v725_v55  ;;  %v2212_v28 = vcombine.high %v812_v18, %v816_v19  ;;  %v804_v31 = vld [vmem:[%s3312_s5 + $0x58] sm:$0xff]  ;;  %v776_v34 = vmax.f32 %v734_v23, 0.0  ;;  %v2211_v36 = vcombine.low %v812_v18, %v816_v19 }
 0x1f7   : > { %1447 = vmatprep.subr.bf16.mxu0 %v2242_v43  ;;  %1560 = vmatprep.subr.bf16.mxu1 %v2244_v44  ;;  %v2987_v1 = vpop.f32.mrf.mxu1  ;;  %v775_v33 = vmax.f32 %v731_v22, 0.0  ;;  %v2204_v39 = vcombine.high %v804_v31, %v808_v32  ;;  %v796_v43 = vld [vmem:[%s3312_s5 + $0x18] sm:$0xff]  ;;  %v2203_v47 = vcombine.low %v804_v31, %v808_v32 }
 0x1f8   : > { %v774_v9 = vmax.f32 %v726_v0, 0.0  ;;  %v800_v44 = vld [vmem:[%s3312_s5 + $0x38] sm:$0xff]  ;;  %v747_v59 = vadd.f32 %v2987_v1, %v2931_v26 }
 0x1f9   : > { %1448 = vmatpush1.bf16.msra.mxu0 %v2241_v50  ;;  %1561 = vmatpush1.bf16.msra.mxu1 %v2243_v51  ;;  %v738_v12 = vpop.f32.mrf.mxu1  ;;  %v3051_v48 = vpack.c.bf16 %v776_v34, %v775_v33  ;;  %v2195_v57 = vcombine.low %v796_v43, %v800_v44 }
 0x1fa   : > { %1449 = vmatprep.subr.bf16.mxu0 %v2234_v53  ;;  %1562 = vmatprep.subr.bf16.mxu1 %v2236_v54  ;;  %v3021_v24 = vpack.c.bf16 %v774_v9, %v773_v8  ;;  %v739_v49 = vadd.f32 %v2931_v26, %v738_v12  ;;  %v2196_v53 = vcombine.high %v796_v43, %v800_v44  ;;  %v779_v63 = vmax.f32 %v747_v59, 0.0 }
 0x1fb   : > { %v2329_v25 = vpop.f32.mrf.mxu1 }
 0x1fc   : > { %1262 = vmatmul.mubr.bf16.gmra.mxu0 %v2983_v62  ;;  %1375 = vmatmul.mubr.bf16.gmra.mxu1 %v2983_v62  ;;  %v777_v54 = vmax.f32 %v739_v49, 0.0  ;;  %v750_v46 = vadd.f32 %v2329_v25, %v2931_v26 }
 0x1fd   : > { %1271 = vmatprep.mubr.bf16.mxu0 %v2583_v15  ;;  %1384 = vmatprep.mubr.bf16.mxu1 %v2583_v15  ;;  %v741_v37 = vpop.f32.mrf.mxu1 }
 0x1fe   : > { %1450 = vmatpush1.bf16.msra.mxu0 %v2233_v60  ;;  %1563 = vmatpush1.bf16.msra.mxu1 %v2235_v61  ;;  %v742_v50 = vadd.f32 %v2931_v26, %v741_v37  ;;  %v780_v0 = vmax.f32 %v750_v46, 0.0 }
 0x1ff   : > { %1451 = vmatprep.subr.bf16.mxu0 %v2226_v2  ;;  %1564 = vmatprep.subr.bf16.mxu1 %v2228_v3  ;;  %v2332_v51 = vpop.f32.mrf.mxu1 }
 0x200   : > { %v778_v55 = vmax.f32 %v742_v50, 0.0  ;;  %v790_v3 = vpack.c.bf16 %v780_v0, %v779_v63  ;;  %v763_v7 = vadd.f32 %v2332_v51, %v2931_v26 }
 0x201   : > { %v754_v58 = vpop.f32.mrf.mxu1 }
 0x202   : > { %1452 = vmatpush1.bf16.msra.mxu0 %v2225_v10  ;;  %1565 = vmatpush1.bf16.msra.mxu1 %v2227_v11  ;;  %v789_v60 = vpack.c.bf16 %v778_v55, %v777_v54  ;;  %v755_v4 = vadd.f32 %v2931_v26, %v754_v58  ;;  %v783_v10 = vmax.f32 %v763_v7, 0.0 }
 0x203   : > { %1453 = vmatprep.subr.bf16.mxu0 %v2218_v13  ;;  %1566 = vmatprep.subr.bf16.mxu1 %v2220_v14  ;;  %v2333_v61 = vpop.f32.mrf.mxu1  ;;  %v3100_v14 = vld [vmem:[#allocation7] sm:$0xff] }
 0x204   : > { %1272 = vmatmul.mubr.bf16.gmra.mxu0 %v3021_v24  ;;  %1385 = vmatmul.mubr.bf16.gmra.mxu1 %v3021_v24  ;;  %v781_v5 = vmax.f32 %v755_v4, 0.0  ;;  %v766_v8 = vadd.f32 %v2333_v61, %v2931_v26 }
 0x205   : > { %1281 = vmatprep.mubr.bf16.mxu0 %v2583_v15  ;;  %1394 = vmatprep.mubr.bf16.mxu1 %v2583_v15  ;;  %v757_v2 = vpop.f32.mrf.mxu1 }
 0x206   : > { %1454 = vmatpush1.bf16.msra.mxu0 %v2217_v20  ;;  %1567 = vmatpush1.bf16.msra.mxu1 %v2219_v21  ;;  %v758_v1 = vadd.f32 %v2931_v26, %v757_v2  ;;  %v784_v11 = vmax.f32 %v766_v8, 0.0  ;;  %v859_v26 = vlaneseq }
 0x207   : > { %1455 = vmatprep.subr.bf16.mxu0 %v2210_v27  ;;  %1568 = vmatprep.subr.bf16.mxu1 %v2212_v28 }
 0x208   : > { %v782_v6 = vmax.f32 %v758_v1, 0.0  ;;  %v792_v12 = vpack.c.bf16 %v784_v11, %v783_v10 }
 0x20a   : > { %1456 = vmatpush1.bf16.msra.mxu0 %v2209_v35  ;;  %1569 = vmatpush1.bf16.msra.mxu1 %v2211_v36  ;;  %v791_v9 = vpack.c.bf16 %v782_v6, %v781_v5 }
 0x20b   : > { %1457 = vmatprep.subr.bf16.mxu0 %v2202_v38  ;;  %1570 = vmatprep.subr.bf16.mxu1 %v2204_v39 }
 0x20c   : > { %1282 = vmatmul.mubr.bf16.gmra.mxu0 %v3051_v48  ;;  %1395 = vmatmul.mubr.bf16.gmra.mxu1 %v3051_v48 }
 0x20d   : > { %1291 = vmatprep.mubr.bf16.mxu0 %v2583_v15  ;;  %1404 = vmatprep.mubr.bf16.mxu1 %v2583_v15 }
 0x20e   : > { %1458 = vmatpush1.bf16.msra.mxu0 %v2201_v45  ;;  %1571 = vmatpush1.bf16.msra.mxu1 %v2203_v47 }
 0x20f   : > { %1459 = vmatprep.subr.bf16.mxu0 %v2194_v52  ;;  %1572 = vmatprep.subr.bf16.mxu1 %v2196_v53 }
 0x212   : > { %1460 = vmatpush1.bf16.msra.mxu0 %v2193_v56  ;;  %1573 = vmatpush1.bf16.msra.mxu1 %v2195_v57 }
 0x214   : > { %1292 = vmatmul.mubr.bf16.gmra.mxu0 %v789_v60  ;;  %1405 = vmatmul.mubr.bf16.gmra.mxu1 %v789_v60 }
 0x215   : > { %1301 = vmatprep.mubr.bf16.mxu0 %v2583_v15  ;;  %1414 = vmatprep.mubr.bf16.mxu1 %v2583_v15 }
 0x21c   : > { %1302 = vmatmul.mubr.bf16.gmra.mxu0 %v790_v3  ;;  %1415 = vmatmul.mubr.bf16.gmra.mxu1 %v790_v3 }
 0x21d   : > { %1311 = vmatprep.mubr.bf16.mxu0 %v2583_v15  ;;  %1424 = vmatprep.mubr.bf16.mxu1 %v2583_v15 }
 0x224   : > { %1312 = vmatmul.mubr.bf16.gmra.mxu0 %v791_v9  ;;  %1425 = vmatmul.mubr.bf16.gmra.mxu1 %v791_v9 }
 0x225   : > { %1321 = vmatprep.mubr.bf16.mxu0 %v2583_v15  ;;  %1434 = vmatprep.mubr.bf16.mxu1 %v2583_v15 }
 0x22c   : > { %1322 = vmatmul.mubr.bf16.gmra.mxu0 %v792_v12  ;;  %1435 = vmatmul.mubr.bf16.gmra.mxu1 %v792_v12 }
 0x22d   : > { %1477 = vmatprep.mubr.bf16.mxu0 %v2583_v15  ;;  %1590 = vmatprep.mubr.bf16.mxu1 %v2583_v15 }
 0x234   : > { %1478 = vmatmul.mubr.bf16.vlgmr.msra.gmra.mxu0 %v2950_v40  ;;  %1591 = vmatmul.mubr.bf16.vlgmr.msra.gmra.mxu1 %v2950_v40  ;;  %v3096_v40 = vshrl.u32 %v859_v26, 7 }
 0x235   : > { %1487 = vmatprep.mubr.bf16.mxu0 %v2583_v15  ;;  %1600 = vmatprep.mubr.bf16.mxu1 %v2583_v15 }
 0x236   : > { %v869_v13 = vsub.s32 2, %v3096_v40  ;;  %v865_v16 = vsub.s32 1, %v3096_v40  ;;  %v873_v17 = vsub.s32 3, %v3096_v40 }
 0x238   : > { %v3111_v21 = vrot.slane %v3100_v14, %v865_v16  ;;  %v3114_v22 = vrot.slane %v3100_v14, %v873_v17 }
 0x23c   : > { %1488 = vmatmul.mubr.bf16.gmra.mxu0 %v2983_v62  ;;  %1601 = vmatmul.mubr.bf16.gmra.mxu1 %v2983_v62  ;;  %v861_v62 = vsub.s32 0, %v3096_v40 }
 0x23d   : > { %1497 = vmatprep.mubr.bf16.mxu0 %v2583_v15  ;;  %1610 = vmatprep.mubr.bf16.mxu1 %v2583_v15 }
 0x23e   : > { %v3105_v18 = vrot.slane %v3100_v14, %v861_v62 }
 0x244   : > { %1498 = vmatmul.mubr.bf16.gmra.mxu0 %v3021_v24  ;;  %1611 = vmatmul.mubr.bf16.gmra.mxu1 %v3021_v24 }
 0x245   : > { %1507 = vmatprep.mubr.bf16.mxu0 %v2583_v15  ;;  %1620 = vmatprep.mubr.bf16.mxu1 %v2583_v15 }
 0x24c   : > { %1508 = vmatmul.mubr.bf16.gmra.mxu0 %v3051_v48  ;;  %1621 = vmatmul.mubr.bf16.gmra.mxu1 %v3051_v48 }
 0x24d   : > { %1517 = vmatprep.mubr.bf16.mxu0 %v2583_v15  ;;  %1630 = vmatprep.mubr.bf16.mxu1 %v2583_v15 }
 0x254   : > { %1518 = vmatmul.mubr.bf16.gmra.mxu0 %v789_v60  ;;  %1631 = vmatmul.mubr.bf16.gmra.mxu1 %v789_v60 }
 0x255   : > { %1527 = vmatprep.mubr.bf16.mxu0 %v2583_v15  ;;  %1640 = vmatprep.mubr.bf16.mxu1 %v2583_v15 }
 0x25c   : > { %1528 = vmatmul.mubr.bf16.gmra.mxu0 %v790_v3  ;;  %1641 = vmatmul.mubr.bf16.gmra.mxu1 %v790_v3 }
 0x25d   : > { %1537 = vmatprep.mubr.bf16.mxu0 %v2583_v15  ;;  %1650 = vmatprep.mubr.bf16.mxu1 %v2583_v15 }
 0x264   : > { %1538 = vmatmul.mubr.bf16.gmra.mxu0 %v791_v9  ;;  %1651 = vmatmul.mubr.bf16.gmra.mxu1 %v791_v9 }
 0x265   : > { %1547 = vmatprep.mubr.bf16.mxu0 %v2583_v15  ;;  %1660 = vmatprep.mubr.bf16.mxu1 %v2583_v15  ;;  %v3108_v15 = vrot.slane %v3100_v14, %v869_v13 }
 0x26c   : > { %1548 = vmatmul.mubr.bf16.gmra.mxu0 %v792_v12  ;;  %1661 = vmatmul.mubr.bf16.gmra.mxu1 %v792_v12 }
 0x2b4   : > { %v1253_v19 = vpop.f32.mrf.mxu0  ;;  %v1366_v20 = vpop.f32.mrf.mxu1 }
 0x2b5   : > { %v1254_v23 = vadd.f32 %v1253_v19, %v3105_v18  ;;  %v1367_v24 = vadd.f32 %v1366_v20, %v3108_v15 }
 0x2b6   : > { %v1255_v25 = vpop.f32.mrf.mxu0  ;;  %v1368_v27 = vpop.f32.mrf.mxu1 }
 0x2b7   : > { %v1256_v28 = vadd.f32 %v1255_v25, %v3111_v21  ;;  %v1369_v29 = vadd.f32 %v1368_v27, %v3114_v22  ;;  %v1671_v34 = vmax.f32 %v1254_v23, 0.0  ;;  %v1673_v35 = vmax.f32 %v1367_v24, 0.0 }
 0x2b8   : > { %v1257_v30 = vpop.f32.mrf.mxu0  ;;  %v1370_v31 = vpop.f32.mrf.mxu1 }
 0x2b9   : > { %v1258_v32 = vadd.f32 %v1257_v30, %v3105_v18  ;;  %v1371_v33 = vadd.f32 %v1370_v31, %v3108_v15  ;;  %v1672_v43 = vmax.f32 %v1256_v28, 0.0  ;;  %v1674_v44 = vmax.f32 %v1369_v29, 0.0 }
 0x2ba   : > { %v1259_v36 = vpop.f32.mrf.mxu0  ;;  %v1372_v37 = vpop.f32.mrf.mxu1 }
 0x2bb   : > { %v1679_v38 = vmax.f32 %v1258_v32, 0.0  ;;  %v1681_v39 = vmax.f32 %v1371_v33, 0.0  ;;  %v1260_v41 = vadd.f32 %v1259_v36, %v3111_v21  ;;  %v1373_v42 = vadd.f32 %v1372_v37, %v3114_v22 }
 0x2bc   : > { %v1263_v45 = vpop.f32.mrf.mxu0  ;;  %v1376_v47 = vpop.f32.mrf.mxu1 }
 0x2bd   : > { %v1800_v48 = vmax.f32 %v1671_v34, %v1679_v38  ;;  %v1842_v49 = vmax.f32 %v1673_v35, %v1681_v39  ;;  %v1680_v50 = vmax.f32 %v1260_v41, 0.0  ;;  %v1682_v51 = vmax.f32 %v1373_v42, 0.0 }
 0x2be   : > { %v1264_v52 = vadd.f32 %v1263_v45, %v3105_v18  ;;  %v1377_v53 = vadd.f32 %v1376_v47, %v3108_v15  ;;  %v1265_v54 = vpop.f32.mrf.mxu0  ;;  %v1378_v55 = vpop.f32.mrf.mxu1 }
 0x2bf   : > { %v1821_v56 = vmax.f32 %v1672_v43, %v1680_v50  ;;  %v1863_v57 = vmax.f32 %v1674_v44, %v1682_v51  ;;  %v1266_v58 = vadd.f32 %v1265_v54, %v3111_v21  ;;  %v1379_v59 = vadd.f32 %v1378_v55, %v3114_v22 }
 0x2c0   : > { %v1687_v46 = vmax.f32 %v1264_v52, 0.0  ;;  %v1689_v60 = vmax.f32 %v1377_v53, 0.0  ;;  %v1267_v61 = vpop.f32.mrf.mxu0  ;;  %v1380_v63 = vpop.f32.mrf.mxu1 }
 0x2c1   : > { %v1688_v0 = vmax.f32 %v1266_v58, 0.0  ;;  %v1690_v2 = vmax.f32 %v1379_v59, 0.0  ;;  %v1268_v3 = vadd.f32 %v1267_v61, %v3105_v18  ;;  %v1381_v4 = vadd.f32 %v1380_v63, %v3108_v15 }
 0x2c2   : > { %v1801_v1 = vmax.f32 %v1800_v48, %v1687_v46  ;;  %v1843_v5 = vmax.f32 %v1842_v49, %v1689_v60  ;;  %v1269_v6 = vpop.f32.mrf.mxu0  ;;  %v1382_v7 = vpop.f32.mrf.mxu1 }
 0x2c3   : > { %v1822_v8 = vmax.f32 %v1821_v56, %v1688_v0  ;;  %v1864_v9 = vmax.f32 %v1863_v57, %v1690_v2  ;;  %v1695_v10 = vmax.f32 %v1268_v3, 0.0  ;;  %v1697_v11 = vmax.f32 %v1381_v4, 0.0 }
 0x2c4   : > { %v1270_v12 = vadd.f32 %v1269_v6, %v3111_v21  ;;  %v1383_v26 = vadd.f32 %v1382_v7, %v3114_v22  ;;  %v1273_v62 = vpop.f32.mrf.mxu0  ;;  %v1386_v13 = vpop.f32.mrf.mxu1 }
 0x2c5   : > { %v1802_v16 = vmax.f32 %v1801_v1, %v1695_v10  ;;  %v1844_v17 = vmax.f32 %v1843_v5, %v1697_v11  ;;  %v1274_v19 = vadd.f32 %v1273_v62, %v3105_v18  ;;  %v1387_v20 = vadd.f32 %v1386_v13, %v3108_v15 }
 0x2c6   : > { %v1696_v23 = vmax.f32 %v1270_v12, 0.0  ;;  %v1698_v24 = vmax.f32 %v1383_v26, 0.0  ;;  %v1275_v25 = vpop.f32.mrf.mxu0  ;;  %v1388_v27 = vpop.f32.mrf.mxu1 }
 0x2c7   : > { %v1703_v28 = vmax.f32 %v1274_v19, 0.0  ;;  %v1705_v29 = vmax.f32 %v1387_v20, 0.0  ;;  %v1276_v30 = vadd.f32 %v1275_v25, %v3111_v21  ;;  %v1389_v31 = vadd.f32 %v1388_v27, %v3114_v22 }
 0x2c8   : > { %v1823_v32 = vmax.f32 %v1822_v8, %v1696_v23  ;;  %v1865_v33 = vmax.f32 %v1864_v9, %v1698_v24  ;;  %v1277_v34 = vpop.f32.mrf.mxu0  ;;  %v1390_v35 = vpop.f32.mrf.mxu1 }
 0x2c9   : > { %v1803_v36 = vmax.f32 %v1802_v16, %v1703_v28  ;;  %v1845_v37 = vmax.f32 %v1844_v17, %v1705_v29  ;;  %v1704_v38 = vmax.f32 %v1276_v30, 0.0  ;;  %v1706_v39 = vmax.f32 %v1389_v31, 0.0 }
 0x2ca   : > { %v1278_v41 = vadd.f32 %v1277_v34, %v3105_v18  ;;  %v1391_v42 = vadd.f32 %v1390_v35, %v3108_v15  ;;  %v1279_v43 = vpop.f32.mrf.mxu0  ;;  %v1392_v44 = vpop.f32.mrf.mxu1 }
 0x2cb   : > { %v1824_v45 = vmax.f32 %v1823_v32, %v1704_v38  ;;  %v1866_v47 = vmax.f32 %v1865_v33, %v1706_v39  ;;  %v1280_v48 = vadd.f32 %v1279_v43, %v3111_v21  ;;  %v1393_v49 = vadd.f32 %v1392_v44, %v3114_v22 }
 0x2cc   : > { %v1711_v50 = vmax.f32 %v1278_v41, 0.0  ;;  %v1713_v51 = vmax.f32 %v1391_v42, 0.0  ;;  %v1283_v52 = vpop.f32.mrf.mxu0  ;;  %v1396_v53 = vpop.f32.mrf.mxu1 }
 0x2cd   : > { %v1712_v54 = vmax.f32 %v1280_v48, 0.0  ;;  %v1714_v55 = vmax.f32 %v1393_v49, 0.0  ;;  %v1284_v56 = vadd.f32 %v1283_v52, %v3105_v18  ;;  %v1397_v57 = vadd.f32 %v1396_v53, %v3108_v15 }
 0x2ce   : > { %v1804_v58 = vmax.f32 %v1803_v36, %v1711_v50  ;;  %v1846_v59 = vmax.f32 %v1845_v37, %v1713_v51  ;;  %v1285_v46 = vpop.f32.mrf.mxu0  ;;  %v1398_v60 = vpop.f32.mrf.mxu1 }
 0x2cf   : > { %v1825_v61 = vmax.f32 %v1824_v45, %v1712_v54  ;;  %v1867_v63 = vmax.f32 %v1866_v47, %v1714_v55  ;;  %v1719_v0 = vmax.f32 %v1284_v56, 0.0  ;;  %v1721_v2 = vmax.f32 %v1397_v57, 0.0 }
 0x2d0   : > { %v1286_v3 = vadd.f32 %v1285_v46, %v3111_v21  ;;  %v1399_v4 = vadd.f32 %v1398_v60, %v3114_v22  ;;  %v1287_v1 = vpop.f32.mrf.mxu0  ;;  %v1400_v5 = vpop.f32.mrf.mxu1 }
 0x2d1   : > { %v1805_v6 = vmax.f32 %v1804_v58, %v1719_v0  ;;  %v1847_v7 = vmax.f32 %v1846_v59, %v1721_v2  ;;  %v1288_v8 = vadd.f32 %v1287_v1, %v3105_v18  ;;  %v1401_v9 = vadd.f32 %v1400_v5, %v3108_v15 }
 0x2d2   : > { %v1720_v10 = vmax.f32 %v1286_v3, 0.0  ;;  %v1722_v11 = vmax.f32 %v1399_v4, 0.0  ;;  %v1289_v12 = vpop.f32.mrf.mxu0  ;;  %v1402_v26 = vpop.f32.mrf.mxu1 }
 0x2d3   : > { %v1727_v62 = vmax.f32 %v1288_v8, 0.0  ;;  %v1729_v13 = vmax.f32 %v1401_v9, 0.0  ;;  %v1290_v16 = vadd.f32 %v1289_v12, %v3111_v21  ;;  %v1403_v17 = vadd.f32 %v1402_v26, %v3114_v22 }
 0x2d4   : > { %v1826_v19 = vmax.f32 %v1825_v61, %v1720_v10  ;;  %v1868_v20 = vmax.f32 %v1867_v63, %v1722_v11  ;;  %v1293_v23 = vpop.f32.mrf.mxu0  ;;  %v1406_v24 = vpop.f32.mrf.mxu1 }
 0x2d5   : > { %v1806_v25 = vmax.f32 %v1805_v6, %v1727_v62  ;;  %v1848_v27 = vmax.f32 %v1847_v7, %v1729_v13  ;;  %v1728_v28 = vmax.f32 %v1290_v16, 0.0  ;;  %v1730_v29 = vmax.f32 %v1403_v17, 0.0 }
 0x2d6   : > { %v1294_v30 = vadd.f32 %v1293_v23, %v3105_v18  ;;  %v1407_v31 = vadd.f32 %v1406_v24, %v3108_v15  ;;  %v1295_v32 = vpop.f32.mrf.mxu0  ;;  %v1408_v33 = vpop.f32.mrf.mxu1 }
 0x2d7   : > { %v1827_v34 = vmax.f32 %v1826_v19, %v1728_v28  ;;  %v1869_v35 = vmax.f32 %v1868_v20, %v1730_v29  ;;  %v1296_v36 = vadd.f32 %v1295_v32, %v3111_v21  ;;  %v1409_v37 = vadd.f32 %v1408_v33, %v3114_v22 }
 0x2d8   : > { %v1735_v38 = vmax.f32 %v1294_v30, 0.0  ;;  %v1737_v39 = vmax.f32 %v1407_v31, 0.0  ;;  %v1297_v41 = vpop.f32.mrf.mxu0  ;;  %v1410_v42 = vpop.f32.mrf.mxu1 }
 0x2d9   : > { %v1736_v43 = vmax.f32 %v1296_v36, 0.0  ;;  %v1738_v44 = vmax.f32 %v1409_v37, 0.0  ;;  %v1298_v45 = vadd.f32 %v1297_v41, %v3105_v18  ;;  %v1411_v47 = vadd.f32 %v1410_v42, %v3108_v15 }
 0x2da   : > { %v1807_v48 = vmax.f32 %v1806_v25, %v1735_v38  ;;  %v1849_v49 = vmax.f32 %v1848_v27, %v1737_v39  ;;  %v1299_v50 = vpop.f32.mrf.mxu0  ;;  %v1412_v51 = vpop.f32.mrf.mxu1 }
 0x2db   : > { %v1828_v52 = vmax.f32 %v1827_v34, %v1736_v43  ;;  %v1870_v53 = vmax.f32 %v1869_v35, %v1738_v44  ;;  %v1743_v54 = vmax.f32 %v1298_v45, 0.0  ;;  %v1745_v55 = vmax.f32 %v1411_v47, 0.0 }
 0x2dc   : > { %v1300_v56 = vadd.f32 %v1299_v50, %v3111_v21  ;;  %v1413_v57 = vadd.f32 %v1412_v51, %v3114_v22  ;;  %v1303_v58 = vpop.f32.mrf.mxu0  ;;  %v1416_v59 = vpop.f32.mrf.mxu1 }
 0x2dd   : > { %v1808_v46 = vmax.f32 %v1807_v48, %v1743_v54  ;;  %v1850_v60 = vmax.f32 %v1849_v49, %v1745_v55  ;;  %v1304_v61 = vadd.f32 %v1303_v58, %v3105_v18  ;;  %v1417_v63 = vadd.f32 %v1416_v59, %v3108_v15 }
 0x2de   : > { %v1744_v0 = vmax.f32 %v1300_v56, 0.0  ;;  %v1746_v2 = vmax.f32 %v1413_v57, 0.0  ;;  %v1305_v3 = vpop.f32.mrf.mxu0  ;;  %v1418_v4 = vpop.f32.mrf.mxu1 }
 0x2df   : > { %v1751_v1 = vmax.f32 %v1304_v61, 0.0  ;;  %v1753_v5 = vmax.f32 %v1417_v63, 0.0  ;;  %v1306_v6 = vadd.f32 %v1305_v3, %v3111_v21  ;;  %v1419_v7 = vadd.f32 %v1418_v4, %v3114_v22 }
 0x2e0   : > { %v1829_v8 = vmax.f32 %v1828_v52, %v1744_v0  ;;  %v1871_v9 = vmax.f32 %v1870_v53, %v1746_v2  ;;  %v1307_v10 = vpop.f32.mrf.mxu0  ;;  %v1420_v11 = vpop.f32.mrf.mxu1 }
 0x2e1   : > { %v1809_v12 = vmax.f32 %v1808_v46, %v1751_v1  ;;  %v1851_v26 = vmax.f32 %v1850_v60, %v1753_v5  ;;  %v1752_v62 = vmax.f32 %v1306_v6, 0.0  ;;  %v1754_v13 = vmax.f32 %v1419_v7, 0.0 }
 0x2e2   : > { %v1308_v16 = vadd.f32 %v1307_v10, %v3105_v18  ;;  %v1421_v17 = vadd.f32 %v1420_v11, %v3108_v15  ;;  %v1309_v19 = vpop.f32.mrf.mxu0  ;;  %v1422_v20 = vpop.f32.mrf.mxu1 }
 0x2e3   : > { %v1830_v23 = vmax.f32 %v1829_v8, %v1752_v62  ;;  %v1872_v24 = vmax.f32 %v1871_v9, %v1754_v13  ;;  %v1310_v25 = vadd.f32 %v1309_v19, %v3111_v21  ;;  %v1423_v27 = vadd.f32 %v1422_v20, %v3114_v22 }
 0x2e4   : > { %v1759_v28 = vmax.f32 %v1308_v16, 0.0  ;;  %v1761_v29 = vmax.f32 %v1421_v17, 0.0  ;;  %v1313_v30 = vpop.f32.mrf.mxu0  ;;  %v1426_v31 = vpop.f32.mrf.mxu1 }
 0x2e5   : > { %v1760_v32 = vmax.f32 %v1310_v25, 0.0  ;;  %v1762_v33 = vmax.f32 %v1423_v27, 0.0  ;;  %v1314_v34 = vadd.f32 %v1313_v30, %v3105_v18  ;;  %v1427_v35 = vadd.f32 %v1426_v31, %v3108_v15 }
 0x2e6   : > { %v1810_v36 = vmax.f32 %v1809_v12, %v1759_v28  ;;  %v1852_v37 = vmax.f32 %v1851_v26, %v1761_v29  ;;  %v1315_v38 = vpop.f32.mrf.mxu0  ;;  %v1428_v39 = vpop.f32.mrf.mxu1 }
 0x2e7   : > { %v1831_v41 = vmax.f32 %v1830_v23, %v1760_v32  ;;  %v1873_v42 = vmax.f32 %v1872_v24, %v1762_v33  ;;  %v1767_v43 = vmax.f32 %v1314_v34, 0.0  ;;  %v1769_v44 = vmax.f32 %v1427_v35, 0.0 }
 0x2e8   : > { %v1316_v45 = vadd.f32 %v1315_v38, %v3111_v21  ;;  %v1429_v47 = vadd.f32 %v1428_v39, %v3114_v22  ;;  %v1317_v48 = vpop.f32.mrf.mxu0  ;;  %v1430_v49 = vpop.f32.mrf.mxu1 }
 0x2e9   : > { %v1811_v50 = vmax.f32 %v1810_v36, %v1767_v43  ;;  %v1853_v51 = vmax.f32 %v1852_v37, %v1769_v44  ;;  %v1318_v52 = vadd.f32 %v1317_v48, %v3105_v18  ;;  %v1431_v53 = vadd.f32 %v1430_v49, %v3108_v15 }
 0x2ea   : > { %v1768_v54 = vmax.f32 %v1316_v45, 0.0  ;;  %v1770_v55 = vmax.f32 %v1429_v47, 0.0  ;;  %v1319_v56 = vpop.f32.mrf.mxu0  ;;  %v1432_v57 = vpop.f32.mrf.mxu1 }
 0x2eb   : > { %v1775_v58 = vmax.f32 %v1318_v52, 0.0  ;;  %v1777_v59 = vmax.f32 %v1431_v53, 0.0  ;;  %v1320_v46 = vadd.f32 %v1319_v56, %v3111_v21  ;;  %v1433_v60 = vadd.f32 %v1432_v57, %v3114_v22 }
 0x2ec   : > { %v1832_v61 = vmax.f32 %v1831_v41, %v1768_v54  ;;  %v1874_v63 = vmax.f32 %v1873_v42, %v1770_v55  ;;  %v1323_v0 = vpop.f32.mrf.mxu0  ;;  %v1436_v2 = vpop.f32.mrf.mxu1  ;;  %v2584_v56 = vmov 1966171168  }
 0x2ed   : > { %v1812_v3 = vmax.f32 %v1811_v50, %v1775_v58  ;;  %v1854_v4 = vmax.f32 %v1853_v51, %v1777_v59  ;;  %v1776_v1 = vmax.f32 %v1320_v46, 0.0  ;;  %v1778_v5 = vmax.f32 %v1433_v60, 0.0 }
 0x2ee   : > { %v1324_v6 = vadd.f32 %v1323_v0, %v3105_v18  ;;  %v1437_v7 = vadd.f32 %v1436_v2, %v3108_v15  ;;  %v1325_v8 = vpop.f32.mrf.mxu0  ;;  %v1438_v9 = vpop.f32.mrf.mxu1  ;;  %v1981_v57 = vunpack.c.l.s4 %v2584_v56 }
 0x2ef   : > { %v1833_v10 = vmax.f32 %v1832_v61, %v1776_v1  ;;  %v1875_v11 = vmax.f32 %v1874_v63, %v1778_v5  ;;  %v1326_v12 = vadd.f32 %v1325_v8, %v3111_v21  ;;  %v1439_v26 = vadd.f32 %v1438_v9, %v3114_v22 }
 0x2f0   : > { %v1783_v62 = vmax.f32 %v1324_v6, 0.0  ;;  %v1785_v13 = vmax.f32 %v1437_v7, 0.0  ;;  %v1327_v16 = vpop.f32.mrf.mxu0  ;;  %v1440_v17 = vpop.f32.mrf.mxu1  ;;  %v1982_v1 = vunpack.c.0.s8 %v1981_v57  ;;  %v877_v5 = vsub.s32 4, %v3096_v40 }
 0x2f1   : > { %v1784_v19 = vmax.f32 %v1326_v12, 0.0  ;;  %v1786_v20 = vmax.f32 %v1439_v26, 0.0  ;;  %v1328_v23 = vadd.f32 %v1327_v16, %v3105_v18  ;;  %v1441_v24 = vadd.f32 %v1440_v17, %v3108_v15 }
 0x2f2   : > { %v1813_v25 = vmax.f32 %v1812_v3, %v1783_v62  ;;  %v1855_v27 = vmax.f32 %v1854_v4, %v1785_v13  ;;  %v1329_v28 = vpop.f32.mrf.mxu0  ;;  %v1442_v29 = vpop.f32.mrf.mxu1  ;;  %v885_v6 = vsub.s32 6, %v3096_v40  ;;  %v881_v26 = vsub.s32 5, %v3096_v40 }
 0x2f3   : > { %v1834_v30 = vmax.f32 %v1833_v10, %v1784_v19  ;;  %v1876_v31 = vmax.f32 %v1875_v11, %v1786_v20  ;;  %v1791_v32 = vmax.f32 %v1328_v23, 0.0  ;;  %v1793_v33 = vmax.f32 %v1441_v24, 0.0 }
 0x2f4   : > { %v1330_v34 = vadd.f32 %v1329_v28, %v3111_v21  ;;  %v1443_v35 = vadd.f32 %v1442_v29, %v3114_v22  ;;  %v3180_v36 = vpop.f32.mrf.mxu0  ;;  %v3182_v37 = vpop.f32.mrf.mxu1  ;;  %v889_v62 = vsub.s32 7, %v3096_v40  ;;  %v3193_v20 = vsub.s32 %v1982_v1, %v3096_v40 }
 0x2f5   : > { %v1814_v38 = vmax.f32 %v1813_v25, %v1791_v32  ;;  %v1856_v18 = vmax.f32 %v1855_v27, %v1793_v33  ;;  %v3196_v23 = vrot.slane %v3100_v14, %v877_v5  ;;  %v3199_v24 = vrot.slane %v3100_v14, %v885_v6 }
 0x2f6   : > { %v1792_v39 = vmax.f32 %v1330_v34, 0.0  ;;  %v1794_v15 = vmax.f32 %v1443_v35, 0.0  ;;  %v3184_v41 = vpop.f32.mrf.mxu0  ;;  %v3186_v42 = vpop.f32.mrf.mxu1  ;;  %v3202_v32 = vrot.slane %v3100_v14, %v881_v26  ;;  %v3205_v33 = vrot.slane %v3100_v14, %v889_v62 }
 0x2f7   : > { %v1815_v43 = vrot.slane %v1814_v38, 4  ;;  %v1857_v44 = vrot.slane %v1856_v18, 4  ;;  %v1593_v14 = vadd.f32 %v3182_v37, %v3199_v24 }
 0x2f8   : > { %v1835_v45 = vmax.f32 %v1834_v30, %v1792_v39  ;;  %v1877_v47 = vmax.f32 %v1876_v31, %v1794_v15  ;;  %v1483_v48 = vpop.f32.mrf.mxu0  ;;  %v1596_v21 = vpop.f32.mrf.mxu1  ;;  %v1480_v15 = vadd.f32 %v3180_v36, %v3196_v23  ;;  %v1595_v36 = vadd.f32 %v3186_v42, %v3205_v33 }
 0x2f9   : > { %v1816_v49 = vmax.f32 %v1814_v38, %v1815_v43  ;;  %v1858_v22 = vmax.f32 %v1856_v18, %v1857_v44  ;;  %v1484_v35 = vadd.f32 %v1483_v48, %v3196_v23  ;;  %v1597_v38 = vadd.f32 %v1596_v21, %v3199_v24 }
 0x2fa   : > { %v1836_v50 = vrot.slane %v1835_v45, 4  ;;  %v1878_v51 = vrot.slane %v1877_v47, 4  ;;  %v1485_v52 = vpop.f32.mrf.mxu0  ;;  %v1598_v53 = vpop.f32.mrf.mxu1  ;;  %v1677_v42 = vmax.f32 %v1593_v14, 0.0 }
 0x2fb   : > { %v1817_v54 = vrot.slane %v1816_v49, 2  ;;  %v1859_v55 = vrot.slane %v1858_v22, 2  ;;  %v1486_v43 = vadd.f32 %v1485_v52, %v3202_v32  ;;  %v1685_v52 = vmax.f32 %v1597_v38, 0.0 }
 0x2fc   : > { %v1837_v58 = vmax.f32 %v1835_v45, %v1836_v50  ;;  %v1879_v59 = vmax.f32 %v1877_v47, %v1878_v51  ;;  %v1489_v46 = vpop.f32.mrf.mxu0  ;;  %v1602_v60 = vpop.f32.mrf.mxu1  ;;  %v1599_v47 = vadd.f32 %v1598_v53, %v3205_v33  ;;  %v1683_v51 = vmax.f32 %v1484_v35, 0.0 }
 0x2fd   : > { %v1818_v61 = vmax.f32 %v1816_v49, %v1817_v54  ;;  %v1860_v63 = vmax.f32 %v1858_v22, %v1859_v55  ;;  %v1482_v49 = vadd.f32 %v3184_v41, %v3202_v32  ;;  %v1490_v22 = vadd.f32 %v1489_v46, %v3196_v23 }
 0x2fe   : > { %v1838_v0 = vrot.slane %v1837_v58, 2  ;;  %v1880_v2 = vrot.slane %v1879_v59, 2  ;;  %v1491_v3 = vpop.f32.mrf.mxu0  ;;  %v1604_v4 = vpop.f32.mrf.mxu1  ;;  %v1603_v54 = vadd.f32 %v1602_v60, %v3199_v24  ;;  %v1684_v53 = vmax.f32 %v1486_v43, 0.0 }
 0x2ff   : > { %v1819_v7 = vrot.slane %v1818_v61, 1  ;;  %v1861_v8 = vrot.slane %v1860_v63, 1  ;;  %v1492_v56 = vadd.f32 %v1491_v3, %v3202_v32  ;;  %v1605_v57 = vadd.f32 %v1604_v4, %v3205_v33 }
 0x300   : > { %v1839_v9 = vmax.f32 %v1837_v58, %v1838_v0  ;;  %v1881_v10 = vmax.f32 %v1879_v59, %v1880_v2  ;;  %v1493_v11 = vpop.f32.mrf.mxu0  ;;  %v1606_v12 = vpop.f32.mrf.mxu1  ;;  %v1675_v58 = vmax.f32 %v1480_v15, 0.0  ;;  %v1686_v59 = vmax.f32 %v1599_v47, 0.0 }
 0x301   : > { %v1820_v25 = vmax.f32 %v1818_v61, %v1819_v7  ;;  %v1862_v27 = vmax.f32 %v1860_v63, %v1861_v8  ;;  %v1494_v41 = vadd.f32 %v1493_v11, %v3196_v23  ;;  %v1607_v46 = vadd.f32 %v1606_v12, %v3199_v24 }
 0x302   : > { %v1840_v13 = vrot.slane %v1839_v9, 1  ;;  %v1882_v16 = vrot.slane %v1881_v10, 1  ;;  %v1495_v17 = vpop.f32.mrf.mxu0  ;;  %v1608_v19 = vpop.f32.mrf.mxu1  ;;  %v1676_v0 = vmax.f32 %v1482_v49, 0.0  ;;  %v1678_v2 = vmax.f32 %v1595_v36, 0.0 }
 0x303   : > { %v1691_v1 = vmax.f32 %v1490_v22, 0.0  ;;  %v1496_v60 = vadd.f32 %v1495_v17, %v3202_v32  ;;  %v1884_v5 = vmax.f32 %v1675_v58, %v1683_v51  ;;  %v1926_v6 = vmax.f32 %v1677_v42, %v1685_v52 }
 0x304   : > { %v1841_v28 = vmax.f32 %v1839_v9, %v1840_v13  ;;  %v1883_v29 = vmax.f32 %v1881_v10, %v1882_v16  ;;  %v1499_v30 = vpop.f32.mrf.mxu0  ;;  %v1612_v31 = vpop.f32.mrf.mxu1  ;;  %v1693_v7 = vmax.f32 %v1603_v54, 0.0  ;;  %v1609_v3 = vadd.f32 %v1608_v19, %v3205_v33 }
 0x305   : > { %v1905_v9 = vmax.f32 %v1676_v0, %v1684_v53  ;;  %v1692_v10 = vmax.f32 %v1492_v56, 0.0  ;;  %v1694_v11 = vmax.f32 %v1605_v57, 0.0  ;;  %v1699_v26 = vmax.f32 %v1494_v41, 0.0 }
 0x306   : > { %v1976_v40 = vcombine.low %v1820_v25, %v1841_v28  ;;  %v1977_v34 = vcombine.low %v1862_v27, %v1883_v29  ;;  %v1501_v18 = vpop.f32.mrf.mxu0  ;;  %v1614_v39 = vpop.f32.mrf.mxu1  ;;  %v1947_v62 = vmax.f32 %v1678_v2, %v1686_v59  ;;  %v1701_v12 = vmax.f32 %v1607_v46, 0.0 }
 0x307   : > { %v1500_v13 = vadd.f32 %v1499_v30, %v3196_v23  ;;  %v1613_v16 = vadd.f32 %v1612_v31, %v3199_v24  ;;  %v1885_v17 = vmax.f32 %v1884_v5, %v1691_v1  ;;  %v1700_v28 = vmax.f32 %v1496_v60, 0.0 }
 0x308   : > { %v3213_v44 = vrot.slane %v1976_v40, %v3193_v20  ;;  %v3216_v45 = vrot.slane %v1977_v34, %v3193_v20  ;;  %v1503_v48 = vpop.f32.mrf.mxu0  ;;  %v1616_v21 = vpop.f32.mrf.mxu1  ;;  %v1502_v29 = vadd.f32 %v1501_v18, %v3202_v32  ;;  %v1615_v19 = vadd.f32 %v1614_v39, %v3205_v33 }
 0x309   : > { %v1927_v40 = vmax.f32 %v1926_v6, %v1693_v7  ;;  %v1702_v34 = vmax.f32 %v1609_v3, 0.0  ;;  %v1504_v35 = vadd.f32 %v1503_v48, %v3196_v23  ;;  %v1617_v38 = vadd.f32 %v1616_v21, %v3199_v24 }
 0x30a   : > { %v2008_v50 = vcombine.low %v3213_v44, %v3216_v45  ;;  %v1505_v37 = vpop.f32.mrf.mxu0  ;;  %v1618_v55 = vpop.f32.mrf.mxu1  ;;  %v1906_v14 = vmax.f32 %v1905_v9, %v1692_v10  ;;  %v1948_v30 = vmax.f32 %v1947_v62, %v1694_v11  ;;  %v1886_v47 = vmax.f32 %v1885_v17, %v1699_v26 }
 0x30b   : > { %v1506_v31 = vadd.f32 %v1505_v37, %v3202_v32  ;;  %v1928_v49 = vmax.f32 %v1927_v40, %v1701_v12  ;;  %v1707_v36 = vmax.f32 %v1500_v13, 0.0  ;;  %v1709_v22 = vmax.f32 %v1613_v16, 0.0 }
 0x30c   : > { %v1509_v61 = vpop.f32.mrf.mxu0  ;;  %v1622_v63 = vpop.f32.mrf.mxu1  ;;  %v1619_v18 = vadd.f32 %v1618_v55, %v3205_v33  ;;  %v1907_v52 = vmax.f32 %v1906_v14, %v1700_v28  ;;  %v1708_v54 = vmax.f32 %v1502_v29, 0.0  ;;  %v1710_v53 = vmax.f32 %v1615_v19, 0.0 }
 0x30d   : > { %v1510_v48 = vadd.f32 %v1509_v61, %v3196_v23  ;;  %v1949_v21 = vmax.f32 %v1948_v30, %v1702_v34  ;;  %v1715_v56 = vmax.f32 %v1504_v35, 0.0  ;;  %v1717_v57 = vmax.f32 %v1617_v38, 0.0 }
 0x30e   : > { %v1511_v4 = vpop.f32.mrf.mxu0  ;;  %v1624_v8 = vpop.f32.mrf.mxu1  ;;  %v1623_v41 = vadd.f32 %v1622_v63, %v3199_v24  ;;  %v1716_v37 = vmax.f32 %v1506_v31, 0.0  ;;  %v1887_v0 = vmax.f32 %v1886_v47, %v1707_v36  ;;  %v1929_v2 = vmax.f32 %v1928_v49, %v1709_v22 }
 0x30f   : > { %v1512_v59 = vadd.f32 %v1511_v4, %v3202_v32  ;;  %v1625_v46 = vadd.f32 %v1624_v8, %v3205_v33  ;;  %v1718_v1 = vmax.f32 %v1619_v18, 0.0  ;;  %v1908_v6 = vmax.f32 %v1907_v52, %v1708_v54 }
 0x310   : > { %v1513_v25 = vpop.f32.mrf.mxu0  ;;  %v1626_v27 = vpop.f32.mrf.mxu1  ;;  %v1950_v7 = vmax.f32 %v1949_v21, %v1710_v53  ;;  %v1723_v3 = vmax.f32 %v1510_v48, 0.0  ;;  %v1888_v9 = vmax.f32 %v1887_v0, %v1715_v56  ;;  %v1930_v10 = vmax.f32 %v1929_v2, %v1717_v57 }
 0x311   : > { %v1514_v55 = vadd.f32 %v1513_v25, %v3196_v23  ;;  %v1627_v60 = vadd.f32 %v1626_v27, %v3199_v24  ;;  %v1725_v11 = vmax.f32 %v1623_v41, 0.0  ;;  %v1909_v62 = vmax.f32 %v1908_v6, %v1716_v37 }
 0x312   : > { %v1515_v15 = vpop.f32.mrf.mxu0  ;;  %v1628_v43 = vpop.f32.mrf.mxu1  ;;  %v1724_v12 = vmax.f32 %v1512_v59, 0.0  ;;  %v1726_v13 = vmax.f32 %v1625_v46, 0.0  ;;  %v1951_v25 = vmax.f32 %v1950_v7, %v1718_v1  ;;  %v1889_v40 = vmax.f32 %v1888_v9, %v1723_v3 }
 0x313   : > { %v1516_v63 = vadd.f32 %v1515_v15, %v3202_v32  ;;  %v1629_v4 = vadd.f32 %v1628_v43, %v3205_v33  ;;  %v1731_v16 = vmax.f32 %v1514_v55, 0.0  ;;  %v1733_v27 = vmax.f32 %v1627_v60, 0.0 }
 0x314   : > { %v1519_v51 = vpop.f32.mrf.mxu0  ;;  %v1632_v39 = vpop.f32.mrf.mxu1  ;;  %v1931_v15 = vmax.f32 %v1930_v10, %v1725_v11  ;;  %v1910_v49 = vmax.f32 %v1909_v62, %v1724_v12  ;;  %v1952_v36 = vmax.f32 %v1951_v25, %v1726_v13 }
 0x315   : > { %v1520_v17 = vadd.f32 %v1519_v51, %v3196_v23  ;;  %v1633_v28 = vadd.f32 %v1632_v39, %v3199_v24  ;;  %v1732_v34 = vmax.f32 %v1516_v63, 0.0  ;;  %v1734_v43 = vmax.f32 %v1629_v4, 0.0 }
 0x316   : > { %v1521_v58 = vpop.f32.mrf.mxu0  ;;  %v1634_v42 = vpop.f32.mrf.mxu1  ;;  %v1890_v22 = vmax.f32 %v1889_v40, %v1731_v16  ;;  %v1932_v51 = vmax.f32 %v1931_v15, %v1733_v27 }
 0x317   : > { %v1522_v35 = vadd.f32 %v1521_v58, %v3202_v32  ;;  %v1635_v38 = vadd.f32 %v1634_v42, %v3205_v33  ;;  %v1739_v39 = vmax.f32 %v1520_v17, 0.0  ;;  %v1741_v52 = vmax.f32 %v1633_v28, 0.0 }
 0x318   : > { %v1523_v61 = vpop.f32.mrf.mxu0  ;;  %v1636_v5 = vpop.f32.mrf.mxu1  ;;  %v1911_v21 = vmax.f32 %v1910_v49, %v1732_v34  ;;  %v1953_v58 = vmax.f32 %v1952_v36, %v1734_v43 }
 0x319   : > { %v1524_v14 = vadd.f32 %v1523_v61, %v3196_v23  ;;  %v1637_v30 = vadd.f32 %v1636_v5, %v3199_v24  ;;  %v1740_v56 = vmax.f32 %v1522_v35, 0.0  ;;  %v1742_v57 = vmax.f32 %v1635_v38, 0.0 }
 0x31a   : > { %v1525_v8 = vpop.f32.mrf.mxu0  ;;  %v1638_v26 = vpop.f32.mrf.mxu1  ;;  %v1891_v61 = vmax.f32 %v1890_v22, %v1739_v39  ;;  %v1933_v5 = vmax.f32 %v1932_v51, %v1741_v52 }
 0x31b   : > { %v1526_v18 = vadd.f32 %v1525_v8, %v3202_v32  ;;  %v1639_v54 = vadd.f32 %v1638_v26, %v3205_v33  ;;  %v1747_v42 = vmax.f32 %v1524_v14, 0.0  ;;  %v1749_v37 = vmax.f32 %v1637_v30, 0.0 }
 0x31c   : > { %v1529_v29 = vpop.f32.mrf.mxu0  ;;  %v1642_v19 = vpop.f32.mrf.mxu1  ;;  %v1912_v9 = vmax.f32 %v1911_v21, %v1740_v56  ;;  %v1954_v10 = vmax.f32 %v1953_v58, %v1742_v57 }
 0x31d   : > { %v1530_v41 = vadd.f32 %v1529_v29, %v3196_v23  ;;  %v1643_v59 = vadd.f32 %v1642_v19, %v3199_v24  ;;  %v1748_v0 = vmax.f32 %v1526_v18, 0.0  ;;  %v1750_v6 = vmax.f32 %v1639_v54, 0.0 }
 0x31e   : > { %v1531_v47 = vpop.f32.mrf.mxu0  ;;  %v1644_v31 = vpop.f32.mrf.mxu1  ;;  %v1892_v8 = vmax.f32 %v1891_v61, %v1747_v42  ;;  %v1934_v26 = vmax.f32 %v1933_v5, %v1749_v37 }
 0x31f   : > { %v1532_v2 = vadd.f32 %v1531_v47, %v3202_v32  ;;  %v1645_v1 = vadd.f32 %v1644_v31, %v3205_v33  ;;  %v1755_v11 = vmax.f32 %v1530_v41, 0.0  ;;  %v1757_v62 = vmax.f32 %v1643_v59, 0.0 }
 0x320   : > { %v1533_v53 = vpop.f32.mrf.mxu0  ;;  %v1646_v48 = vpop.f32.mrf.mxu1  ;;  %v1913_v25 = vmax.f32 %v1912_v9, %v1748_v0  ;;  %v1955_v29 = vmax.f32 %v1954_v10, %v1750_v6 }
 0x321   : > { %v1534_v60 = vadd.f32 %v1533_v53, %v3196_v23  ;;  %v1647_v7 = vadd.f32 %v1646_v48, %v3199_v24  ;;  %v1756_v27 = vmax.f32 %v1532_v2, 0.0  ;;  %v1758_v17 = vmax.f32 %v1645_v1, 0.0 }
 0x322   : > { %v1535_v46 = vpop.f32.mrf.mxu0  ;;  %v1648_v55 = vpop.f32.mrf.mxu1  ;;  %v1893_v15 = vmax.f32 %v1892_v8, %v1755_v11  ;;  %v1935_v47 = vmax.f32 %v1934_v26, %v1757_v62 }
 0x323   : > { %v1536_v4 = vadd.f32 %v1535_v46, %v3202_v32  ;;  %v1763_v28 = vmax.f32 %v1534_v60, 0.0  ;;  %v1765_v19 = vmax.f32 %v1647_v7, 0.0  ;;  %v1649_v40 = vadd.f32 %v1648_v55, %v3205_v33 }
 0x324   : > { %v1539_v3 = vpop.f32.mrf.mxu0  ;;  %v1652_v63 = vpop.f32.mrf.mxu1  ;;  %v1914_v51 = vmax.f32 %v1913_v25, %v1756_v27  ;;  %v1956_v39 = vmax.f32 %v1955_v29, %v1758_v17 }
 0x325   : > { %v1540_v12 = vadd.f32 %v1539_v3, %v3196_v23  ;;  %v1653_v34 = vadd.f32 %v1652_v63, %v3199_v24  ;;  %v1764_v43 = vmax.f32 %v1536_v4, 0.0  ;;  %v1894_v52 = vmax.f32 %v1893_v15, %v1763_v28 }
 0x326   : > { %v1541_v13 = vpop.f32.mrf.mxu0  ;;  %v1654_v16 = vpop.f32.mrf.mxu1  ;;  %v1936_v53 = vmax.f32 %v1935_v47, %v1765_v19  ;;  %v1766_v48 = vmax.f32 %v1649_v40, 0.0 }
 0x327   : > { %v1542_v14 = vadd.f32 %v1541_v13, %v3202_v32  ;;  %v1771_v31 = vmax.f32 %v1540_v12, 0.0  ;;  %v1655_v49 = vadd.f32 %v1654_v16, %v3205_v33  ;;  %v1773_v21 = vmax.f32 %v1653_v34, 0.0 }
 0x328   : > { %v1543_v35 = vpop.f32.mrf.mxu0  ;;  %v1656_v38 = vpop.f32.mrf.mxu1  ;;  %v1915_v58 = vmax.f32 %v1914_v51, %v1764_v43  ;;  %v1957_v3 = vmax.f32 %v1956_v39, %v1766_v48 }
 0x329   : > { %v1544_v30 = vadd.f32 %v1543_v35, %v3196_v23  ;;  %v1657_v36 = vadd.f32 %v1656_v38, %v3199_v24  ;;  %v1772_v42 = vmax.f32 %v1542_v14, 0.0  ;;  %v1895_v46 = vmax.f32 %v1894_v52, %v1771_v31 }
 0x32a   : > { %v1545_v22 = vpop.f32.mrf.mxu0  ;;  %v1658_v18 = vpop.f32.mrf.mxu1  ;;  %v1774_v55 = vmax.f32 %v1655_v49, 0.0  ;;  %v1937_v63 = vmax.f32 %v1936_v53, %v1773_v21 }
 0x32b   : > { %v1546_v54 = vadd.f32 %v1545_v22, %v3202_v32  ;;  %v1659_v56 = vadd.f32 %v1658_v18, %v3205_v33  ;;  %v1779_v37 = vmax.f32 %v1544_v30, 0.0  ;;  %v1781_v0 = vmax.f32 %v1657_v36, 0.0 }
 0x32c   : > { %v1549_v57 = vpop.f32.mrf.mxu0  ;;  %v1662_v41 = vpop.f32.mrf.mxu1  ;;  %v1916_v8 = vmax.f32 %v1915_v58, %v1772_v42  ;;  %v1958_v13 = vmax.f32 %v1957_v3, %v1774_v55 }
 0x32d   : > { %v1550_v59 = vadd.f32 %v1549_v57, %v3196_v23  ;;  %v1663_v2 = vadd.f32 %v1662_v41, %v3199_v24  ;;  %v1780_v61 = vmax.f32 %v1546_v54, 0.0  ;;  %v1782_v9 = vmax.f32 %v1659_v56, 0.0 }
 0x32e   : > { %v1551_v1 = vpop.f32.mrf.mxu0  ;;  %v1664_v60 = vpop.f32.mrf.mxu1  ;;  %v1896_v26 = vmax.f32 %v1895_v46, %v1779_v37  ;;  %v1938_v16 = vmax.f32 %v1937_v63, %v1781_v0  ;;  %v2016_v63 = vrot.slane %v2008_v50, %v3193_v20 }
 0x32f   : > { %v1787_v5 = vmax.f32 %v1550_v59, 0.0  ;;  %v1552_v6 = vadd.f32 %v1551_v1, %v3202_v32  ;;  %v1665_v7 = vadd.f32 %v1664_v60, %v3205_v33  ;;  %v1789_v10 = vmax.f32 %v1663_v2, 0.0 }
 0x330   : > { %v1553_v11 = vpop.f32.mrf.mxu0  ;;  %v1666_v4 = vpop.f32.mrf.mxu1  ;;  %v1917_v29 = vmax.f32 %v1916_v8, %v1780_v61  ;;  %v1959_v35 = vmax.f32 %v1958_v13, %v1782_v9 }
 0x331   : > { %v1788_v62 = vmax.f32 %v1552_v6, 0.0  ;;  %v1554_v12 = vadd.f32 %v1553_v11, %v3196_v23  ;;  %v1790_v25 = vmax.f32 %v1665_v7, 0.0  ;;  %v1667_v27 = vadd.f32 %v1666_v4, %v3199_v24 }
 0x332   : > { %v1555_v17 = vpop.f32.mrf.mxu0  ;;  %v1668_v28 = vpop.f32.mrf.mxu1  ;;  %v1897_v19 = vmax.f32 %v1896_v26, %v1787_v5  ;;  %v1939_v38 = vmax.f32 %v1938_v16, %v1789_v10  ;;  %v1799_v10 = vld [vmem:[%s2738_s8] sm:$0xff] }
 0x333   : > { %v1795_v40 = vmax.f32 %v1554_v12, 0.0  ;;  %v1556_v34 = vadd.f32 %v1555_v17, %v3202_v32  ;;  %v1797_v15 = vmax.f32 %v1667_v27, 0.0  ;;  %v1669_v43 = vadd.f32 %v1668_v28, %v3205_v33 }
 0x334   : > { %v1918_v14 = vmax.f32 %v1917_v29, %v1788_v62  ;;  %v1960_v47 = vmax.f32 %v1959_v35, %v1790_v25 }
 0x335   : > { %v1898_v30 = vmax.f32 %v1897_v19, %v1795_v40  ;;  %v1796_v23 = vmax.f32 %v1556_v34, 0.0  ;;  %v1940_v31 = vmax.f32 %v1939_v38, %v1797_v15  ;;  %v1798_v49 = vmax.f32 %v1669_v43, 0.0 }
 0x337   : > { %v1899_v36 = vrot.slane %v1898_v30, 4  ;;  %v1919_v24 = vmax.f32 %v1918_v14, %v1796_v23  ;;  %v1941_v22 = vrot.slane %v1940_v31, 4  ;;  %v1961_v18 = vmax.f32 %v1960_v47, %v1798_v49 }
 0x339   : > { %v1900_v51 = vmax.f32 %v1898_v30, %v1899_v36  ;;  %v1920_v39 = vrot.slane %v1919_v24, 4  ;;  %v1942_v52 = vmax.f32 %v1940_v31, %v1941_v22  ;;  %v1962_v54 = vrot.slane %v1961_v18, 4 }
 0x33b   : > { %v1901_v32 = vrot.slane %v1900_v51, 2  ;;  %v1921_v53 = vmax.f32 %v1919_v24, %v1920_v39  ;;  %v1943_v48 = vrot.slane %v1942_v52, 2  ;;  %v1963_v21 = vmax.f32 %v1961_v18, %v1962_v54 }
 0x33d   : > { %v1902_v56 = vmax.f32 %v1900_v51, %v1901_v32  ;;  %v1922_v33 = vrot.slane %v1921_v53, 2  ;;  %v1944_v57 = vmax.f32 %v1942_v52, %v1943_v48  ;;  %v1964_v41 = vrot.slane %v1963_v21, 2 }
 0x33f   : > { %v1903_v58 = vrot.slane %v1902_v56, 1  ;;  %v1923_v42 = vmax.f32 %v1921_v53, %v1922_v33  ;;  %v1945_v37 = vrot.slane %v1944_v57, 1  ;;  %v1965_v59 = vmax.f32 %v1963_v21, %v1964_v41 }
 0x341   : > { %v1924_v46 = vrot.slane %v1923_v42, 1  ;;  %v1966_v55 = vrot.slane %v1965_v59, 1  ;;  %v1904_v0 = vmax.f32 %v1902_v56, %v1903_v58  ;;  %v1946_v1 = vmax.f32 %v1944_v57, %v1945_v37 }
 0x343   : > { %v1925_v2 = vmax.f32 %v1923_v42, %v1924_v46  ;;  %v1967_v60 = vmax.f32 %v1965_v59, %v1966_v55 }
 0x345   : > { %v1978_v61 = vcombine.low %v1904_v0, %v1925_v2  ;;  %v1979_v5 = vcombine.low %v1946_v1, %v1967_v60 }
 0x347   : > { %v2000_v6 = vrot.slane %v1978_v61, %v3193_v20  ;;  %v2007_v7 = vrot.slane %v1979_v5, %v3193_v20 }
 0x349   : > { %v2009_v3 = vcombine.low %v2000_v6, %v2007_v7 }
 0x34b   : > { %v2023_v9 = vrot.slane %v2009_v3, %v3193_v20 }
 0x34d   : > { %v2024_v11 = vcombine.low %v2016_v63, %v2023_v9 }
 0x34f   : > { %v2026_v4 = vmax.f32 %v1799_v10, %v2024_v11 }
 0x351   : > { %2027 = vst [vmem:[%s2738_s8] sm:$0xff] %v2026_v4 }
 0x352 PF: > { %s20_s28 = sadd.s32 1, %s2576_s28   ;;  %s3322_s24 = smov %s2568_s26 }
 0x353   : > { %p17_p7 = scmp.ge.s32.totalorder %s20_s28, 6   ;;  %s3323_s25 = smov %s2572_s27 }
 0x354   : > { %s3324_s26 = smov %s3327_s12  ;;  %s3325_s27 = smov %s3331_s18 }
 0x355   :  { %19 = sbr.rel (!%p17_p7) target bundleno = 5 (0x5), region = 99 }
 0x35a   :  { %2047 = vsyncpa [#allocation3], 1 }
 0x35b   :  { %2049 = vsyncpa [#allocation3 + $0x1], 1 }
 0x35c   :  { %2050 = vsyncpa [#allocation5], 1 }
 0x35d   :  { %2051 = vsyncpa [#allocation8], 1 }

// kernel: pointnetfeat_forward.3
= control target key start
LH: loop header
LB: loop body
LE: loop exit
PB: predicated region body
PF: predicated region fallthrough
CT: control target
= control target key end

     0   :  { %s2403_s27 = smov 0   ;;  %s2405_s28 = smov 0   ;;  %s3160_s0 = inlined_call_operand.vmem [shape: f32[2,256,3], index: 0, kind: input, shape index: {}]   ;;  %s3161_s1 = inlined_call_operand.vmem [shape: f32[2,3,3], index: 1, kind: input, shape index: {}]   ;;  %s3162_s2 = inlined_call_operand.vmem [shape: f32[3,64], index: 2, kind: input, shape index: {}]   ;;  %s3163_s3 = inlined_call_operand.vmem [shape: f32[1,64], index: 3, kind: input, shape index: {}]   ;;  %s3164_s4 = inlined_call_operand.vmem [shape: bf16[64,128], index: 4, kind: input, shape index: {}]   ;;  %s3165_s5 = inlined_call_operand.vmem [shape: f32[1,128], index: 5, kind: input, shape index: {}]   ;;  %s3166_s6 = inlined_call_operand.vmem [shape: bf16[128,1024], index: 6, kind: input, shape index: {}]   ;;  %s3167_s7 = inlined_call_operand.vmem [shape: f32[1,1024], index: 7, kind: input, shape index: {}]   ;;  %s3168_s8 = inlined_call_operand.vmem [shape: f32[2,1,1024], index: 8, kind: output, shape index: {}]  }
   0x1   :  { %s2407_s29 = smov 0   ;;  %s2409_s30 = smov 0  }
   0x2   :  { %s2411_s9 = smov 0  }
   0x3 LB: > { %s27_s10 = sadd.s32 1, %s2343_s29  ;;  %s30_s11 = sadd.s32 1, %s2347_s30  ;;  %s2351_s9 = sphi %s2411_s9, %s18_s9   ;;  %s2347_s30 = sphi %s2409_s30, %s3172_s30   ;;  %s2343_s29 = sphi %s2407_s29, %s3171_s29   ;;  %s2339_s28 = sphi %s2405_s28, %s3170_s28   ;;  %s2335_s27 = sphi %s2403_s27, %s3169_s27  }
   0x4   : > { %p28_p0 = scmp.ge.s32.totalorder %s27_s10, 2  ;;  %p2056_p1 = scmp.ge.s32.totalorder %s2351_s9, 1 }
   0x5   : > { %p290_p2 = scmp.lt.s32.totalorder %s2351_s9, 5 }
   0x6   : > { %s3174_s10 = smov (%p28_p0, %s27_s10), 0  ;;  %s3176_s11 = smov (!%p28_p0, %s30_s11), %s2347_s30 }
   0x7   : > { %p291_p3 = pnand %p2056_p1, %p290_p2  ;;  %p32_p4 = scmp.ge.s32.totalorder %s3176_s11, 2 }
   0x8   : > { %s2057_s12 = sshll.u32 (!%p291_p3), %s2335_s27, 4  ;;  %p332_p5 = scmp.lt.s32.totalorder (!%p291_p3), %s2339_s28, 1 }
   0x9   : > { %s3178_s11 = smov (%p32_p4, %s3176_s11), 0  ;;  %294 = sbr.rel (%p291_p3) target bundleno = 990 (0x3de), region = 52 }
   0xa   : > { %p334_p6 = scmp.lt.s32.totalorder (!%p291_p3), %s2057_s12, 31  ;;  %p2062_p7 = scmp.ne.s32.totalorder (!%p291_p3), %s2335_s27, 0 }
   0xe   : > { %s3180_s28 = smov (!%p332_p5, %s2339_s28), 1  ;;  %s3182_s12 = smov (!%p334_p6, %s2057_s12), 31 }
   0xf   : > { %s2058_s13 = sshll.u32 %s3180_s28, 5  ;;  %s2060_s14 = sshll.u32 %s3180_s28, 2 }
  0x10   : > { %s337_s15 = sadd.s32 %s2058_s13, %s3182_s12  ;;  %s344_s18 = scalar_lea.vmem %s3161_s1, %s2060_s14 }
  0x11   : > { %s2059_s19 = sshll.u32 %s337_s15, 3  ;;  %s2061_s20 = sshll.u32 %s3180_s28, 3 }
  0x12   : > { %s2442_s23 = scalar_lea.vmem %s3160_s0, %s2059_s19  ;;  %s2447_s26 = scalar_lea.vmem %s3168_s8, %s2061_s20 }
  0x13   : > { %353 = sbr.rel (%p2062_p7) target bundleno = 26 (0x1a), region = 56 }
  0x18   : > { %v2353_v0 = vmov -inf  }
  0x19   : > { %354 = vst [vmem:[%s2447_s26] sm:$0xff] %v2353_v0 }
  0x1a PF: > { %v356_v1 = vld [vmem:[%s3162_s2] sm:$0x7]  ;;  %vm361_vm0 = vcmask 1042432   ;;  %vm357_vm1 = vcmask 23552   ;;  %v2354_v2 = vmov 0.0   ;;  %vm2355_vm2 = vmmov 0  }
  0x1b   : > { %2193 = vmatprep.subr.mxu0 %v2354_v2  ;;  %2195 = vmatprep.mubr.msk.f32.mxu0 %vm2355_vm2, %v2354_v2  ;;  %v355_v3 = vld [vmem:[%s344_s18] sm:$0x7]  ;;  %v2309_v5 = vld [vmem:[%s3164_s4 + $0x18] sm:$0xff]   ;;  %v436_v7 = vld [vmem:[%s2442_s23 + $0x8] sm:$0xff]  ;;  %vm717_vm3 = vcmask 523264  }
  0x1c   : > { %2194 = vmatpush3.msk.msra.mxu0 %vm361_vm0, %v356_v1  ;;  %v435_v4 = vld [vmem:[%s2442_s23] sm:$0xff]  ;;  %v437_v8 = vld [vmem:[%s2442_s23 + $0x10] sm:$0xff]  ;;  %v438_v10 = vld [vmem:[%s2442_s23 + $0x18] sm:$0xff] }
  0x1d   : > { %2196 = vmatmul.mubr.msk.f32.vlgmr.msra.gmra.mxu0 %vm357_vm1, %v355_v3  ;;  %2200 = vmatprep.mubr.msk.f32.mxu1 %vm357_vm1, %v435_v4  ;;  %v439_v11 = vld [vmem:[%s2442_s23 + $0x20] sm:$0xff]  ;;  %v440_v12 = vld [vmem:[%s2442_s23 + $0x28] sm:$0xff]  ;;  %v441_v13 = vld [vmem:[%s2442_s23 + $0x30] sm:$0xff] }
  0x1e   : > { %2224 = vmatprep.subr.bf16.mxu0 %v2309_v5  ;;  %v442_v14 = vld [vmem:[%s2442_s23 + $0x38] sm:$0xff]  ;;  %v443_v15 = vld [vmem:[%s2442_s23 + $0x40] sm:$0xff]  ;;  %v444_v16 = vld [vmem:[%s2442_s23 + $0x48] sm:$0xff] }
  0x1f   : > { %2225 = vmatpush3.bf16.msra.mxu0 %v2309_v5  ;;  %v445_v17 = vld [vmem:[%s2442_s23 + $0x50] sm:$0xff]  ;;  %v446_v18 = vld [vmem:[%s2442_s23 + $0x58] sm:$0xff]  ;;  %v447_v19 = vld [vmem:[%s2442_s23 + $0x60] sm:$0xff] }
  0x20   : > { %v448_v20 = vld [vmem:[%s2442_s23 + $0x68] sm:$0xff]  ;;  %v449_v21 = vld [vmem:[%s2442_s23 + $0x70] sm:$0xff]  ;;  %v450_v22 = vld [vmem:[%s2442_s23 + $0x78] sm:$0xff] }
  0x21   : > { %v2310_v23 = vld [vmem:[%s3164_s4 + $0x10] sm:$0xff]   ;;  %v2311_v24 = vld [vmem:[%s3164_s4 + $0x8] sm:$0xff]   ;;  %v2312_v25 = vld [vmem:[%s3164_s4] sm:$0xff]  }
  0x22   : > { %2226 = vmatprep.subr.bf16.mxu0 %v2310_v23  ;;  %v919_v26 = vld [vmem:[%s3166_s6 + $0x1c0] sm:$0xff]  ;;  %v2511_v28 = vld [vmem:[%s3166_s6 + $0x1c8] sm:$0xff] }
  0x23   : > { %2227 = vmatpush3.bf16.msra.mxu0 %v2310_v23  ;;  %v923_v27 = vld [vmem:[%s3166_s6 + $0x1e0] sm:$0xff]  ;;  %v924_v31 = vld [vmem:[%s3166_s6 + $0x1e8] sm:$0xff] }
  0x24   : > { %2228 = vmatprep.subr.bf16.mxu0 %v2311_v24  ;;  %v2152_v29 = vcombine.low %v919_v26, %v923_v27  ;;  %v2153_v30 = vcombine.high %v919_v26, %v923_v27  ;;  %v911_v32 = vld [vmem:[%s3166_s6 + $0x180] sm:$0xff]  ;;  %v2154_v34 = vcombine.low %v2511_v28, %v924_v31  ;;  %v2155_v35 = vcombine.high %v2511_v28, %v924_v31  ;;  %v912_v63 = vld [vmem:[%s3166_s6 + $0x188] sm:$0xff] }
  0x25   : > { %v915_v33 = vld [vmem:[%s3166_s6 + $0x1a0] sm:$0xff]  ;;  %v916_v0 = vld [vmem:[%s3166_s6 + $0x1a8] sm:$0xff] }
  0x26   : > { %v2145_v36 = vcombine.high %v911_v32, %v915_v33  ;;  %v903_v37 = vld [vmem:[%s3166_s6 + $0x140] sm:$0xff]  ;;  %v2144_v39 = vcombine.low %v911_v32, %v915_v33  ;;  %v888_v32 = vld [vmem:[%s3166_s6 + $0xc8] sm:$0xff] }
  0x27   : > { %2229 = vmatpush3.bf16.msra.mxu0 %v2311_v24  ;;  %v907_v38 = vld [vmem:[%s3166_s6 + $0x160] sm:$0xff]  ;;  %v892_v33 = vld [vmem:[%s3166_s6 + $0xe8] sm:$0xff] }
  0x28   : > { %2230 = vmatprep.subr.bf16.mxu0 %v2312_v25  ;;  %v2137_v40 = vcombine.high %v903_v37, %v907_v38  ;;  %v895_v41 = vld [vmem:[%s3166_s6 + $0x100] sm:$0xff]  ;;  %v2136_v43 = vcombine.low %v903_v37, %v907_v38 }
  0x29   : > { %v899_v42 = vld [vmem:[%s3166_s6 + $0x120] sm:$0xff] }
  0x2a   : > { %v2129_v44 = vcombine.high %v895_v41, %v899_v42  ;;  %v887_v45 = vld [vmem:[%s3166_s6 + $0xc0] sm:$0xff]  ;;  %v2128_v47 = vcombine.low %v895_v41, %v899_v42  ;;  %v2123_v41 = vcombine.high %v888_v32, %v892_v33 }
  0x2b   : > { %2231 = vmatpush3.bf16.msra.mxu0 %v2312_v25  ;;  %v891_v46 = vld [vmem:[%s3166_s6 + $0xe0] sm:$0xff] }
  0x2c   : > { %1402 = vmatprep.subr.bf16.mxu0 %v2155_v35  ;;  %v2121_v48 = vcombine.high %v887_v45, %v891_v46  ;;  %v2120_v49 = vcombine.low %v887_v45, %v891_v46  ;;  %v2545_v50 = vld [vmem:[%s3163_s3] ss:$0 sm:$0xff]  ;;  %v2122_v46 = vcombine.low %v888_v32, %v892_v33 }
  0xdd   : > { %v431_v6 = vpop.f32.mrf.mxu0 }
  0xde   : > { %2198 = vmatprep.subr.msk.mxu1 %vm361_vm0, %v431_v6 }
  0xdf   : > { %v2197_v9 = vpop.f32.mrf.mxu0  ;;  %2199 = vmatpush3.msk.msra.mxu1 %vm361_vm0, %v431_v6 }
  0xe0   : > { %2201 = vmatmul.mubr.msk.f32.vlgmr.msra.gmra.mxu1 %vm357_vm1, %v436_v7  ;;  %1289 = vmatprep.subr.bf16.mxu1 %v2153_v30 }
  0xe1   : > { %2203 = vmatprep.mubr.msk.f32.mxu1 %vm357_vm1, %v437_v8  ;;  %1290 = vmatpush1.bf16.msra.mxu1 %v2152_v29  ;;  %v2147_v8 = vcombine.high %v912_v63, %v916_v0 }
  0xe2   : > { %1291 = vmatprep.subr.bf16.mxu1 %v2145_v36 }
  0xe4   : > { %2204 = vmatmul.mubr.msk.f32.gmra.mxu1 %vm357_vm1, %v438_v10  ;;  %v904_v10 = vld [vmem:[%s3166_s6 + $0x148] sm:$0xff] }
  0xe5   : > { %2206 = vmatprep.mubr.msk.f32.mxu1 %vm357_vm1, %v439_v11  ;;  %1292 = vmatpush1.bf16.msra.mxu1 %v2144_v39  ;;  %v908_v11 = vld [vmem:[%s3166_s6 + $0x168] sm:$0xff] }
  0xe6   : > { %1293 = vmatprep.subr.bf16.mxu1 %v2137_v40  ;;  %v2138_v26 = vcombine.low %v904_v10, %v908_v11 }
  0xe8   : > { %2207 = vmatmul.mubr.msk.f32.gmra.mxu1 %vm357_vm1, %v440_v12 }
  0xe9   : > { %2209 = vmatprep.mubr.msk.f32.mxu1 %vm357_vm1, %v441_v13  ;;  %1294 = vmatpush1.bf16.msra.mxu1 %v2136_v43 }
  0xea   : > { %1295 = vmatprep.subr.bf16.mxu1 %v2129_v44 }
  0xec   : > { %2210 = vmatmul.mubr.msk.f32.gmra.mxu1 %vm357_vm1, %v442_v14 }
  0xed   : > { %2212 = vmatprep.mubr.msk.f32.mxu1 %vm357_vm1, %v443_v15  ;;  %1296 = vmatpush1.bf16.msra.mxu1 %v2128_v47  ;;  %v2146_v15 = vcombine.low %v912_v63, %v916_v0 }
  0xee   : > { %1297 = vmatprep.subr.bf16.mxu1 %v2121_v48 }
  0xf0   : > { %2213 = vmatmul.mubr.msk.f32.gmra.mxu1 %vm357_vm1, %v444_v16 }
  0xf1   : > { %2215 = vmatprep.mubr.msk.f32.mxu1 %vm357_vm1, %v445_v17  ;;  %1298 = vmatpush1.bf16.msra.mxu1 %v2120_v49 }
  0xf4   : > { %2216 = vmatmul.mubr.msk.f32.gmra.mxu1 %vm357_vm1, %v446_v18 }
  0xf5   : > { %2218 = vmatprep.mubr.msk.f32.mxu1 %vm357_vm1, %v447_v19  ;;  %v2139_v19 = vcombine.high %v904_v10, %v908_v11  ;;  %v863_v11 = vld [vmem:[%s3166_s6] sm:$0xff] }
  0xf8   : > { %2219 = vmatmul.mubr.msk.f32.gmra.mxu1 %vm357_vm1, %v448_v20 }
  0xf9   : > { %2221 = vmatprep.mubr.msk.f32.mxu1 %vm357_vm1, %v449_v21  ;;  %v896_v21 = vld [vmem:[%s3166_s6 + $0x108] sm:$0xff] }
  0xfc   : > { %2222 = vmatmul.mubr.msk.f32.gmra.mxu1 %vm357_vm1, %v450_v22  ;;  %v900_v22 = vld [vmem:[%s3166_s6 + $0x128] sm:$0xff] }
  0xfd   : > { %v2131_v30 = vcombine.high %v896_v21, %v900_v22  ;;  %v2130_v37 = vcombine.low %v896_v21, %v900_v22  ;;  %v925_v21 = vld [vmem:[%s3166_s6 + $0x1f0] sm:$0xff] }
 0x1a0   : > { %v2202_v51 = vpop.f32.mrf.mxu1 }
 0x1a1   : > { %v581_v52 = vadd.f32 %v2202_v51, %v2545_v50 }
 0x1a2   : > { %v575_v53 = vpop.f32.mrf.mxu1 }
 0x1a3   : > { %v576_v54 = vadd.f32 %v2545_v50, %v575_v53  ;;  %v655_v56 = vmax.f32 %v581_v52, 0.0 }
 0x1a4   : > { %v2205_v55 = vpop.f32.mrf.mxu1 }
 0x1a5   : > { %v654_v57 = vmax.f32 %v576_v54, 0.0  ;;  %v591_v58 = vadd.f32 %v2205_v55, %v2545_v50 }
 0x1a6   : > { %v585_v59 = vpop.f32.mrf.mxu1 }
 0x1a7   : > { %v670_v60 = vpack.c.bf16 %v655_v56, %v654_v57  ;;  %v586_v61 = vadd.f32 %v2545_v50, %v585_v59  ;;  %v657_v1 = vmax.f32 %v591_v58, 0.0 }
 0x1a8   : > { %v2208_v62 = vpop.f32.mrf.mxu1 }
 0x1a9   : > { %v656_v2 = vmax.f32 %v586_v61, 0.0  ;;  %v601_v3 = vadd.f32 %v2208_v62, %v2545_v50  ;;  %2232 = vmatprep.mubr.msk.bf16.mxu0 %vm717_vm3, %v670_v60  ;;  %v879_v60 = vld [vmem:[%s3166_s6 + $0x80] sm:$0xff]  ;;  %v880_v62 = vld [vmem:[%s3166_s6 + $0x88] sm:$0xff] }
 0x1aa   : > { %v595_v4 = vpop.f32.mrf.mxu1  ;;  %v883_v61 = vld [vmem:[%s3166_s6 + $0xa0] sm:$0xff] }
 0x1ab   : > { %v671_v5 = vpack.c.bf16 %v657_v1, %v656_v2  ;;  %v659_v6 = vmax.f32 %v601_v3, 0.0  ;;  %v596_v7 = vadd.f32 %v2545_v50, %v595_v4  ;;  %v2113_v63 = vcombine.high %v879_v60, %v883_v61  ;;  %v871_v3 = vld [vmem:[%s3166_s6 + $0x40] sm:$0xff] }
 0x1ac   : > { %v2211_v9 = vpop.f32.mrf.mxu1  ;;  %v2112_v0 = vcombine.low %v879_v60, %v883_v61  ;;  %v875_v4 = vld [vmem:[%s3166_s6 + $0x60] sm:$0xff]  ;;  %v897_v60 = vld [vmem:[%s3166_s6 + $0x110] sm:$0xff] }
 0x1ad   : > { %v658_v12 = vmax.f32 %v596_v7, 0.0  ;;  %v611_v13 = vadd.f32 %v2211_v9, %v2545_v50  ;;  %2233 = vmatmul.mubr.msk.bf16.vlgmr.msra.gmra.mxu0 %vm717_vm3, %v671_v5  ;;  %1299 = vmatprep.subr.bf16.mxu1 %v2113_v63  ;;  %v872_v5 = vld [vmem:[%s3166_s6 + $0x48] sm:$0xff]  ;;  %v901_v61 = vld [vmem:[%s3166_s6 + $0x130] sm:$0xff]  ;;  %v898_v63 = vld [vmem:[%s3166_s6 + $0x118] sm:$0xff] }
 0x1ae   : > { %v605_v14 = vpop.f32.mrf.mxu1  ;;  %1403 = vmatpush1.bf16.msra.mxu0 %v2154_v34  ;;  %1300 = vmatpush1.bf16.msra.mxu1 %v2112_v0  ;;  %v876_v7 = vld [vmem:[%s3166_s6 + $0x68] sm:$0xff] }
 0x1af   : > { %v672_v16 = vpack.c.bf16 %v659_v6, %v658_v12  ;;  %v661_v17 = vmax.f32 %v611_v13, 0.0  ;;  %v606_v18 = vadd.f32 %v2545_v50, %v605_v14  ;;  %1404 = vmatprep.subr.bf16.mxu0 %v2147_v8  ;;  %v2105_v6 = vcombine.high %v871_v3, %v875_v4  ;;  %v867_v12 = vld [vmem:[%s3166_s6 + $0x20] sm:$0xff]  ;;  %v864_v13 = vld [vmem:[%s3166_s6 + $0x8] sm:$0xff] }
 0x1b0   : > { %v2214_v20 = vpop.f32.mrf.mxu1  ;;  %v2104_v8 = vcombine.low %v871_v3, %v875_v4  ;;  %v2106_v9 = vcombine.low %v872_v5, %v876_v7  ;;  %v2107_v10 = vcombine.high %v872_v5, %v876_v7  ;;  %v2097_v14 = vcombine.high %v863_v11, %v867_v12  ;;  %v889_v7 = vld [vmem:[%s3166_s6 + $0xd0] sm:$0xff] }
 0x1b1   : > { %v660_v23 = vmax.f32 %v606_v18, 0.0  ;;  %2236 = vmatprep.mubr.msk.bf16.mxu0 %vm717_vm3, %v672_v16  ;;  %v621_v24 = vadd.f32 %v2214_v20, %v2545_v50  ;;  %1301 = vmatprep.subr.bf16.mxu1 %v2105_v6  ;;  %v2096_v16 = vcombine.low %v863_v11, %v867_v12  ;;  %v921_v20 = vld [vmem:[%s3166_s6 + $0x1d0] sm:$0xff]  ;;  %v2133_v5 = vcombine.high %v897_v60, %v901_v61 }
 0x1b2   : > { %v615_v25 = vpop.f32.mrf.mxu1  ;;  %1405 = vmatpush1.bf16.msra.mxu0 %v2146_v15  ;;  %1302 = vmatpush1.bf16.msra.mxu1 %v2104_v8  ;;  %v868_v15 = vld [vmem:[%s3166_s6 + $0x28] sm:$0xff]  ;;  %v2156_v22 = vcombine.low %v921_v20, %v925_v21  ;;  %v893_v8 = vld [vmem:[%s3166_s6 + $0xf0] sm:$0xff]  ;;  %v2132_v12 = vcombine.low %v897_v60, %v901_v61 }
 0x1b3   : > { %v673_v27 = vpack.c.bf16 %v661_v17, %v660_v23  ;;  %v663_v28 = vmax.f32 %v621_v24, 0.0  ;;  %v616_v29 = vadd.f32 %v2545_v50, %v615_v25  ;;  %1406 = vmatprep.subr.bf16.mxu0 %v2139_v19  ;;  %v2098_v17 = vcombine.low %v864_v13, %v868_v15  ;;  %1303 = vmatprep.subr.bf16.mxu1 %v2097_v14  ;;  %v922_v24 = vld [vmem:[%s3166_s6 + $0x1d8] sm:$0xff] }
 0x1b4   : > { %v2217_v31 = vpop.f32.mrf.mxu1  ;;  %v2099_v18 = vcombine.high %v864_v13, %v868_v15  ;;  %v2356_v19 = vmov 0   ;;  %v2157_v23 = vcombine.high %v921_v20, %v925_v21  ;;  %v926_v25 = vld [vmem:[%s3166_s6 + $0x1f8] sm:$0xff]  ;;  %v2125_v14 = vcombine.high %v889_v7, %v893_v8  ;;  %v885_v20 = vld [vmem:[%s3166_s6 + $0xb0] sm:$0xff] }
 0x1b5   : > { %2237 = vmatmul.mubr.msk.bf16.gmra.mxu0 %vm717_vm3, %v673_v27  ;;  %v662_v34 = vmax.f32 %v616_v29, 0.0  ;;  %v631_v35 = vadd.f32 %v2217_v31, %v2545_v50  ;;  %1321 = vmatprep.mubr.bf16.mxu1 %v2356_v19  ;;  %v2647_v27 = vcombine.high %v922_v24, %v926_v25  ;;  %v2124_v21 = vcombine.low %v889_v7, %v893_v8 }
 0x1b6   : > { %v625_v36 = vpop.f32.mrf.mxu1  ;;  %1407 = vmatpush1.bf16.msra.mxu0 %v2138_v26  ;;  %1304 = vmatpush1.bf16.msra.mxu1 %v2096_v16  ;;  %v2645_v26 = vcombine.low %v922_v24, %v926_v25  ;;  %v890_v16 = vld [vmem:[%s3166_s6 + $0xd8] sm:$0xff] }
 0x1b7   : > { %v674_v38 = vpack.c.bf16 %v663_v28, %v662_v34  ;;  %v665_v39 = vmax.f32 %v631_v35, 0.0  ;;  %v626_v40 = vadd.f32 %v2545_v50, %v625_v36  ;;  %1408 = vmatprep.subr.bf16.mxu0 %v2131_v30  ;;  %1515 = vmatprep.subr.bf16.mxu1 %v2157_v23  ;;  %v2653_v30 = vld [vmem:[%s3165_s5] ss:$0 sm:$0xff]  ;;  %v913_v36 = vld [vmem:[%s3166_s6 + $0x190] sm:$0xff]  ;;  %v886_v23 = vld [vmem:[%s3166_s6 + $0xb8] sm:$0xff] }
 0x1b8   : > { %v2220_v42 = vpop.f32.mrf.mxu1 }
 0x1b9   : > { %v664_v43 = vmax.f32 %v626_v40, 0.0  ;;  %2240 = vmatprep.mubr.msk.bf16.mxu0 %vm717_vm3, %v674_v38  ;;  %v641_v44 = vadd.f32 %v2220_v42, %v2545_v50  ;;  %v918_v42 = vld [vmem:[%s3166_s6 + $0x1b8] sm:$0xff] }
 0x1ba   : > { %v635_v45 = vpop.f32.mrf.mxu1  ;;  %1409 = vmatpush1.bf16.msra.mxu0 %v2130_v37  ;;  %v917_v37 = vld [vmem:[%s3166_s6 + $0x1b0] sm:$0xff] }
 0x1bb   : > { %v675_v47 = vpack.c.bf16 %v665_v39, %v664_v43  ;;  %v667_v48 = vmax.f32 %v641_v44, 0.0  ;;  %v636_v49 = vadd.f32 %v2545_v50, %v635_v45  ;;  %1410 = vmatprep.subr.bf16.mxu0 %v2123_v41  ;;  %v914_v41 = vld [vmem:[%s3166_s6 + $0x198] sm:$0xff]  ;;  %v2149_v45 = vcombine.high %v913_v36, %v917_v37 }
 0x1bc   : > { %v2223_v51 = vpop.f32.mrf.mxu1 }
 0x1bd   : > { %2241 = vmatmul.mubr.msk.bf16.gmra.mxu0 %vm717_vm3, %v675_v47  ;;  %v666_v52 = vmax.f32 %v636_v49, 0.0  ;;  %v651_v53 = vadd.f32 %v2223_v51, %v2545_v50  ;;  %v905_v47 = vld [vmem:[%s3166_s6 + $0x150] sm:$0xff]  ;;  %v2683_v51 = vcombine.high %v914_v41, %v918_v42 }
 0x1be   : > { %v645_v54 = vpop.f32.mrf.mxu1  ;;  %1411 = vmatpush1.bf16.msra.mxu0 %v2122_v46 }
 0x1bf   : > { %v676_v55 = vpack.c.bf16 %v667_v48, %v666_v52  ;;  %v669_v56 = vmax.f32 %v651_v53, 0.0  ;;  %v646_v57 = vadd.f32 %v2545_v50, %v645_v54  ;;  %v884_v50 = vld [vmem:[%s3166_s6 + $0xa8] sm:$0xff]  ;;  %v909_v48 = vld [vmem:[%s3166_s6 + $0x170] sm:$0xff]  ;;  %v2148_v52 = vcombine.low %v913_v36, %v917_v37 }
 0x1c0   : > { %v2114_v1 = vcombine.low %v880_v62, %v884_v50  ;;  %v2115_v2 = vcombine.high %v880_v62, %v884_v50  ;;  %v2141_v54 = vcombine.high %v905_v47, %v909_v48  ;;  %v2140_v62 = vcombine.low %v905_v47, %v909_v48  ;;  %v902_v50 = vld [vmem:[%s3166_s6 + $0x138] sm:$0xff]  ;;  %v869_v47 = vld [vmem:[%s3166_s6 + $0x30] sm:$0xff] }
 0x1c1   : > { %v668_v58 = vmax.f32 %v646_v57, 0.0  ;;  %2244 = vmatprep.mubr.msk.bf16.mxu0 %vm717_vm3, %v676_v55  ;;  %v906_v57 = vld [vmem:[%s3166_s6 + $0x158] sm:$0xff]  ;;  %v2734_v15 = vcombine.low %v898_v63, %v902_v50 }
 0x1c2   : > { %1412 = vmatprep.subr.bf16.mxu0 %v2115_v2 }
 0x1c3   : > { %v677_v59 = vpack.c.bf16 %v669_v56, %v668_v58  ;;  %1413 = vmatpush1.bf16.msra.mxu0 %v2114_v1  ;;  %v2688_v56 = vcombine.low %v914_v41, %v918_v42  ;;  %v910_v58 = vld [vmem:[%s3166_s6 + $0x178] sm:$0xff] }
 0x1c4   : > { %1414 = vmatprep.subr.bf16.mxu0 %v2107_v10  ;;  %v2713_v3 = vcombine.high %v906_v57, %v910_v58  ;;  %v2718_v6 = vcombine.low %v906_v57, %v910_v58 }
 0x1c5   : > { %2245 = vmatmul.mubr.msk.bf16.gmra.mxu0 %vm717_vm3, %v677_v59 }
 0x1c6   : > { %1434 = vmatprep.mubr.bf16.mxu0 %v2356_v19 }
 0x1c7   : > { %1415 = vmatpush1.bf16.msra.mxu0 %v2106_v9  ;;  %v2728_v9 = vcombine.high %v898_v63, %v902_v50 }
 0x1c8   : > { %1416 = vmatprep.subr.bf16.mxu0 %v2099_v18  ;;  %v881_v18 = vld [vmem:[%s3166_s6 + $0x90] sm:$0xff] }
 0x1cb   : > { %1417 = vmatpush1.bf16.msra.mxu0 %v2098_v17  ;;  %v894_v17 = vld [vmem:[%s3166_s6 + $0xf8] sm:$0xff] }
 0x1cc   : > { %1628 = vmatprep.subr.bf16.mxu0 %v2647_v27 }
 0x26d   : > { %v2234_v28 = vpop.f32.mrf.mxu0 }
 0x26e   : > { %v785_v49 = vadd.f32 %v2234_v28, %v2653_v30 }
 0x26f   : > { %v776_v29 = vpop.f32.mrf.mxu0 }
 0x270   : > { %v777_v32 = vadd.f32 %v2653_v30, %v776_v29  ;;  %v841_v59 = vmax.f32 %v785_v49, 0.0  ;;  %v2760_v29 = vcombine.high %v890_v16, %v894_v17  ;;  %v866_v49 = vld [vmem:[%s3166_s6 + $0x18] sm:$0xff] }
 0x271   : > { %v2235_v31 = vpop.f32.mrf.mxu0 }
 0x272   : > { %v839_v38 = vmax.f32 %v777_v32, 0.0  ;;  %v788_v43 = vadd.f32 %v2235_v31, %v2653_v30  ;;  %v2117_v32 = vcombine.high %v881_v18, %v885_v20 }
 0x273   : > { %v779_v33 = vpop.f32.mrf.mxu0 }
 0x274   : > { %v780_v34 = vadd.f32 %v2653_v30, %v779_v33  ;;  %v842_v53 = vmax.f32 %v788_v43, 0.0  ;;  %v2763_v33 = vcombine.low %v890_v16, %v894_v17  ;;  %v874_v43 = vld [vmem:[%s3166_s6 + $0x58] sm:$0xff] }
 0x275   : > { %v2657_v35 = vpop.f32.mrf.mxu0 }
 0x276   : > { %v840_v39 = vmax.f32 %v780_v34, 0.0  ;;  %v2709_v0 = vpack.c.bf16 %v842_v53, %v841_v59  ;;  %v801_v24 = vadd.f32 %v2657_v35, %v2653_v30  ;;  %v873_v34 = vld [vmem:[%s3166_s6 + $0x50] sm:$0xff] }
 0x277   : > { %v792_v40 = vpop.f32.mrf.mxu0  ;;  %v877_v35 = vld [vmem:[%s3166_s6 + $0x70] sm:$0xff] }
 0x278   : > { %v2672_v44 = vpack.c.bf16 %v840_v39, %v839_v38  ;;  %v793_v1 = vadd.f32 %v2653_v30, %v792_v40  ;;  %v845_v37 = vmax.f32 %v801_v24, 0.0  ;;  %v2116_v39 = vcombine.low %v881_v18, %v885_v20 }
 0x279   : > { %v2239_v46 = vpop.f32.mrf.mxu0  ;;  %v2109_v41 = vcombine.high %v873_v34, %v877_v35  ;;  %v2108_v48 = vcombine.low %v873_v34, %v877_v35 }
 0x27a   : > { %1322 = vmatmul.mubr.bf16.vlgmr.msra.gmra.mxu1 %v2672_v44  ;;  %1435 = vmatmul.mubr.bf16.vlgmr.msra.gmra.mxu0 %v2672_v44  ;;  %v843_v10 = vmax.f32 %v793_v1, 0.0  ;;  %v804_v25 = vadd.f32 %v2239_v46, %v2653_v30  ;;  %v865_v46 = vld [vmem:[%s3166_s6 + $0x10] sm:$0xff] }
 0x27b   : > { %1516 = vmatpush1.bf16.msra.mxu1 %v2156_v22  ;;  %1331 = vmatprep.mubr.bf16.mxu1 %v2356_v19  ;;  %v795_v55 = vpop.f32.mrf.mxu0  ;;  %v882_v22 = vld [vmem:[%s3166_s6 + $0x98] sm:$0xff]  ;;  %v2101_v59 = vcombine.high %v865_v46, %v869_v47  ;;  %v2100_v50 = vcombine.low %v865_v46, %v869_v47 }
 0x27c   : > { %1444 = vmatprep.mubr.bf16.mxu0 %v2356_v19  ;;  %1517 = vmatprep.subr.bf16.mxu1 %v2149_v45  ;;  %v796_v2 = vadd.f32 %v2653_v30, %v795_v55  ;;  %v2773_v36 = vcombine.high %v882_v22, %v886_v23  ;;  %v846_v38 = vmax.f32 %v804_v25, 0.0  ;;  %v2779_v42 = vcombine.low %v882_v22, %v886_v23  ;;  %v878_v45 = vld [vmem:[%s3166_s6 + $0x78] sm:$0xff] }
 0x27d   : > { %1629 = vmatpush1.bf16.msra.mxu0 %v2645_v26  ;;  %v2715_v4 = vpop.f32.mrf.mxu0  ;;  %v2804_v57 = vcombine.high %v874_v43, %v878_v45  ;;  %v2807_v60 = vcombine.low %v874_v43, %v878_v45 }
 0x27e   : > { %1630 = vmatprep.subr.bf16.mxu0 %v2683_v51  ;;  %v844_v11 = vmax.f32 %v796_v2, 0.0  ;;  %v2800_v53 = vpack.c.bf16 %v846_v38, %v845_v37 }
 0x27f   : > { %1518 = vmatpush1.bf16.msra.mxu1 %v2148_v52  ;;  %v808_v13 = vpop.f32.mrf.mxu0  ;;  %v870_v52 = vld [vmem:[%s3166_s6 + $0x38] sm:$0xff] }
 0x280   : > { %1519 = vmatprep.subr.bf16.mxu1 %v2141_v54  ;;  %v2758_v28 = vpack.c.bf16 %v844_v11, %v843_v10  ;;  %v809_v54 = vadd.f32 %v2653_v30, %v808_v13  ;;  %v2811_v61 = vcombine.high %v866_v49, %v870_v52  ;;  %v2817_v2 = vcombine.low %v866_v49, %v870_v52 }
 0x281   : > { %1631 = vmatpush1.bf16.msra.mxu0 %v2688_v56  ;;  %v2243_v31 = vpop.f32.mrf.mxu0 }
 0x282   : > { %1332 = vmatmul.mubr.bf16.gmra.mxu1 %v2709_v0  ;;  %1445 = vmatmul.mubr.bf16.gmra.mxu0 %v2709_v0  ;;  %v820_v7 = vadd.f32 %v2243_v31, %v2653_v30 }
 0x283   : > { %1341 = vmatprep.mubr.bf16.mxu1 %v2356_v19  ;;  %1454 = vmatprep.mubr.bf16.mxu0 %v2356_v19  ;;  %v811_v40 = vpop.f32.mrf.mxu0 }
 0x284   : > { %1520 = vmatpush1.bf16.msra.mxu1 %v2140_v62  ;;  %1632 = vmatprep.subr.bf16.mxu0 %v2713_v3  ;;  %v812_v55 = vadd.f32 %v2653_v30, %v811_v40  ;;  %v847_v62 = vmax.f32 %v809_v54, 0.0 }
 0x285   : > { %1521 = vmatprep.subr.bf16.mxu1 %v2133_v5  ;;  %1633 = vmatpush1.bf16.msra.mxu0 %v2718_v6  ;;  %v2246_v58 = vpop.f32.mrf.mxu0  ;;  %v817_v5 = vadd.f32 %v2715_v4, %v2653_v30  ;;  %v850_v4 = vmax.f32 %v820_v7, 0.0 }
 0x286   : > { %1634 = vmatprep.subr.bf16.mxu0 %v2728_v9  ;;  %v848_v63 = vmax.f32 %v812_v55, 0.0  ;;  %v833_v18 = vadd.f32 %v2246_v58, %v2653_v30 }
 0x287   : > { %v824_v1 = vpop.f32.mrf.mxu0  ;;  %v849_v11 = vmax.f32 %v817_v5, 0.0 }
 0x288   : > { %1522 = vmatpush1.bf16.msra.mxu1 %v2132_v12  ;;  %v2823_v8 = vpack.c.bf16 %v848_v63, %v847_v62  ;;  %v853_v22 = vmax.f32 %v833_v18, 0.0 }
 0x289   : > { %1523 = vmatprep.subr.bf16.mxu1 %v2125_v14  ;;  %1635 = vmatpush1.bf16.msra.mxu0 %v2734_v15  ;;  %v2247_v10 = vpop.f32.mrf.mxu0  ;;  %v860_v13 = vpack.c.bf16 %v850_v4, %v849_v11  ;;  %v825_v14 = vadd.f32 %v2653_v30, %v824_v1 }
 0x28a   : > { %1342 = vmatmul.mubr.bf16.gmra.mxu1 %v2758_v28  ;;  %1455 = vmatmul.mubr.bf16.gmra.mxu0 %v2758_v28  ;;  %v836_v20 = vadd.f32 %v2247_v10, %v2653_v30 }
 0x28b   : > { %1351 = vmatprep.mubr.bf16.mxu1 %v2356_v19  ;;  %1464 = vmatprep.mubr.bf16.mxu0 %v2356_v19  ;;  %v827_v12 = vpop.f32.mrf.mxu0 }
 0x28c   : > { %1524 = vmatpush1.bf16.msra.mxu1 %v2124_v21  ;;  %1636 = vmatprep.subr.bf16.mxu0 %v2760_v29  ;;  %v828_v16 = vadd.f32 %v2653_v30, %v827_v12  ;;  %v854_v23 = vmax.f32 %v836_v20, 0.0 }
 0x28d   : > { %1525 = vmatprep.subr.bf16.mxu1 %v2117_v32  ;;  %1637 = vmatpush1.bf16.msra.mxu0 %v2763_v33 }
 0x28e   : > { %1638 = vmatprep.subr.bf16.mxu0 %v2773_v36  ;;  %v852_v17 = vmax.f32 %v828_v16, 0.0  ;;  %v862_v24 = vpack.c.bf16 %v854_v23, %v853_v22 }
 0x290   : > { %1526 = vmatpush1.bf16.msra.mxu1 %v2116_v39 }
 0x291   : > { %1527 = vmatprep.subr.bf16.mxu1 %v2109_v41  ;;  %1639 = vmatpush1.bf16.msra.mxu0 %v2779_v42 }
 0x292   : > { %1352 = vmatmul.mubr.bf16.gmra.mxu1 %v2800_v53  ;;  %1465 = vmatmul.mubr.bf16.gmra.mxu0 %v2800_v53 }
 0x293   : > { %1361 = vmatprep.mubr.bf16.mxu1 %v2356_v19  ;;  %1474 = vmatprep.mubr.bf16.mxu0 %v2356_v19 }
 0x294   : > { %1528 = vmatpush1.bf16.msra.mxu1 %v2108_v48  ;;  %1640 = vmatprep.subr.bf16.mxu0 %v2804_v57 }
 0x295   : > { %1529 = vmatprep.subr.bf16.mxu1 %v2101_v59  ;;  %1641 = vmatpush1.bf16.msra.mxu0 %v2807_v60 }
 0x296   : > { %1642 = vmatprep.subr.bf16.mxu0 %v2811_v61 }
 0x298   : > { %1530 = vmatpush1.bf16.msra.mxu1 %v2100_v50 }
 0x299   : > { %1643 = vmatpush1.bf16.msra.mxu0 %v2817_v2  ;;  %2248 = vmatprep.subr.bf16.mxu1 %v2647_v27  ;;  %v851_v27 = vmax.f32 %v825_v14, 0.0 }
 0x29a   : > { %1362 = vmatmul.mubr.bf16.gmra.mxu1 %v2823_v8  ;;  %1475 = vmatmul.mubr.bf16.gmra.mxu0 %v2823_v8 }
 0x29b   : > { %1371 = vmatprep.mubr.bf16.mxu1 %v2356_v19  ;;  %1484 = vmatprep.mubr.bf16.mxu0 %v2356_v19  ;;  %v861_v21 = vpack.c.bf16 %v852_v17, %v851_v27 }
 0x2a2   : > { %1372 = vmatmul.mubr.bf16.gmra.mxu1 %v860_v13  ;;  %1485 = vmatmul.mubr.bf16.gmra.mxu0 %v860_v13 }
 0x2a3   : > { %1381 = vmatprep.mubr.bf16.mxu1 %v2356_v19  ;;  %1494 = vmatprep.mubr.bf16.mxu0 %v2356_v19 }
 0x2aa   : > { %1382 = vmatmul.mubr.bf16.gmra.mxu1 %v861_v21  ;;  %1495 = vmatmul.mubr.bf16.gmra.mxu0 %v861_v21 }
 0x2ab   : > { %1391 = vmatprep.mubr.bf16.mxu1 %v2356_v19  ;;  %1504 = vmatprep.mubr.bf16.mxu0 %v2356_v19 }
 0x2b2   : > { %1392 = vmatmul.mubr.bf16.gmra.mxu1 %v862_v24  ;;  %1505 = vmatmul.mubr.bf16.gmra.mxu0 %v862_v24 }
 0x2b3   : > { %1547 = vmatprep.mubr.bf16.mxu1 %v2356_v19  ;;  %1660 = vmatprep.mubr.bf16.mxu0 %v2356_v19 }
 0x2ba   : > { %1548 = vmatmul.mubr.bf16.vlgmr.msra.gmra.mxu1 %v2672_v44  ;;  %1661 = vmatmul.mubr.bf16.vlgmr.msra.gmra.mxu0 %v2672_v44 }
 0x2bb   : > { %2256 = vmatpush1.bf16.msra.mxu1 %v2645_v26  ;;  %1557 = vmatprep.mubr.bf16.mxu1 %v2356_v19  ;;  %v929_v26 = vlaneseq }
 0x2bc   : > { %2249 = vmatprep.subr.bf16.mxu1 %v2683_v51  ;;  %1670 = vmatprep.mubr.bf16.mxu0 %v2356_v19 }
 0x2bd   : > { %v2880_v30 = vshrl.u32 %v929_v26, 7 }
 0x2bf   : > { %2257 = vmatpush1.bf16.msra.mxu1 %v2688_v56  ;;  %v931_v44 = vsub.s32 0, %v2880_v30  ;;  %v939_v51 = vsub.s32 2, %v2880_v30  ;;  %v2887_v56 = vld [vmem:[%s3167_s7] sm:$0xff] }
 0x2c0   : > { %2250 = vmatprep.subr.bf16.mxu1 %v2713_v3  ;;  %v943_v3 = vsub.s32 3, %v2880_v30 }
 0x2c2   : > { %1558 = vmatmul.mubr.bf16.gmra.mxu1 %v2709_v0  ;;  %1671 = vmatmul.mubr.bf16.gmra.mxu0 %v2709_v0  ;;  %v935_v0 = vsub.s32 1, %v2880_v30 }
 0x2c3   : > { %1567 = vmatprep.mubr.bf16.mxu1 %v2356_v19  ;;  %1680 = vmatprep.mubr.bf16.mxu0 %v2356_v19 }
 0x2c4   : > { %2258 = vmatpush1.bf16.msra.mxu1 %v2718_v6  ;;  %v2898_v25 = vrot.slane %v2887_v56, %v935_v0 }
 0x2c5   : > { %2251 = vmatprep.subr.bf16.mxu1 %v2728_v9 }
 0x2c8   : > { %2259 = vmatpush1.bf16.msra.mxu1 %v2734_v15  ;;  %v2895_v15 = vrot.slane %v2887_v56, %v939_v51 }
 0x2c9   : > { %2252 = vmatprep.subr.bf16.mxu1 %v2760_v29  ;;  %v2901_v29 = vrot.slane %v2887_v56, %v943_v3 }
 0x2ca   : > { %1568 = vmatmul.mubr.bf16.gmra.mxu1 %v2758_v28  ;;  %1681 = vmatmul.mubr.bf16.gmra.mxu0 %v2758_v28 }
 0x2cb   : > { %1577 = vmatprep.mubr.bf16.mxu1 %v2356_v19  ;;  %1690 = vmatprep.mubr.bf16.mxu0 %v2356_v19 }
 0x2cc   : > { %2260 = vmatpush1.bf16.msra.mxu1 %v2763_v33 }
 0x2cd   : > { %2253 = vmatprep.subr.bf16.mxu1 %v2773_v36 }
 0x2d0   : > { %2261 = vmatpush1.bf16.msra.mxu1 %v2779_v42 }
 0x2d1   : > { %2254 = vmatprep.subr.bf16.mxu1 %v2804_v57 }
 0x2d2   : > { %1578 = vmatmul.mubr.bf16.gmra.mxu1 %v2800_v53  ;;  %1691 = vmatmul.mubr.bf16.gmra.mxu0 %v2800_v53 }
 0x2d3   : > { %1587 = vmatprep.mubr.bf16.mxu1 %v2356_v19  ;;  %1700 = vmatprep.mubr.bf16.mxu0 %v2356_v19 }
 0x2d4   : > { %2262 = vmatpush1.bf16.msra.mxu1 %v2807_v60 }
 0x2d5   : > { %2255 = vmatprep.subr.bf16.mxu1 %v2811_v61 }
 0x2d8   : > { %2263 = vmatpush1.bf16.msra.mxu1 %v2817_v2 }
 0x2da   : > { %1588 = vmatmul.mubr.bf16.gmra.mxu1 %v2823_v8  ;;  %1701 = vmatmul.mubr.bf16.gmra.mxu0 %v2823_v8 }
 0x2db   : > { %1597 = vmatprep.mubr.bf16.mxu1 %v2356_v19  ;;  %1710 = vmatprep.mubr.bf16.mxu0 %v2356_v19 }
 0x2e2   : > { %1598 = vmatmul.mubr.bf16.gmra.mxu1 %v860_v13  ;;  %1711 = vmatmul.mubr.bf16.gmra.mxu0 %v860_v13 }
 0x2e3   : > { %1607 = vmatprep.mubr.bf16.mxu1 %v2356_v19  ;;  %1720 = vmatprep.mubr.bf16.mxu0 %v2356_v19 }
 0x2ea   : > { %1608 = vmatmul.mubr.bf16.gmra.mxu1 %v861_v21  ;;  %1721 = vmatmul.mubr.bf16.gmra.mxu0 %v861_v21 }
 0x2eb   : > { %1617 = vmatprep.mubr.bf16.mxu1 %v2356_v19 }
 0x2f2   : > { %1618 = vmatmul.mubr.bf16.gmra.mxu1 %v862_v24 }
 0x2f3   : > { %1730 = vmatprep.mubr.bf16.mxu1 %v2356_v19  ;;  %v2892_v19 = vrot.slane %v2887_v56, %v931_v44 }
 0x2fa   : > { %1731 = vmatmul.mubr.bf16.vlgmr.msra.gmra.mxu1 %v862_v24 }
 0x33a   : > { %v1323_v6 = vpop.f32.mrf.mxu1  ;;  %v1436_v9 = vpop.f32.mrf.mxu0 }
 0x33b   : > { %v1324_v34 = vadd.f32 %v1323_v6, %v2892_v19  ;;  %v1437_v35 = vadd.f32 %v1436_v9, %v2895_v15 }
 0x33c   : > { %v1325_v28 = vpop.f32.mrf.mxu1  ;;  %v1438_v31 = vpop.f32.mrf.mxu0 }
 0x33d   : > { %v1326_v38 = vadd.f32 %v1325_v28, %v2898_v25  ;;  %v1439_v39 = vadd.f32 %v1438_v31, %v2901_v29 }
 0x33e   : > { %v1327_v32 = vpop.f32.mrf.mxu1  ;;  %v1440_v33 = vpop.f32.mrf.mxu0 }
 0x33f   : > { %v1328_v36 = vadd.f32 %v1327_v32, %v2892_v19  ;;  %v1441_v37 = vadd.f32 %v1440_v33, %v2895_v15 }
 0x340   : > { %v1329_v40 = vpop.f32.mrf.mxu1  ;;  %v1442_v41 = vpop.f32.mrf.mxu0 }
 0x341   : > { %v1742_v42 = vmax.f32 %v1324_v34, %v1328_v36  ;;  %v1784_v43 = vmax.f32 %v1437_v35, %v1441_v37  ;;  %v1330_v45 = vadd.f32 %v1329_v40, %v2898_v25  ;;  %v1443_v46 = vadd.f32 %v1442_v41, %v2901_v29 }
 0x342   : > { %v1333_v47 = vpop.f32.mrf.mxu1  ;;  %v1446_v48 = vpop.f32.mrf.mxu0 }
 0x343   : > { %v1763_v49 = vmax.f32 %v1326_v38, %v1330_v45  ;;  %v1805_v52 = vmax.f32 %v1439_v39, %v1443_v46  ;;  %v1334_v53 = vadd.f32 %v1333_v47, %v2892_v19  ;;  %v1447_v54 = vadd.f32 %v1446_v48, %v2895_v15 }
 0x344   : > { %v1335_v55 = vpop.f32.mrf.mxu1  ;;  %v1448_v57 = vpop.f32.mrf.mxu0 }
 0x345   : > { %v1743_v58 = vmax.f32 %v1742_v42, %v1334_v53  ;;  %v1785_v59 = vmax.f32 %v1784_v43, %v1447_v54  ;;  %v1336_v60 = vadd.f32 %v1335_v55, %v2898_v25  ;;  %v1449_v61 = vadd.f32 %v1448_v57, %v2901_v29 }
 0x346   : > { %v1337_v62 = vpop.f32.mrf.mxu1  ;;  %v1450_v63 = vpop.f32.mrf.mxu0 }
 0x347   : > { %v1764_v50 = vmax.f32 %v1763_v49, %v1336_v60  ;;  %v1806_v1 = vmax.f32 %v1805_v52, %v1449_v61  ;;  %v1338_v2 = vadd.f32 %v1337_v62, %v2892_v19  ;;  %v1451_v5 = vadd.f32 %v1450_v63, %v2895_v15 }
 0x348   : > { %v1339_v7 = vpop.f32.mrf.mxu1  ;;  %v1452_v8 = vpop.f32.mrf.mxu0 }
 0x349   : > { %v1744_v10 = vmax.f32 %v1743_v58, %v1338_v2  ;;  %v1786_v11 = vmax.f32 %v1785_v59, %v1451_v5  ;;  %v1340_v4 = vadd.f32 %v1339_v7, %v2898_v25  ;;  %v1453_v12 = vadd.f32 %v1452_v8, %v2901_v29 }
 0x34a   : > { %v1343_v13 = vpop.f32.mrf.mxu1  ;;  %v1456_v14 = vpop.f32.mrf.mxu0 }
 0x34b   : > { %v1765_v16 = vmax.f32 %v1764_v50, %v1340_v4  ;;  %v1807_v27 = vmax.f32 %v1806_v1, %v1453_v12  ;;  %v1344_v17 = vadd.f32 %v1343_v13, %v2892_v19  ;;  %v1457_v18 = vadd.f32 %v1456_v14, %v2895_v15 }
 0x34c   : > { %v1345_v20 = vpop.f32.mrf.mxu1  ;;  %v1458_v21 = vpop.f32.mrf.mxu0 }
 0x34d   : > { %v1745_v22 = vmax.f32 %v1744_v10, %v1344_v17  ;;  %v1787_v23 = vmax.f32 %v1786_v11, %v1457_v18  ;;  %v1346_v24 = vadd.f32 %v1345_v20, %v2898_v25  ;;  %v1459_v26 = vadd.f32 %v1458_v21, %v2901_v29 }
 0x34e   : > { %v1347_v44 = vpop.f32.mrf.mxu1  ;;  %v1460_v51 = vpop.f32.mrf.mxu0 }
 0x34f   : > { %v1766_v0 = vmax.f32 %v1765_v16, %v1346_v24  ;;  %v1808_v3 = vmax.f32 %v1807_v27, %v1459_v26  ;;  %v1348_v6 = vadd.f32 %v1347_v44, %v2892_v19  ;;  %v1461_v9 = vadd.f32 %v1460_v51, %v2895_v15 }
 0x350   : > { %v1349_v28 = vpop.f32.mrf.mxu1  ;;  %v1462_v31 = vpop.f32.mrf.mxu0 }
 0x351   : > { %v1746_v32 = vmax.f32 %v1745_v22, %v1348_v6  ;;  %v1788_v33 = vmax.f32 %v1787_v23, %v1461_v9  ;;  %v1350_v34 = vadd.f32 %v1349_v28, %v2898_v25  ;;  %v1463_v35 = vadd.f32 %v1462_v31, %v2901_v29 }
 0x352   : > { %v1353_v36 = vpop.f32.mrf.mxu1  ;;  %v1466_v37 = vpop.f32.mrf.mxu0 }
 0x353   : > { %v1767_v38 = vmax.f32 %v1766_v0, %v1350_v34  ;;  %v1809_v39 = vmax.f32 %v1808_v3, %v1463_v35  ;;  %v1354_v40 = vadd.f32 %v1353_v36, %v2892_v19  ;;  %v1467_v41 = vadd.f32 %v1466_v37, %v2895_v15 }
 0x354   : > { %v1355_v42 = vpop.f32.mrf.mxu1  ;;  %v1468_v43 = vpop.f32.mrf.mxu0 }
 0x355   : > { %v1747_v45 = vmax.f32 %v1746_v32, %v1354_v40  ;;  %v1789_v46 = vmax.f32 %v1788_v33, %v1467_v41  ;;  %v1356_v47 = vadd.f32 %v1355_v42, %v2898_v25  ;;  %v1469_v48 = vadd.f32 %v1468_v43, %v2901_v29 }
 0x356   : > { %v1357_v49 = vpop.f32.mrf.mxu1  ;;  %v1470_v52 = vpop.f32.mrf.mxu0 }
 0x357   : > { %v1768_v53 = vmax.f32 %v1767_v38, %v1356_v47  ;;  %v1810_v54 = vmax.f32 %v1809_v39, %v1469_v48  ;;  %v1358_v55 = vadd.f32 %v1357_v49, %v2892_v19  ;;  %v1471_v57 = vadd.f32 %v1470_v52, %v2895_v15 }
 0x358   : > { %v1359_v58 = vpop.f32.mrf.mxu1  ;;  %v1472_v59 = vpop.f32.mrf.mxu0 }
 0x359   : > { %v1748_v60 = vmax.f32 %v1747_v45, %v1358_v55  ;;  %v1790_v61 = vmax.f32 %v1789_v46, %v1471_v57  ;;  %v1360_v62 = vadd.f32 %v1359_v58, %v2898_v25  ;;  %v1473_v63 = vadd.f32 %v1472_v59, %v2901_v29 }
 0x35a   : > { %v1363_v50 = vpop.f32.mrf.mxu1  ;;  %v1476_v1 = vpop.f32.mrf.mxu0 }
 0x35b   : > { %v1769_v2 = vmax.f32 %v1768_v53, %v1360_v62  ;;  %v1811_v5 = vmax.f32 %v1810_v54, %v1473_v63  ;;  %v1364_v7 = vadd.f32 %v1363_v50, %v2892_v19  ;;  %v1477_v8 = vadd.f32 %v1476_v1, %v2895_v15 }
 0x35c   : > { %v1365_v10 = vpop.f32.mrf.mxu1  ;;  %v1478_v11 = vpop.f32.mrf.mxu0 }
 0x35d   : > { %v1749_v4 = vmax.f32 %v1748_v60, %v1364_v7  ;;  %v1791_v12 = vmax.f32 %v1790_v61, %v1477_v8  ;;  %v1366_v13 = vadd.f32 %v1365_v10, %v2898_v25  ;;  %v1479_v14 = vadd.f32 %v1478_v11, %v2901_v29 }
 0x35e   : > { %v1367_v16 = vpop.f32.mrf.mxu1  ;;  %v1480_v27 = vpop.f32.mrf.mxu0 }
 0x35f   : > { %v1770_v17 = vmax.f32 %v1769_v2, %v1366_v13  ;;  %v1812_v18 = vmax.f32 %v1811_v5, %v1479_v14  ;;  %v1368_v20 = vadd.f32 %v1367_v16, %v2892_v19  ;;  %v1481_v21 = vadd.f32 %v1480_v27, %v2895_v15 }
 0x360   : > { %v1369_v22 = vpop.f32.mrf.mxu1  ;;  %v1482_v23 = vpop.f32.mrf.mxu0 }
 0x361   : > { %v1750_v24 = vmax.f32 %v1749_v4, %v1368_v20  ;;  %v1792_v26 = vmax.f32 %v1791_v12, %v1481_v21  ;;  %v1370_v44 = vadd.f32 %v1369_v22, %v2898_v25  ;;  %v1483_v51 = vadd.f32 %v1482_v23, %v2901_v29 }
 0x362   : > { %v1373_v0 = vpop.f32.mrf.mxu1  ;;  %v1486_v3 = vpop.f32.mrf.mxu0 }
 0x363   : > { %v1771_v6 = vmax.f32 %v1770_v17, %v1370_v44  ;;  %v1813_v9 = vmax.f32 %v1812_v18, %v1483_v51  ;;  %v1374_v28 = vadd.f32 %v1373_v0, %v2892_v19  ;;  %v1487_v31 = vadd.f32 %v1486_v3, %v2895_v15 }
 0x364   : > { %v1375_v32 = vpop.f32.mrf.mxu1  ;;  %v1488_v33 = vpop.f32.mrf.mxu0 }
 0x365   : > { %v1751_v34 = vmax.f32 %v1750_v24, %v1374_v28  ;;  %v1793_v35 = vmax.f32 %v1792_v26, %v1487_v31  ;;  %v1376_v36 = vadd.f32 %v1375_v32, %v2898_v25  ;;  %v1489_v37 = vadd.f32 %v1488_v33, %v2901_v29 }
 0x366   : > { %v1377_v38 = vpop.f32.mrf.mxu1  ;;  %v1490_v39 = vpop.f32.mrf.mxu0 }
 0x367   : > { %v1772_v40 = vmax.f32 %v1771_v6, %v1376_v36  ;;  %v1814_v41 = vmax.f32 %v1813_v9, %v1489_v37  ;;  %v1378_v42 = vadd.f32 %v1377_v38, %v2892_v19  ;;  %v1491_v43 = vadd.f32 %v1490_v39, %v2895_v15 }
 0x368   : > { %v1379_v45 = vpop.f32.mrf.mxu1  ;;  %v1492_v46 = vpop.f32.mrf.mxu0 }
 0x369   : > { %v1752_v47 = vmax.f32 %v1751_v34, %v1378_v42  ;;  %v1794_v48 = vmax.f32 %v1793_v35, %v1491_v43  ;;  %v1380_v49 = vadd.f32 %v1379_v45, %v2898_v25  ;;  %v1493_v52 = vadd.f32 %v1492_v46, %v2901_v29 }
 0x36a   : > { %v1383_v53 = vpop.f32.mrf.mxu1  ;;  %v1496_v54 = vpop.f32.mrf.mxu0 }
 0x36b   : > { %v1773_v55 = vmax.f32 %v1772_v40, %v1380_v49  ;;  %v1815_v57 = vmax.f32 %v1814_v41, %v1493_v52  ;;  %v1384_v58 = vadd.f32 %v1383_v53, %v2892_v19  ;;  %v1497_v59 = vadd.f32 %v1496_v54, %v2895_v15 }
 0x36c   : > { %v1385_v60 = vpop.f32.mrf.mxu1  ;;  %v1498_v61 = vpop.f32.mrf.mxu0  ;;  %v2357_v53 = vmov 1966171168  }
 0x36d   : > { %v1753_v62 = vmax.f32 %v1752_v47, %v1384_v58  ;;  %v1795_v63 = vmax.f32 %v1794_v48, %v1497_v59  ;;  %v1386_v50 = vadd.f32 %v1385_v60, %v2898_v25  ;;  %v1499_v1 = vadd.f32 %v1498_v61, %v2901_v29 }
 0x36e   : > { %v1387_v2 = vpop.f32.mrf.mxu1  ;;  %v1500_v5 = vpop.f32.mrf.mxu0 }
 0x36f   : > { %v1774_v7 = vmax.f32 %v1773_v55, %v1386_v50  ;;  %v1816_v8 = vmax.f32 %v1815_v57, %v1499_v1  ;;  %v1388_v10 = vadd.f32 %v1387_v2, %v2892_v19  ;;  %v1501_v11 = vadd.f32 %v1500_v5, %v2895_v15 }
 0x370   : > { %v1389_v4 = vpop.f32.mrf.mxu1  ;;  %v1502_v12 = vpop.f32.mrf.mxu0 }
 0x371   : > { %v1754_v13 = vmax.f32 %v1753_v62, %v1388_v10  ;;  %v1796_v14 = vmax.f32 %v1795_v63, %v1501_v11  ;;  %v1390_v16 = vadd.f32 %v1389_v4, %v2898_v25  ;;  %v1503_v27 = vadd.f32 %v1502_v12, %v2901_v29 }
 0x372   : > { %v1393_v17 = vpop.f32.mrf.mxu1  ;;  %v1506_v18 = vpop.f32.mrf.mxu0 }
 0x373   : > { %v1775_v20 = vmax.f32 %v1774_v7, %v1390_v16  ;;  %v1817_v21 = vmax.f32 %v1816_v8, %v1503_v27  ;;  %v1394_v22 = vadd.f32 %v1393_v17, %v2892_v19  ;;  %v1507_v23 = vadd.f32 %v1506_v18, %v2895_v15 }
 0x374   : > { %v1395_v24 = vpop.f32.mrf.mxu1  ;;  %v1508_v26 = vpop.f32.mrf.mxu0 }
 0x375   : > { %v1755_v44 = vmax.f32 %v1754_v13, %v1394_v22  ;;  %v1797_v51 = vmax.f32 %v1796_v14, %v1507_v23  ;;  %v1396_v0 = vadd.f32 %v1395_v24, %v2898_v25  ;;  %v1509_v3 = vadd.f32 %v1508_v26, %v2901_v29 }
 0x376   : > { %v1397_v6 = vpop.f32.mrf.mxu1  ;;  %v1510_v9 = vpop.f32.mrf.mxu0 }
 0x377   : > { %v1776_v28 = vmax.f32 %v1775_v20, %v1396_v0  ;;  %v1398_v31 = vadd.f32 %v1397_v6, %v2892_v19  ;;  %v1511_v32 = vadd.f32 %v1510_v9, %v2895_v15  ;;  %v1818_v33 = vmax.f32 %v1817_v21, %v1509_v3 }
 0x378   : > { %v1399_v34 = vpop.f32.mrf.mxu1  ;;  %v1512_v35 = vpop.f32.mrf.mxu0 }
 0x379   : > { %v1756_v36 = vmax.f32 %v1755_v44, %v1398_v31  ;;  %v1798_v37 = vmax.f32 %v1797_v51, %v1511_v32  ;;  %v1400_v38 = vadd.f32 %v1399_v34, %v2898_v25  ;;  %v1513_v39 = vadd.f32 %v1512_v35, %v2901_v29 }
 0x37a   : > { %v2967_v40 = vpop.f32.mrf.mxu1  ;;  %v2969_v41 = vpop.f32.mrf.mxu0  ;;  %v1923_v25 = vunpack.c.l.s4 %v2357_v53 }
 0x37b   : > { %v1757_v42 = vrot.slane %v1756_v36, 4  ;;  %v1799_v43 = vrot.slane %v1798_v37, 4  ;;  %v1777_v45 = vmax.f32 %v1776_v28, %v1400_v38  ;;  %v1819_v46 = vmax.f32 %v1818_v33, %v1513_v39 }
 0x37c   : > { %v2971_v19 = vpop.f32.mrf.mxu1  ;;  %v2973_v15 = vpop.f32.mrf.mxu0  ;;  %v1924_v2 = vunpack.c.0.s8 %v1923_v25  ;;  %v947_v39 = vsub.s32 4, %v2880_v30 }
 0x37d   : > { %v1758_v47 = vmax.f32 %v1756_v36, %v1757_v42  ;;  %v1800_v48 = vmax.f32 %v1798_v37, %v1799_v43  ;;  %v1778_v49 = vrot.slane %v1777_v45, 4  ;;  %v1820_v52 = vrot.slane %v1819_v46, 4 }
 0x37e   : > { %v1553_v54 = vpop.f32.mrf.mxu1  ;;  %v2975_v29 = vpop.f32.mrf.mxu0  ;;  %v2984_v27 = vsub.s32 %v1924_v2, %v2880_v30 }
 0x37f   : > { %v1759_v55 = vrot.slane %v1758_v47, 2  ;;  %v1801_v57 = vrot.slane %v1800_v48, 2  ;;  %v1779_v58 = vmax.f32 %v1777_v45, %v1778_v49  ;;  %v1821_v59 = vmax.f32 %v1819_v46, %v1820_v52 }
 0x380   : > { %v1555_v60 = vpop.f32.mrf.mxu1  ;;  %v2977_v61 = vpop.f32.mrf.mxu0  ;;  %v951_v45 = vsub.s32 5, %v2880_v30 }
 0x381   : > { %v1760_v62 = vmax.f32 %v1758_v47, %v1759_v55  ;;  %v1802_v63 = vmax.f32 %v1800_v48, %v1801_v57  ;;  %v1780_v50 = vrot.slane %v1779_v58, 2  ;;  %v1822_v1 = vrot.slane %v1821_v59, 2 }
 0x382   : > { %v1559_v5 = vpop.f32.mrf.mxu1  ;;  %v2979_v7 = vpop.f32.mrf.mxu0  ;;  %v3015_v48 = vrot.slane %v2887_v56, %v947_v39  ;;  %v3020_v53 = vrot.slane %v2887_v56, %v951_v45  ;;  %v955_v55 = vsub.s32 6, %v2880_v30 }
 0x383   : > { %v1761_v8 = vrot.slane %v1760_v62, 1  ;;  %v1803_v10 = vrot.slane %v1802_v63, 1  ;;  %v1781_v11 = vmax.f32 %v1779_v58, %v1780_v50  ;;  %v1823_v4 = vmax.f32 %v1821_v59, %v1822_v1 }
 0x384   : > { %v1561_v12 = vpop.f32.mrf.mxu1  ;;  %v2981_v13 = vpop.f32.mrf.mxu0  ;;  %v1554_v25 = vadd.f32 %v1553_v54, %v3015_v48  ;;  %v1550_v59 = vadd.f32 %v2967_v40, %v3015_v48  ;;  %v959_v50 = vsub.s32 7, %v2880_v30  ;;  %v1552_v54 = vadd.f32 %v2971_v19, %v3020_v53 }
 0x385   : > { %v1782_v14 = vrot.slane %v1781_v11, 1  ;;  %v1824_v16 = vrot.slane %v1823_v4, 1  ;;  %v1762_v20 = vmax.f32 %v1760_v62, %v1761_v8  ;;  %v1804_v21 = vmax.f32 %v1802_v63, %v1803_v10 }
 0x386   : > { %v1563_v17 = vpop.f32.mrf.mxu1  ;;  %v2986_v18 = vpop.f32.mrf.mxu0  ;;  %v1556_v62 = vadd.f32 %v1555_v60, %v3020_v53  ;;  %v1560_v63 = vadd.f32 %v1559_v5, %v3015_v48  ;;  %v1826_v8 = vmax.f32 %v1550_v59, %v1554_v25  ;;  %v1562_v10 = vadd.f32 %v1561_v12, %v3020_v53 }
 0x387   : > { %v1783_v22 = vmax.f32 %v1781_v11, %v1782_v14  ;;  %v1825_v23 = vmax.f32 %v1823_v4, %v1824_v16  ;;  %v1564_v11 = vadd.f32 %v1563_v17, %v3015_v48  ;;  %v3038_v4 = vrot.slane %v2887_v56, %v955_v55 }
 0x388   : > { %v1565_v24 = vpop.f32.mrf.mxu1  ;;  %v2988_v26 = vpop.f32.mrf.mxu0  ;;  %v1847_v5 = vmax.f32 %v1552_v54, %v1556_v62  ;;  %v1827_v14 = vmax.f32 %v1826_v8, %v1560_v63 }
 0x389   : > { %v1918_v44 = vcombine.low %v1762_v20, %v1783_v22  ;;  %v1919_v51 = vcombine.low %v1804_v21, %v1825_v23  ;;  %v1566_v30 = vadd.f32 %v1565_v24, %v3020_v53  ;;  %v3045_v20 = vrot.slane %v2887_v56, %v959_v50 }
 0x38a   : > { %v1569_v0 = vpop.f32.mrf.mxu1  ;;  %v2990_v3 = vpop.f32.mrf.mxu0  ;;  %v1667_v19 = vadd.f32 %v2975_v29, %v3038_v4  ;;  %v1848_v21 = vmax.f32 %v1847_v5, %v1562_v10  ;;  %v1828_v22 = vmax.f32 %v1827_v14, %v1564_v11  ;;  %v1663_v24 = vadd.f32 %v2969_v41, %v3038_v4 }
 0x38b   : > { %v2993_v6 = vrot.slane %v1918_v44, %v2984_v27  ;;  %v2996_v9 = vrot.slane %v1919_v51, %v2984_v27  ;;  %v1570_v16 = vadd.f32 %v1569_v0, %v3015_v48  ;;  %v1669_v51 = vadd.f32 %v2977_v61, %v3045_v20 }
 0x38c   : > { %v1571_v28 = vpop.f32.mrf.mxu1  ;;  %v2998_v31 = vpop.f32.mrf.mxu0  ;;  %v1673_v56 = vadd.f32 %v2979_v7, %v3038_v4  ;;  %v1849_v39 = vmax.f32 %v1848_v21, %v1566_v30  ;;  %v1868_v55 = vmax.f32 %v1663_v24, %v1667_v19  ;;  %v1675_v41 = vadd.f32 %v2981_v13, %v3045_v20 }
 0x38d   : > { %v1950_v32 = vcombine.low %v2993_v6, %v2996_v9  ;;  %v1572_v23 = vadd.f32 %v1571_v28, %v3020_v53  ;;  %v1829_v45 = vmax.f32 %v1828_v22, %v1570_v16  ;;  %v1677_v61 = vadd.f32 %v2986_v18, %v3038_v4 }
 0x38e   : > { %v1573_v33 = vpop.f32.mrf.mxu1  ;;  %v3002_v34 = vpop.f32.mrf.mxu0  ;;  %v1869_v54 = vmax.f32 %v1868_v55, %v1673_v56  ;;  %v1683_v13 = vadd.f32 %v2990_v3, %v3038_v4 }
 0x38f   : > { %v1574_v44 = vadd.f32 %v1573_v33, %v3015_v48  ;;  %v1665_v33 = vadd.f32 %v2973_v15, %v3045_v20  ;;  %v1850_v62 = vmax.f32 %v1849_v39, %v1572_v23  ;;  %v1679_v15 = vadd.f32 %v2988_v26, %v3045_v20 }
 0x390   : > { %v1575_v35 = vpop.f32.mrf.mxu1  ;;  %v3004_v36 = vpop.f32.mrf.mxu0  ;;  %v1870_v30 = vmax.f32 %v1869_v54, %v1677_v61  ;;  %v1687_v26 = vadd.f32 %v3002_v34, %v3038_v4 }
 0x391   : > { %v1576_v25 = vadd.f32 %v1575_v35, %v3020_v53  ;;  %v1830_v63 = vmax.f32 %v1829_v45, %v1574_v44 }
 0x392   : > { %v1579_v37 = vpop.f32.mrf.mxu1  ;;  %v3006_v38 = vpop.f32.mrf.mxu0  ;;  %v1871_v44 = vmax.f32 %v1870_v30, %v1683_v13 }
 0x393   : > { %v1580_v28 = vadd.f32 %v1579_v37, %v3015_v48  ;;  %v1889_v37 = vmax.f32 %v1665_v33, %v1669_v51  ;;  %v1851_v18 = vmax.f32 %v1850_v62, %v1576_v25 }
 0x394   : > { %v1581_v42 = vpop.f32.mrf.mxu1  ;;  %v3009_v43 = vpop.f32.mrf.mxu0  ;;  %v1872_v25 = vmax.f32 %v1871_v44, %v1687_v26 }
 0x395   : > { %v1582_v50 = vadd.f32 %v1581_v42, %v3020_v53  ;;  %v1831_v11 = vmax.f32 %v1830_v63, %v1580_v28  ;;  %v1890_v42 = vmax.f32 %v1889_v37, %v1675_v41 }
 0x396   : > { %v1583_v46 = vpop.f32.mrf.mxu1  ;;  %v3012_v47 = vpop.f32.mrf.mxu0 }
 0x397   : > { %v1584_v35 = vadd.f32 %v1583_v46, %v3015_v48  ;;  %v1685_v46 = vadd.f32 %v2998_v31, %v3045_v20  ;;  %v1852_v3 = vmax.f32 %v1851_v18, %v1582_v50  ;;  %v1693_v31 = vadd.f32 %v3006_v38, %v3038_v4 }
 0x398   : > { %v1585_v49 = vpop.f32.mrf.mxu1  ;;  %v3017_v52 = vpop.f32.mrf.mxu0 }
 0x399   : > { %v1586_v5 = vadd.f32 %v1585_v49, %v3020_v53  ;;  %v1832_v21 = vmax.f32 %v1831_v11, %v1584_v35  ;;  %v1891_v49 = vmax.f32 %v1890_v42, %v1679_v15 }
 0x39a   : > { %v1589_v57 = vpop.f32.mrf.mxu1  ;;  %v3024_v58 = vpop.f32.mrf.mxu0 }
 0x39b   : > { %v1590_v14 = vadd.f32 %v1589_v57, %v3015_v48  ;;  %v1689_v57 = vadd.f32 %v3004_v36, %v3045_v20  ;;  %v1853_v51 = vmax.f32 %v1852_v3, %v1586_v5  ;;  %v1892_v45 = vmax.f32 %v1891_v49, %v1685_v46 }
 0x39c   : > { %v1591_v1 = vpop.f32.mrf.mxu1  ;;  %v3031_v2 = vpop.f32.mrf.mxu0  ;;  %v1703_v62 = vadd.f32 %v3024_v58, %v3038_v4 }
 0x39d   : > { %v1592_v22 = vadd.f32 %v1591_v1, %v3020_v53  ;;  %v1833_v34 = vmax.f32 %v1832_v21, %v1590_v14  ;;  %v1695_v1 = vadd.f32 %v3009_v43, %v3045_v20  ;;  %v1893_v61 = vmax.f32 %v1892_v45, %v1689_v57 }
 0x39e   : > { %v1593_v40 = vpop.f32.mrf.mxu1  ;;  %v3040_v60 = vpop.f32.mrf.mxu0 }
 0x39f   : > { %v1594_v23 = vadd.f32 %v1593_v40, %v3015_v48  ;;  %v1697_v40 = vadd.f32 %v3012_v47, %v3038_v4  ;;  %v1854_v33 = vmax.f32 %v1853_v51, %v1592_v22  ;;  %v1894_v37 = vmax.f32 %v1893_v61, %v1695_v1 }
 0x3a0   : > { %v1595_v12 = vpop.f32.mrf.mxu1  ;;  %v3049_v17 = vpop.f32.mrf.mxu0  ;;  %v1707_v15 = vadd.f32 %v3040_v60, %v3038_v4 }
 0x3a1   : > { %v1596_v56 = vadd.f32 %v1595_v12, %v3020_v53  ;;  %v1834_v55 = vmax.f32 %v1833_v34, %v1594_v23  ;;  %v1873_v12 = vmax.f32 %v1872_v25, %v1693_v31  ;;  %v1709_v42 = vadd.f32 %v3049_v17, %v3045_v20 }
 0x3a2   : > { %v1599_v0 = vpop.f32.mrf.mxu1  ;;  %v3059_v29 = vpop.f32.mrf.mxu0 }
 0x3a3   : > { %v1600_v39 = vadd.f32 %v1599_v0, %v3015_v48  ;;  %v1699_v0 = vadd.f32 %v3017_v52, %v3045_v20  ;;  %v1855_v63 = vmax.f32 %v1854_v33, %v1596_v56  ;;  %v1874_v54 = vmax.f32 %v1873_v12, %v1697_v40 }
 0x3a4   : > { %v1601_v7 = vpop.f32.mrf.mxu1  ;;  %v3069_v59 = vpop.f32.mrf.mxu0  ;;  %v1713_v30 = vadd.f32 %v3059_v29, %v3038_v4 }
 0x3a5   : > { %v1602_v38 = vadd.f32 %v1601_v7, %v3020_v53  ;;  %v1835_v50 = vmax.f32 %v1834_v55, %v1600_v39  ;;  %v1705_v7 = vadd.f32 %v3031_v2, %v3045_v20  ;;  %v1895_v5 = vmax.f32 %v1894_v37, %v1699_v0 }
 0x3a6   : > { %v1603_v8 = vpop.f32.mrf.mxu1  ;;  %v3077_v10 = vpop.f32.mrf.mxu0  ;;  %v1875_v14 = vmax.f32 %v1874_v54, %v1703_v62  ;;  %v1715_v22 = vadd.f32 %v3069_v59, %v3045_v20 }
 0x3a7   : > { %v1604_v41 = vadd.f32 %v1603_v8, %v3015_v48  ;;  %v1856_v8 = vmax.f32 %v1855_v63, %v1602_v38  ;;  %v1896_v3 = vmax.f32 %v1895_v5, %v1705_v7  ;;  %v1717_v23 = vadd.f32 %v3077_v10, %v3038_v4 }
 0x3a8   : > { %v1605_v16 = vpop.f32.mrf.mxu1  ;;  %v3085_v19 = vpop.f32.mrf.mxu0  ;;  %v1876_v21 = vmax.f32 %v1875_v14, %v1707_v15 }
 0x3a9   : > { %v1606_v47 = vadd.f32 %v1605_v16, %v3020_v53  ;;  %v1836_v18 = vmax.f32 %v1835_v50, %v1604_v41  ;;  %v1897_v31 = vmax.f32 %v1896_v3, %v1709_v42  ;;  %v1719_v51 = vadd.f32 %v3085_v19, %v3045_v20 }
 0x3aa   : > { %v1609_v24 = vpop.f32.mrf.mxu1  ;;  %v1722_v28 = vpop.f32.mrf.mxu0 }
 0x3ab   : > { %v1610_v35 = vadd.f32 %v1609_v24, %v3015_v48  ;;  %v1857_v46 = vmax.f32 %v1856_v8, %v1606_v47  ;;  %v1877_v24 = vmax.f32 %v1876_v21, %v1713_v30  ;;  %v1723_v34 = vadd.f32 %v1722_v28, %v3038_v4 }
 0x3ac   : > { %v1611_v36 = vpop.f32.mrf.mxu1  ;;  %v1724_v13 = vpop.f32.mrf.mxu0  ;;  %v1898_v25 = vmax.f32 %v1897_v31, %v1715_v22 }
 0x3ad   : > { %v1612_v58 = vadd.f32 %v1611_v36, %v3020_v53  ;;  %v1837_v26 = vmax.f32 %v1836_v18, %v1610_v35  ;;  %v1878_v10 = vmax.f32 %v1877_v24, %v1717_v23  ;;  %v1725_v1 = vadd.f32 %v1724_v13, %v3045_v20 }
 0x3ae   : > { %v1613_v43 = vpop.f32.mrf.mxu1  ;;  %v1726_v49 = vpop.f32.mrf.mxu0  ;;  %v1899_v19 = vmax.f32 %v1898_v25, %v1719_v51 }
 0x3af   : > { %v1614_v11 = vadd.f32 %v1613_v43, %v3015_v48  ;;  %v1858_v44 = vmax.f32 %v1857_v46, %v1612_v58  ;;  %v1727_v33 = vadd.f32 %v1726_v49, %v3038_v4  ;;  %v1879_v61 = vmax.f32 %v1878_v10, %v1723_v34 }
 0x3b0   : > { %v1615_v52 = vpop.f32.mrf.mxu1  ;;  %v1728_v40 = vpop.f32.mrf.mxu0  ;;  %v1900_v43 = vmax.f32 %v1899_v19, %v1725_v1 }
 0x3b1   : > { %v1616_v60 = vadd.f32 %v1615_v52, %v3020_v53  ;;  %v1838_v57 = vmax.f32 %v1837_v26, %v1614_v11  ;;  %v1729_v12 = vadd.f32 %v1728_v40, %v3045_v20  ;;  %v1880_v50 = vmax.f32 %v1879_v61, %v1727_v33 }
 0x3b2   : > { %v1619_v2 = vpop.f32.mrf.mxu1 }
 0x3b3   : > { %v1620_v16 = vadd.f32 %v1619_v2, %v3015_v48  ;;  %v1859_v39 = vmax.f32 %v1858_v44, %v1616_v60  ;;  %v1901_v7 = vmax.f32 %v1900_v43, %v1729_v12 }
 0x3b4   : > { %v1621_v17 = vpop.f32.mrf.mxu1 }
 0x3b5   : > { %v1622_v29 = vadd.f32 %v1621_v17, %v3020_v53  ;;  %v1839_v45 = vmax.f32 %v1838_v57, %v1620_v16 }
 0x3b6   : > { %v1623_v56 = vpop.f32.mrf.mxu1 }
 0x3b7   : > { %v1624_v59 = vadd.f32 %v1623_v56, %v3015_v48  ;;  %v1860_v55 = vmax.f32 %v1859_v39, %v1622_v29  ;;  %v1958_v39 = vrot.slane %v1950_v32, %v2984_v27 }
 0x3b8   : > { %v1625_v36 = vpop.f32.mrf.mxu1 }
 0x3b9   : > { %v1840_v38 = vmax.f32 %v1839_v45, %v1624_v59  ;;  %v1626_v41 = vadd.f32 %v1625_v36, %v3020_v53  ;;  %v1741_v59 = vld [vmem:[%s2447_s26] sm:$0xff] }
 0x3ba   : > { %v1732_v28 = vpop.f32.mrf.mxu1 }
 0x3bb   : > { %v1841_v0 = vrot.slane %v1840_v38, 4  ;;  %v1861_v62 = vmax.f32 %v1860_v55, %v1626_v41  ;;  %v1733_v48 = vadd.f32 %v1732_v28, %v3038_v4 }
 0x3bc   : > { %v1734_v63 = vpop.f32.mrf.mxu1 }
 0x3bd   : > { %v1842_v47 = vmax.f32 %v1840_v38, %v1841_v0  ;;  %v1862_v35 = vrot.slane %v1861_v62, 4  ;;  %v1735_v37 = vadd.f32 %v1734_v63, %v3045_v20  ;;  %v1881_v53 = vmax.f32 %v1880_v50, %v1733_v48 }
 0x3be   : > { %v1736_v54 = vpop.f32.mrf.mxu1 }
 0x3bf   : > { %v1863_v15 = vmax.f32 %v1861_v62, %v1862_v35  ;;  %v1737_v13 = vadd.f32 %v1736_v54, %v3038_v4  ;;  %v1843_v52 = vrot.slane %v1842_v47, 2  ;;  %v1902_v58 = vmax.f32 %v1901_v7, %v1735_v37 }
 0x3c0   : > { %v1738_v8 = vpop.f32.mrf.mxu1 }
 0x3c1   : > { %v1864_v18 = vrot.slane %v1863_v15, 2  ;;  %v1882_v11 = vmax.f32 %v1881_v53, %v1737_v13  ;;  %v1739_v5 = vadd.f32 %v1738_v8, %v3045_v20  ;;  %v1844_v2 = vmax.f32 %v1842_v47, %v1843_v52 }
 0x3c3   : > { %v1865_v14 = vmax.f32 %v1863_v15, %v1864_v18  ;;  %v1883_v42 = vrot.slane %v1882_v11, 4  ;;  %v1903_v30 = vmax.f32 %v1902_v58, %v1739_v5  ;;  %v1845_v21 = vrot.slane %v1844_v2, 1 }
 0x3c5   : > { %v1884_v46 = vmax.f32 %v1882_v11, %v1883_v42  ;;  %v1904_v26 = vrot.slane %v1903_v30, 4  ;;  %v1866_v60 = vrot.slane %v1865_v14, 1  ;;  %v1846_v44 = vmax.f32 %v1844_v2, %v1845_v21 }
 0x3c7   : > { %v1885_v16 = vrot.slane %v1884_v46, 2  ;;  %v1905_v3 = vmax.f32 %v1903_v30, %v1904_v26  ;;  %v1867_v23 = vmax.f32 %v1865_v14, %v1866_v60 }
 0x3c9   : > { %v1886_v22 = vmax.f32 %v1884_v46, %v1885_v16  ;;  %v1906_v4 = vrot.slane %v1905_v3, 2  ;;  %v1920_v20 = vcombine.low %v1846_v44, %v1867_v23 }
 0x3cb   : > { %v1887_v49 = vrot.slane %v1886_v22, 1  ;;  %v1907_v17 = vmax.f32 %v1905_v3, %v1906_v4  ;;  %v1942_v51 = vrot.slane %v1920_v20, %v2984_v27 }
 0x3cd   : > { %v1908_v57 = vrot.slane %v1907_v17, 1  ;;  %v1888_v29 = vmax.f32 %v1886_v22, %v1887_v49 }
 0x3cf   : > { %v1909_v31 = vmax.f32 %v1907_v17, %v1908_v57 }
 0x3d1   : > { %v1921_v24 = vcombine.low %v1888_v29, %v1909_v31 }
 0x3d3   : > { %v1949_v34 = vrot.slane %v1921_v24, %v2984_v27 }
 0x3d5   : > { %v1951_v56 = vcombine.low %v1942_v51, %v1949_v34 }
 0x3d7   : > { %v1965_v45 = vrot.slane %v1951_v56, %v2984_v27 }
 0x3d9   : > { %v1966_v25 = vcombine.low %v1958_v39, %v1965_v45 }
 0x3db   : > { %v1968_v10 = vmax.f32 %v1741_v59, %v1966_v25 }
 0x3dd   : > { %1969 = vst [vmem:[%s2447_s26] sm:$0xff] %v1968_v10 }
 0x3de PF: > { %s18_s9 = sadd.s32 1, %s2351_s9   ;;  %s3169_s27 = smov %s2343_s29 }
 0x3df   : > { %p15_p8 = scmp.ge.s32.totalorder %s18_s9, 6   ;;  %s3170_s28 = smov %s2347_s30 }
 0x3e0   : > { %s3171_s29 = smov %s3174_s10  ;;  %s3172_s30 = smov %s3178_s11 }
 0x3e1   :  { %17 = sbr.rel (!%p15_p8) target bundleno = 3 (0x3), region = 89 }

</bundles_post_ra>
